<compile_context>
chip_gen: v5e
topology: v5e:2x2
jax: 0.10.0
libtpu: 0.0.40
codegen_flags: <defaults>
</compile_context>

<pallas_src>
import jax
import jax.numpy as jnp
from jax import lax
from jax.experimental import pallas as pl
from jax.experimental.pallas import tpu as pltpu


# ---------------------------------------------------------------------------
# Fused matmul kernels:  out = A @ B (+ bias, tanh)   [bf16 in, f32 acc]
# Optional epilogue emits per-column sum / sum-of-squares for fused BatchNorm.
# ---------------------------------------------------------------------------
def _mm_plain_kernel(a_ref, b_ref, o_ref):
    y = jnp.dot(a_ref[...], b_ref[...], preferred_element_type=jnp.float32)
    o_ref[...] = y.astype(o_ref.dtype)


def _mm_bn_kernel(a_ref, b_ref, o_ref, s_ref, q_ref):
    y = jnp.dot(a_ref[...], b_ref[...], preferred_element_type=jnp.float32)
    # Column sums for BatchNorm stats (tiny blocks here; an MXU ones-matvec
    # would be preferable at production sizes).
    s_ref[...] = jnp.sum(y, axis=0, keepdims=True)
    q_ref[...] = jnp.sum(y * y, axis=0, keepdims=True)
    o_ref[...] = y.astype(o_ref.dtype)


def _mm_bias_tanh_kernel(a_ref, b_ref, bias_ref, o_ref):
    y = jnp.dot(a_ref[...], b_ref[...], preferred_element_type=jnp.float32)
    o_ref[...] = jnp.tanh(y + bias_ref[...]).astype(o_ref.dtype)


def fused_matmul(a, b, *, bias=None, tanh=False, emit_bn=False,
                 out_dtype=jnp.bfloat16):
    M, K = a.shape
    Kb, N = b.shape
    assert Kb == K
    a = a.astype(jnp.bfloat16)
    b = b.astype(jnp.bfloat16)

    # Single grid step (tm = M) at this model size.  The split only engages
    # for much larger problems (A tile > 2 MiB); BN-sum layers always use one
    # tile so the in-kernel column sums are complete.
    tm = M
    if (not emit_bn) and (M % 256 == 0) and (M * K * 2 > (2 << 20)):
        tm = 256

    a_spec = pl.BlockSpec((tm, K), lambda i: (i, 0))
    b_spec = pl.BlockSpec((K, N), lambda i: (0, 0))
    o_spec = pl.BlockSpec((tm, N), lambda i: (i, 0))
    vec_spec = pl.BlockSpec((1, N), lambda i: (0, 0))
    cp = pltpu.CompilerParams(dimension_semantics=("parallel",))
    grid = (M // tm,)

    if bias is not None:
        assert tanh, "bias is only used by the outermost (tanh) up-conv"
        return pl.pallas_call(
            _mm_bias_tanh_kernel,
            out_shape=jax.ShapeDtypeStruct((M, N), out_dtype),
            grid=grid,
            in_specs=[a_spec, b_spec, vec_spec],
            out_specs=o_spec,
            compiler_params=cp,
        )(a, b, bias.reshape(1, N).astype(jnp.float32))

    if emit_bn:
        return pl.pallas_call(
            _mm_bn_kernel,
            out_shape=(jax.ShapeDtypeStruct((M, N), out_dtype),
                       jax.ShapeDtypeStruct((1, N), jnp.float32),
                       jax.ShapeDtypeStruct((1, N), jnp.float32)),
            grid=grid,
            in_specs=[a_spec, b_spec],
            out_specs=(o_spec, vec_spec, vec_spec),
            compiler_params=cp,
        )(a, b)

    return pl.pallas_call(
        _mm_plain_kernel,
        out_shape=jax.ShapeDtypeStruct((M, N), out_dtype),
        grid=grid,
        in_specs=[a_spec, b_spec],
        out_specs=o_spec,
        compiler_params=cp,
    )(a, b)


# ---------------------------------------------------------------------------
# BatchNorm finish (XLA scalar glue on the fused per-channel sums).
# ---------------------------------------------------------------------------
def finish_bn(col_sum, col_sumsq, count, gamma, beta, eps=1e-5):
    mean = col_sum / count
    var = jnp.maximum(col_sumsq / count - mean * mean, 0.0)
    scale = gamma * lax.rsqrt(var + eps)
    shift = beta - mean * scale
    return scale, shift


# Lazy value = (data_bf16, pending_scale, pending_shift); logical tensor is
# data*scale + shift (channelwise).  The pending BN apply + activation run
# once, pre-im2col, inside the consumer's XLA patch-building fusion.
def apply_pending(value, act):
    x, sc, sh = value
    if sc is not None:
        x = x.astype(jnp.float32) * sc + sh
    if act == "lrelu":
        x = jnp.where(x >= 0, x, 0.2 * x)
    elif act == "relu":
        x = jnp.maximum(x, 0.0)
    return x.astype(jnp.bfloat16)


def lazy_concat(v1, v2):
    d = jnp.concatenate([v1[0].astype(jnp.bfloat16),
                         v2[0].astype(jnp.bfloat16)], axis=-1)
    if v1[1] is None and v2[1] is None:
        return (d, None, None)

    def materialize(v):
        c = v[0].shape[-1]
        s = v[1] if v[1] is not None else jnp.ones((c,), jnp.float32)
        b = v[2] if v[2] is not None else jnp.zeros((c,), jnp.float32)
        return s, b

    s1, b1 = materialize(v1)
    s2, b2 = materialize(v2)
    return (d, jnp.concatenate([s1, s2]), jnp.concatenate([b1, b2]))


# ---------------------------------------------------------------------------
# Conv2d(k=4, s=2, p=1, bias=False) -> one matmul.
# Input x is already activated/normalized bf16 NHWC (padding after activation
# keeps zero padding exact).
# ---------------------------------------------------------------------------
def conv_down(x, w, emit_bn=False):
    N, H, W, Cin = x.shape
    Cout = w.shape[-1]
    Ho, Wo = H // 2, W // 2
    xp = jnp.pad(x, ((0, 0), (1, 1), (1, 1), (0, 0)))
    cols = [xp[:, dy:dy + 2 * Ho:2, dx:dx + 2 * Wo:2, :]
            for dy in range(4) for dx in range(4)]
    a = jnp.stack(cols, axis=3).reshape(N * Ho * Wo, 16 * Cin)   # bf16
    bm = w.reshape(16 * Cin, Cout)
    if emit_bn:
        y, s, q = fused_matmul(a, bm, emit_bn=True)
        return y.reshape(N, Ho, Wo, Cout), s[0], q[0], N * Ho * Wo
    y = fused_matmul(a, bm)
    return y.reshape(N, Ho, Wo, Cout)


# ---------------------------------------------------------------------------
# ConvTranspose2d(k=4, s=2, p=1) -> ONE lane-dense matmul.
# The 4 output parities (py, px) are merged into the lane dimension via a
# structural-zero dense weight B[9*Cin, 4*Cout] over the 3x3 union of the
# per-phase 2x2 taps.  Output columns are (py, px, cout).
# ---------------------------------------------------------------------------
def _build_dense_up_weight(w):
    kh, kw, Cin, Cout = w.shape
    bm = jnp.zeros((3, 3, Cin, 2, 2, Cout), jnp.float32)
    for py in range(2):
        for px in range(2):
            for ty in range(2):
                for tx in range(2):
                    bm = bm.at[ty + py, tx + px, :, py, px, :].set(
                        w[3 - py - 2 * ty, 3 - px - 2 * tx])
    return bm.reshape(9 * Cin, 4 * Cout)


def _deinterleave_phases(y, N, H, W, Cout):
    # [M, 4*Cout] (cols = (py, px, c)) -> [N, 2H, 2W, Cout]; adjacent-axis
    # transpose of tiny tensors, fuses in the jit'd glue.
    y = y.reshape(N, H, W, 2, 2, Cout).transpose(0, 1, 3, 2, 4, 5)
    return y.reshape(N, 2 * H, 2 * W, Cout)


def conv_up(x, w, bias=None, tanh=False, emit_bn=False):
    N, H, W, Cin = x.shape
    Cout = w.shape[-1]
    xp = jnp.pad(x, ((0, 0), (1, 1), (1, 1), (0, 0)))
    taps = [xp[:, u:u + H, v:v + W, :] for u in range(3) for v in range(3)]
    a = jnp.stack(taps, axis=3).reshape(N * H * W, 9 * Cin)     # bf16
    bm = _build_dense_up_weight(w)                              # const-folded
    if emit_bn:
        y, s, q = fused_matmul(a, bm, emit_bn=True)
        y = _deinterleave_phases(y, N, H, W, Cout)
        ch_sum = s.reshape(2, 2, Cout).sum((0, 1))
        ch_sq = q.reshape(2, 2, Cout).sum((0, 1))
        return y, ch_sum, ch_sq, 4 * N * H * W
    b4 = None if bias is None else jnp.tile(bias, 4)            # (py,px,c) order
    out_dtype = jnp.float32 if tanh else jnp.bfloat16
    y = fused_matmul(a, bm, bias=b4, tanh=tanh, out_dtype=out_dtype)
    return _deinterleave_phases(y, N, H, W, Cout)


# ---------------------------------------------------------------------------
# U-Net parameters (deterministic; mirrors the PyTorch __init__ structure)
# ---------------------------------------------------------------------------
def _make_block(key, nf, ni, input_c=None, submodule=None,
                dropout=False, innermost=False, outermost=False):
    if input_c is None:
        input_c = nf
    k0, k1 = jax.random.split(key)
    blk = {
        "outermost": outermost,
        "innermost": innermost,
        "dropout": dropout,
        "submodule": submodule,
        "down_w": 0.02 * jax.random.normal(k0, (4, 4, input_c, ni), jnp.float32),
    }
    if outermost:
        blk["up_w"] = 0.02 * jax.random.normal(k1, (4, 4, 2 * ni, nf), jnp.float32)
        blk["up_b"] = jnp.zeros((nf,), jnp.float32)
    elif innermost:
        blk["up_w"] = 0.02 * jax.random.normal(k1, (4, 4, ni, nf), jnp.float32)
        blk["up_gamma"] = jnp.ones((nf,), jnp.float32)
        blk["up_beta"] = jnp.zeros((nf,), jnp.float32)
    else:
        blk["dn_gamma"] = jnp.ones((ni,), jnp.float32)
        blk["dn_beta"] = jnp.zeros((ni,), jnp.float32)
        blk["up_w"] = 0.02 * jax.random.normal(k1, (4, 4, 2 * ni, nf), jnp.float32)
        blk["up_gamma"] = jnp.ones((nf,), jnp.float32)
        blk["up_beta"] = jnp.zeros((nf,), jnp.float32)
    return blk


def init_unet(key, input_c=1, output_c=2, n_down=5, num_filters=8):
    keys = jax.random.split(key, n_down + 1)
    ki = 0
    blk = _make_block(keys[ki], num_filters * 8, num_filters * 8, innermost=True)
    ki += 1
    for _ in range(n_down - 5):
        blk = _make_block(keys[ki], num_filters * 8, num_filters * 8,
                          submodule=blk, dropout=True)
        ki += 1
    out_filters = num_filters * 8
    for _ in range(3):
        blk = _make_block(keys[ki], out_filters // 2, out_filters, submodule=blk)
        ki += 1
        out_filters //= 2
    blk = _make_block(keys[ki], output_c, out_filters, input_c=input_c,
                      submodule=blk, outermost=True)
    return blk


# ---------------------------------------------------------------------------
# Forward pass (mirrors UnetBlock.forward / the Sequential layer ordering)
# ---------------------------------------------------------------------------
def block_forward(value, blk):
    if blk["outermost"]:
        # down = [downconv]; raw input, no activation, no norm.
        h = conv_down(value[0].astype(jnp.bfloat16), blk["down_w"])
        hv = (h, None, None)
    elif blk["innermost"]:
        # down = [downrelu, downconv]; activation applied pre-im2col.
        h = conv_down(apply_pending(value, "lrelu"), blk["down_w"])
        hv = (h, None, None)
    else:
        # down = [downrelu, downconv, downnorm]; BN stats fused in epilogue.
        h, s, q, cnt = conv_down(apply_pending(value, "lrelu"),
                                 blk["down_w"], emit_bn=True)
        sc, sh = finish_bn(s, q, cnt, blk["dn_gamma"], blk["dn_beta"])
        hv = (h, sc, sh)                                   # BN apply deferred

    if blk["submodule"] is not None:
        hv = block_forward(hv, blk["submodule"])

    u_in = apply_pending(hv, "relu")                       # uprelu, pre-im2col
    if blk["outermost"]:
        # up = [uprelu, upconv(+bias), Tanh], all in one kernel call.
        return conv_up(u_in, blk["up_w"], bias=blk["up_b"], tanh=True)

    u, s, q, cnt = conv_up(u_in, blk["up_w"], emit_bn=True)
    su, bu = finish_bn(s, q, cnt, blk["up_gamma"], blk["up_beta"])
    # TODO(synk): nn.Dropout(0.5) (training-mode randomness) omitted; no
    # dropout blocks are instantiated for the n_down=5 configuration here.
    return lazy_concat(value, (u, su, bu))                 # torch.cat dim=1


def unet_forward(x_nchw, params):
    x = jnp.transpose(x_nchw, (0, 2, 3, 1))                # NCHW -> NHWC
    y = block_forward((x, None, None), params)
    return jnp.transpose(y, (0, 3, 1, 2))                  # NHWC -> NCHW


# ---------------------------------------------------------------------------
if __name__ == "__main__":
    key = jax.random.PRNGKey(0)
    kp, kx = jax.random.split(key)

    # Unet(input_c=1, output_c=2, n_down=5, num_filters=8); spatial=32 is the
    # smallest size supporting 5 stride-2 halvings.
    params = init_unet(kp, input_c=1, output_c=2, n_down=5, num_filters=8)
    x = jax.random.normal(kx, (2, 1, 32, 32), jnp.float32)   # NCHW like torch

    fwd = jax.jit(lambda inp: unet_forward(inp, params))
    y = jax.block_until_ready(fwd(x))
    assert y.shape == (2, 2, 32, 32), y.shape
    assert bool(jnp.all(jnp.isfinite(y)))
    print("KERNEL_OK")
</pallas_src>

<mosaic_0001>
module attributes {stable_mosaic.version = 11 : i64} {
  func.func @_mm_plain_kernel(%arg0: i32, %arg1: memref<512x16xbf16, #tpu.memory_space<vmem>>, %arg2: memref<16x8xbf16, #tpu.memory_space<vmem>>, %arg3: memref<512x8xbf16, #tpu.memory_space<vmem>>) attributes {dimension_semantics = [#tpu.dimension_semantics<parallel>], iteration_bounds = array<i64: 1>, scalar_prefetch = 0 : i64, scratch_operands = 0 : i64, tpu.core_type = #tpu.core_type<tc>, window_params = [{transform_indices = @transform_0, window_bounds = array<i64: 512, 16>}, {pipeline_mode = #tpu.pipeline_mode<synchronous>, transform_indices = @transform_1, window_bounds = array<i64: 16, 8>}, {transform_indices = @transform_2, window_bounds = array<i64: 512, 8>}]} {
    %c0 = arith.constant 0 : index
    %c0_0 = arith.constant 0 : index
    %0 = vector.load %arg1[%c0, %c0_0] : memref<512x16xbf16, #tpu.memory_space<vmem>>, vector<512x16xbf16>
    %c0_1 = arith.constant 0 : index
    %c0_2 = arith.constant 0 : index
    %1 = vector.load %arg2[%c0_1, %c0_2] : memref<16x8xbf16, #tpu.memory_space<vmem>>, vector<16x8xbf16>
    %cst = arith.constant dense<0.000000e+00> : vector<512x8xf32>
    %2 = tpu.matmul %0, %1, %cst {dimension_numbers = #tpu.dot_dimension_numbers<[1], [0], [0], [1], [0, 0, 1, 1], [], []>} : vector<512x16xbf16>, vector<16x8xbf16>, vector<512x8xf32> -> vector<512x8xf32>
    %3 = arith.truncf %2 : vector<512x8xf32> to vector<512x8xbf16>
    %c0_3 = arith.constant 0 : index
    %c0_4 = arith.constant 0 : index
    %4 = vector.load %arg3[%c0_3, %c0_4] : memref<512x8xbf16, #tpu.memory_space<vmem>>, vector<512x8xbf16>
    tpu.vector_store %arg3[%c0_3, %c0_4], %3 {strides = array<i32>} : memref<512x8xbf16, #tpu.memory_space<vmem>>, vector<512x8xbf16>,
    return
  }
  func.func @transform_0(%arg0: i32) -> (i32, i32) {
    %c0_i32 = arith.constant 0 : i32
    %c0_i32_0 = arith.constant 0 : i32
    return %arg0, %c0_i32 : i32, i32
  }
  func.func @transform_1(%arg0: i32) -> (i32, i32) {
    %c0_i32 = arith.constant 0 : i32
    %c0_i32_0 = arith.constant 0 : i32
    %c0_i32_1 = arith.constant 0 : i32
    return %c0_i32, %c0_i32_0 : i32, i32
  }
  func.func @transform_2(%arg0: i32) -> (i32, i32) {
    %c0_i32 = arith.constant 0 : i32
    %c0_i32_0 = arith.constant 0 : i32
    return %arg0, %c0_i32 : i32, i32
  }
}

module attributes {stable_mosaic.version = 11 : i64} {
  func.func @_mm_bn_kernel(%arg0: i32, %arg1: memref<128x128xbf16, #tpu.memory_space<vmem>>, %arg2: memref<128x16xbf16, #tpu.memory_space<vmem>>, %arg3: memref<128x16xbf16, #tpu.memory_space<vmem>>, %arg4: memref<1x16xf32, #tpu.memory_space<vmem>>, %arg5: memref<1x16xf32, #tpu.memory_space<vmem>>) attributes {dimension_semantics = [#tpu.dimension_semantics<parallel>], iteration_bounds = array<i64: 1>, scalar_prefetch = 0 : i64, scratch_operands = 0 : i64, tpu.core_type = #tpu.core_type<tc>, window_params = [{transform_indices = @transform_0, window_bounds = array<i64: 128, 128>}, {pipeline_mode = #tpu.pipeline_mode<synchronous>, transform_indices = @transform_1, window_bounds = array<i64: 128, 16>}, {transform_indices = @transform_2, window_bounds = array<i64: 128, 16>}, {pipeline_mode = #tpu.pipeline_mode<synchronous>, transform_indices = @transform_3, window_bounds = array<i64: 1, 16>}, {pipeline_mode = #tpu.pipeline_mode<synchronous>, transform_indices = @transform_4, window_bounds = array<i64: 1, 16>}]} {
    %c0 = arith.constant 0 : index
    %c0_0 = arith.constant 0 : index
    %0 = vector.load %arg1[%c0, %c0_0] : memref<128x128xbf16, #tpu.memory_space<vmem>>, vector<128x128xbf16>
    %c0_1 = arith.constant 0 : index
    %c0_2 = arith.constant 0 : index
    %1 = vector.load %arg2[%c0_1, %c0_2] : memref<128x16xbf16, #tpu.memory_space<vmem>>, vector<128x16xbf16>
    %cst = arith.constant dense<0.000000e+00> : vector<128x16xf32>
    %2 = tpu.matmul %0, %1, %cst {dimension_numbers = #tpu.dot_dimension_numbers<[1], [0], [0], [1], [0, 0, 1, 1], [], []>} : vector<128x128xbf16>, vector<128x16xbf16>, vector<128x16xf32> -> vector<128x16xf32>
    %cst_3 = arith.constant dense<0.000000e+00> : vector<16xf32>
    %3 = vector.multi_reduction <add>, %2, %cst_3 [0] : vector<128x16xf32> to vector<16xf32>
    %4 = vector.shape_cast %3 : vector<16xf32> to vector<1x16xf32>
    %c0_4 = arith.constant 0 : index
    %c0_5 = arith.constant 0 : index
    %5 = vector.load %arg4[%c0_4, %c0_5] : memref<1x16xf32, #tpu.memory_space<vmem>>, vector<1x16xf32>
    tpu.vector_store %arg4[%c0_4, %c0_5], %4 {strides = array<i32>} : memref<1x16xf32, #tpu.memory_space<vmem>>, vector<1x16xf32>,
    %6 = arith.mulf %2, %2 : vector<128x16xf32>
    %cst_6 = arith.constant dense<0.000000e+00> : vector<16xf32>
    %7 = vector.multi_reduction <add>, %6, %cst_6 [0] : vector<128x16xf32> to vector<16xf32>
    %8 = vector.shape_cast %7 : vector<16xf32> to vector<1x16xf32>
    %c0_7 = arith.constant 0 : index
    %c0_8 = arith.constant 0 : index
    %9 = vector.load %arg5[%c0_7, %c0_8] : memref<1x16xf32, #tpu.memory_space<vmem>>, vector<1x16xf32>
    tpu.vector_store %arg5[%c0_7, %c0_8], %8 {strides = array<i32>} : memref<1x16xf32, #tpu.memory_space<vmem>>, vector<1x16xf32>,
    %10 = arith.truncf %2 : vector<128x16xf32> to vector<128x16xbf16>
    %c0_9 = arith.constant 0 : index
    %c0_10 = arith.constant 0 : index
    %11 = vector.load %arg3[%c0_9, %c0_10] : memref<128x16xbf16, #tpu.memory_space<vmem>>, vector<128x16xbf16>
    tpu.vector_store %arg3[%c0_9, %c0_10], %10 {strides = array<i32>} : memref<128x16xbf16, #tpu.memory_space<vmem>>, vector<128x16xbf16>,
    return
  }
  func.func @transform_0(%arg0: i32) -> (i32, i32) {
    %c0_i32 = arith.constant 0 : i32
    %c0_i32_0 = arith.constant 0 : i32
    return %arg0, %c0_i32 : i32, i32
  }
  func.func @transform_1(%arg0: i32) -> (i32, i32) {
    %c0_i32 = arith.constant 0 : i32
    %c0_i32_0 = arith.constant 0 : i32
    %c0_i32_1 = arith.constant 0 : i32
    return %c0_i32, %c0_i32_0 : i32, i32
  }
  func.func @transform_2(%arg0: i32) -> (i32, i32) {
    %c0_i32 = arith.constant 0 : i32
    %c0_i32_0 = arith.constant 0 : i32
    return %arg0, %c0_i32 : i32, i32
  }
  func.func @transform_3(%arg0: i32) -> (i32, i32) {
    %c0_i32 = arith.constant 0 : i32
    %c0_i32_0 = arith.constant 0 : i32
    %c0_i32_1 = arith.constant 0 : i32
    return %c0_i32, %c0_i32_0 : i32, i32
  }
  func.func @transform_4(%arg0: i32) -> (i32, i32) {
    %c0_i32 = arith.constant 0 : i32
    %c0_i32_0 = arith.constant 0 : i32
    %c0_i32_1 = arith.constant 0 : i32
    return %c0_i32, %c0_i32_0 : i32, i32
  }
}

module attributes {stable_mosaic.version = 11 : i64} {
  func.func @_mm_bn_kernel(%arg0: i32, %arg1: memref<32x256xbf16, #tpu.memory_space<vmem>>, %arg2: memref<256x32xbf16, #tpu.memory_space<vmem>>, %arg3: memref<32x32xbf16, #tpu.memory_space<vmem>>, %arg4: memref<1x32xf32, #tpu.memory_space<vmem>>, %arg5: memref<1x32xf32, #tpu.memory_space<vmem>>) attributes {dimension_semantics = [#tpu.dimension_semantics<parallel>], iteration_bounds = array<i64: 1>, scalar_prefetch = 0 : i64, scratch_operands = 0 : i64, tpu.core_type = #tpu.core_type<tc>, window_params = [{transform_indices = @transform_0, window_bounds = array<i64: 32, 256>}, {pipeline_mode = #tpu.pipeline_mode<synchronous>, transform_indices = @transform_1, window_bounds = array<i64: 256, 32>}, {transform_indices = @transform_2, window_bounds = array<i64: 32, 32>}, {pipeline_mode = #tpu.pipeline_mode<synchronous>, transform_indices = @transform_3, window_bounds = array<i64: 1, 32>}, {pipeline_mode = #tpu.pipeline_mode<synchronous>, transform_indices = @transform_4, window_bounds = array<i64: 1, 32>}]} {
    %c0 = arith.constant 0 : index
    %c0_0 = arith.constant 0 : index
    %0 = vector.load %arg1[%c0, %c0_0] : memref<32x256xbf16, #tpu.memory_space<vmem>>, vector<32x256xbf16>
    %c0_1 = arith.constant 0 : index
    %c0_2 = arith.constant 0 : index
    %1 = vector.load %arg2[%c0_1, %c0_2] : memref<256x32xbf16, #tpu.memory_space<vmem>>, vector<256x32xbf16>
    %cst = arith.constant dense<0.000000e+00> : vector<32x32xf32>
    %2 = tpu.matmul %0, %1, %cst {dimension_numbers = #tpu.dot_dimension_numbers<[1], [0], [0], [1], [0, 0, 1, 1], [], []>} : vector<32x256xbf16>, vector<256x32xbf16>, vector<32x32xf32> -> vector<32x32xf32>
    %cst_3 = arith.constant dense<0.000000e+00> : vector<32xf32>
    %3 = vector.multi_reduction <add>, %2, %cst_3 [0] : vector<32x32xf32> to vector<32xf32>
    %4 = vector.shape_cast %3 : vector<32xf32> to vector<1x32xf32>
    %c0_4 = arith.constant 0 : index
    %c0_5 = arith.constant 0 : index
    %5 = vector.load %arg4[%c0_4, %c0_5] : memref<1x32xf32, #tpu.memory_space<vmem>>, vector<1x32xf32>
    tpu.vector_store %arg4[%c0_4, %c0_5], %4 {strides = array<i32>} : memref<1x32xf32, #tpu.memory_space<vmem>>, vector<1x32xf32>,
    %6 = arith.mulf %2, %2 : vector<32x32xf32>
    %cst_6 = arith.constant dense<0.000000e+00> : vector<32xf32>
    %7 = vector.multi_reduction <add>, %6, %cst_6 [0] : vector<32x32xf32> to vector<32xf32>
    %8 = vector.shape_cast %7 : vector<32xf32> to vector<1x32xf32>
    %c0_7 = arith.constant 0 : index
    %c0_8 = arith.constant 0 : index
    %9 = vector.load %arg5[%c0_7, %c0_8] : memref<1x32xf32, #tpu.memory_space<vmem>>, vector<1x32xf32>
    tpu.vector_store %arg5[%c0_7, %c0_8], %8 {strides = array<i32>} : memref<1x32xf32, #tpu.memory_space<vmem>>, vector<1x32xf32>,
    %10 = arith.truncf %2 : vector<32x32xf32> to vector<32x32xbf16>
    %c0_9 = arith.constant 0 : index
    %c0_10 = arith.constant 0 : index
    %11 = vector.load %arg3[%c0_9, %c0_10] : memref<32x32xbf16, #tpu.memory_space<vmem>>, vector<32x32xbf16>
    tpu.vector_store %arg3[%c0_9, %c0_10], %10 {strides = array<i32>} : memref<32x32xbf16, #tpu.memory_space<vmem>>, vector<32x32xbf16>,
    return
  }
  func.func @transform_0(%arg0: i32) -> (i32, i32) {
    %c0_i32 = arith.constant 0 : i32
    %c0_i32_0 = arith.constant 0 : i32
    return %arg0, %c0_i32 : i32, i32
  }
  func.func @transform_1(%arg0: i32) -> (i32, i32) {
    %c0_i32 = arith.constant 0 : i32
    %c0_i32_0 = arith.constant 0 : i32
    %c0_i32_1 = arith.constant 0 : i32
    return %c0_i32, %c0_i32_0 : i32, i32
  }
  func.func @transform_2(%arg0: i32) -> (i32, i32) {
    %c0_i32 = arith.constant 0 : i32
    %c0_i32_0 = arith.constant 0 : i32
    return %arg0, %c0_i32 : i32, i32
  }
  func.func @transform_3(%arg0: i32) -> (i32, i32) {
    %c0_i32 = arith.constant 0 : i32
    %c0_i32_0 = arith.constant 0 : i32
    %c0_i32_1 = arith.constant 0 : i32
    return %c0_i32, %c0_i32_0 : i32, i32
  }
  func.func @transform_4(%arg0: i32) -> (i32, i32) {
    %c0_i32 = arith.constant 0 : i32
    %c0_i32_0 = arith.constant 0 : i32
    %c0_i32_1 = arith.constant 0 : i32
    return %c0_i32, %c0_i32_0 : i32, i32
  }
}

module attributes {stable_mosaic.version = 11 : i64} {
  func.func @_mm_bn_kernel(%arg0: i32, %arg1: memref<8x512xbf16, #tpu.memory_space<vmem>>, %arg2: memref<512x64xbf16, #tpu.memory_space<vmem>>, %arg3: memref<8x64xbf16, #tpu.memory_space<vmem>>, %arg4: memref<1x64xf32, #tpu.memory_space<vmem>>, %arg5: memref<1x64xf32, #tpu.memory_space<vmem>>) attributes {dimension_semantics = [#tpu.dimension_semantics<parallel>], iteration_bounds = array<i64: 1>, scalar_prefetch = 0 : i64, scratch_operands = 0 : i64, tpu.core_type = #tpu.core_type<tc>, window_params = [{transform_indices = @transform_0, window_bounds = array<i64: 8, 512>}, {pipeline_mode = #tpu.pipeline_mode<synchronous>, transform_indices = @transform_1, window_bounds = array<i64: 512, 64>}, {transform_indices = @transform_2, window_bounds = array<i64: 8, 64>}, {pipeline_mode = #tpu.pipeline_mode<synchronous>, transform_indices = @transform_3, window_bounds = array<i64: 1, 64>}, {pipeline_mode = #tpu.pipeline_mode<synchronous>, transform_indices = @transform_4, window_bounds = array<i64: 1, 64>}]} {
    %c0 = arith.constant 0 : index
    %c0_0 = arith.constant 0 : index
    %0 = vector.load %arg1[%c0, %c0_0] : memref<8x512xbf16, #tpu.memory_space<vmem>>, vector<8x512xbf16>
    %c0_1 = arith.constant 0 : index
    %c0_2 = arith.constant 0 : index
    %1 = vector.load %arg2[%c0_1, %c0_2] : memref<512x64xbf16, #tpu.memory_space<vmem>>, vector<512x64xbf16>
    %cst = arith.constant dense<0.000000e+00> : vector<8x64xf32>
    %2 = tpu.matmul %0, %1, %cst {dimension_numbers = #tpu.dot_dimension_numbers<[1], [0], [0], [1], [0, 0, 1, 1], [], []>} : vector<8x512xbf16>, vector<512x64xbf16>, vector<8x64xf32> -> vector<8x64xf32>
    %cst_3 = arith.constant dense<0.000000e+00> : vector<64xf32>
    %3 = vector.multi_reduction <add>, %2, %cst_3 [0] : vector<8x64xf32> to vector<64xf32>
    %4 = vector.shape_cast %3 : vector<64xf32> to vector<1x64xf32>
    %c0_4 = arith.constant 0 : index
    %c0_5 = arith.constant 0 : index
    %5 = vector.load %arg4[%c0_4, %c0_5] : memref<1x64xf32, #tpu.memory_space<vmem>>, vector<1x64xf32>
    tpu.vector_store %arg4[%c0_4, %c0_5], %4 {strides = array<i32>} : memref<1x64xf32, #tpu.memory_space<vmem>>, vector<1x64xf32>,
    %6 = arith.mulf %2, %2 : vector<8x64xf32>
    %cst_6 = arith.constant dense<0.000000e+00> : vector<64xf32>
    %7 = vector.multi_reduction <add>, %6, %cst_6 [0] : vector<8x64xf32> to vector<64xf32>
    %8 = vector.shape_cast %7 : vector<64xf32> to vector<1x64xf32>
    %c0_7 = arith.constant 0 : index
    %c0_8 = arith.constant 0 : index
    %9 = vector.load %arg5[%c0_7, %c0_8] : memref<1x64xf32, #tpu.memory_space<vmem>>, vector<1x64xf32>
    tpu.vector_store %arg5[%c0_7, %c0_8], %8 {strides = array<i32>} : memref<1x64xf32, #tpu.memory_space<vmem>>, vector<1x64xf32>,
    %10 = arith.truncf %2 : vector<8x64xf32> to vector<8x64xbf16>
    %c0_9 = arith.constant 0 : index
    %c0_10 = arith.constant 0 : index
    %11 = vector.load %arg3[%c0_9, %c0_10] : memref<8x64xbf16, #tpu.memory_space<vmem>>, vector<8x64xbf16>
    tpu.vector_store %arg3[%c0_9, %c0_10], %10 {strides = array<i32>} : memref<8x64xbf16, #tpu.memory_space<vmem>>, vector<8x64xbf16>,
    return
  }
  func.func @transform_0(%arg0: i32) -> (i32, i32) {
    %c0_i32 = arith.constant 0 : i32
    %c0_i32_0 = arith.constant 0 : i32
    return %arg0, %c0_i32 : i32, i32
  }
  func.func @transform_1(%arg0: i32) -> (i32, i32) {
    %c0_i32 = arith.constant 0 : i32
    %c0_i32_0 = arith.constant 0 : i32
    %c0_i32_1 = arith.constant 0 : i32
    return %c0_i32, %c0_i32_0 : i32, i32
  }
  func.func @transform_2(%arg0: i32) -> (i32, i32) {
    %c0_i32 = arith.constant 0 : i32
    %c0_i32_0 = arith.constant 0 : i32
    return %arg0, %c0_i32 : i32, i32
  }
  func.func @transform_3(%arg0: i32) -> (i32, i32) {
    %c0_i32 = arith.constant 0 : i32
    %c0_i32_0 = arith.constant 0 : i32
    %c0_i32_1 = arith.constant 0 : i32
    return %c0_i32, %c0_i32_0 : i32, i32
  }
  func.func @transform_4(%arg0: i32) -> (i32, i32) {
    %c0_i32 = arith.constant 0 : i32
    %c0_i32_0 = arith.constant 0 : i32
    %c0_i32_1 = arith.constant 0 : i32
    return %c0_i32, %c0_i32_0 : i32, i32
  }
}

module attributes {stable_mosaic.version = 11 : i64} {
  func.func @_mm_plain_kernel(%arg0: i32, %arg1: memref<2x1024xbf16, #tpu.memory_space<vmem>>, %arg2: memref<1024x64xbf16, #tpu.memory_space<vmem>>, %arg3: memref<2x64xbf16, #tpu.memory_space<vmem>>) attributes {dimension_semantics = [#tpu.dimension_semantics<parallel>], iteration_bounds = array<i64: 1>, scalar_prefetch = 0 : i64, scratch_operands = 0 : i64, tpu.core_type = #tpu.core_type<tc>, window_params = [{transform_indices = @transform_0, window_bounds = array<i64: 2, 1024>}, {pipeline_mode = #tpu.pipeline_mode<synchronous>, transform_indices = @transform_1, window_bounds = array<i64: 1024, 64>}, {transform_indices = @transform_2, window_bounds = array<i64: 2, 64>}]} {
    %c0 = arith.constant 0 : index
    %c0_0 = arith.constant 0 : index
    %0 = vector.load %arg1[%c0, %c0_0] : memref<2x1024xbf16, #tpu.memory_space<vmem>>, vector<2x1024xbf16>
    %c0_1 = arith.constant 0 : index
    %c0_2 = arith.constant 0 : index
    %1 = vector.load %arg2[%c0_1, %c0_2] : memref<1024x64xbf16, #tpu.memory_space<vmem>>, vector<1024x64xbf16>
    %cst = arith.constant dense<0.000000e+00> : vector<2x64xf32>
    %2 = tpu.matmul %0, %1, %cst {dimension_numbers = #tpu.dot_dimension_numbers<[1], [0], [0], [1], [0, 0, 1, 1], [], []>} : vector<2x1024xbf16>, vector<1024x64xbf16>, vector<2x64xf32> -> vector<2x64xf32>
    %3 = arith.truncf %2 : vector<2x64xf32> to vector<2x64xbf16>
    %c0_3 = arith.constant 0 : index
    %c0_4 = arith.constant 0 : index
    %4 = vector.load %arg3[%c0_3, %c0_4] : memref<2x64xbf16, #tpu.memory_space<vmem>>, vector<2x64xbf16>
    tpu.vector_store %arg3[%c0_3, %c0_4], %3 {strides = array<i32>} : memref<2x64xbf16, #tpu.memory_space<vmem>>, vector<2x64xbf16>,
    return
  }
  func.func @transform_0(%arg0: i32) -> (i32, i32) {
    %c0_i32 = arith.constant 0 : i32
    %c0_i32_0 = arith.constant 0 : i32
    return %arg0, %c0_i32 : i32, i32
  }
  func.func @transform_1(%arg0: i32) -> (i32, i32) {
    %c0_i32 = arith.constant 0 : i32
    %c0_i32_0 = arith.constant 0 : i32
    %c0_i32_1 = arith.constant 0 : i32
    return %c0_i32, %c0_i32_0 : i32, i32
  }
  func.func @transform_2(%arg0: i32) -> (i32, i32) {
    %c0_i32 = arith.constant 0 : i32
    %c0_i32_0 = arith.constant 0 : i32
    return %arg0, %c0_i32 : i32, i32
  }
}

module attributes {stable_mosaic.version = 11 : i64} {
  func.func @_mm_bn_kernel(%arg0: i32, %arg1: memref<2x576xbf16, #tpu.memory_space<vmem>>, %arg2: memref<576x256xbf16, #tpu.memory_space<vmem>>, %arg3: memref<2x256xbf16, #tpu.memory_space<vmem>>, %arg4: memref<1x256xf32, #tpu.memory_space<vmem>>, %arg5: memref<1x256xf32, #tpu.memory_space<vmem>>) attributes {dimension_semantics = [#tpu.dimension_semantics<parallel>], iteration_bounds = array<i64: 1>, scalar_prefetch = 0 : i64, scratch_operands = 0 : i64, tpu.core_type = #tpu.core_type<tc>, window_params = [{transform_indices = @transform_0, window_bounds = array<i64: 2, 576>}, {pipeline_mode = #tpu.pipeline_mode<synchronous>, transform_indices = @transform_1, window_bounds = array<i64: 576, 256>}, {transform_indices = @transform_2, window_bounds = array<i64: 2, 256>}, {pipeline_mode = #tpu.pipeline_mode<synchronous>, transform_indices = @transform_3, window_bounds = array<i64: 1, 256>}, {pipeline_mode = #tpu.pipeline_mode<synchronous>, transform_indices = @transform_4, window_bounds = array<i64: 1, 256>}]} {
    %c0 = arith.constant 0 : index
    %c0_0 = arith.constant 0 : index
    %0 = vector.load %arg1[%c0, %c0_0] : memref<2x576xbf16, #tpu.memory_space<vmem>>, vector<2x576xbf16>
    %c0_1 = arith.constant 0 : index
    %c0_2 = arith.constant 0 : index
    %1 = vector.load %arg2[%c0_1, %c0_2] : memref<576x256xbf16, #tpu.memory_space<vmem>>, vector<576x256xbf16>
    %cst = arith.constant dense<0.000000e+00> : vector<2x256xf32>
    %2 = tpu.matmul %0, %1, %cst {dimension_numbers = #tpu.dot_dimension_numbers<[1], [0], [0], [1], [0, 0, 1, 1], [], []>} : vector<2x576xbf16>, vector<576x256xbf16>, vector<2x256xf32> -> vector<2x256xf32>
    %cst_3 = arith.constant dense<0.000000e+00> : vector<256xf32>
    %3 = vector.multi_reduction <add>, %2, %cst_3 [0] : vector<2x256xf32> to vector<256xf32>
    %4 = vector.shape_cast %3 : vector<256xf32> to vector<1x256xf32>
    %c0_4 = arith.constant 0 : index
    %c0_5 = arith.constant 0 : index
    %5 = vector.load %arg4[%c0_4, %c0_5] : memref<1x256xf32, #tpu.memory_space<vmem>>, vector<1x256xf32>
    tpu.vector_store %arg4[%c0_4, %c0_5], %4 {strides = array<i32>} : memref<1x256xf32, #tpu.memory_space<vmem>>, vector<1x256xf32>,
    %6 = arith.mulf %2, %2 : vector<2x256xf32>
    %cst_6 = arith.constant dense<0.000000e+00> : vector<256xf32>
    %7 = vector.multi_reduction <add>, %6, %cst_6 [0] : vector<2x256xf32> to vector<256xf32>
    %8 = vector.shape_cast %7 : vector<256xf32> to vector<1x256xf32>
    %c0_7 = arith.constant 0 : index
    %c0_8 = arith.constant 0 : index
    %9 = vector.load %arg5[%c0_7, %c0_8] : memref<1x256xf32, #tpu.memory_space<vmem>>, vector<1x256xf32>
    tpu.vector_store %arg5[%c0_7, %c0_8], %8 {strides = array<i32>} : memref<1x256xf32, #tpu.memory_space<vmem>>, vector<1x256xf32>,
    %10 = arith.truncf %2 : vector<2x256xf32> to vector<2x256xbf16>
    %c0_9 = arith.constant 0 : index
    %c0_10 = arith.constant 0 : index
    %11 = vector.load %arg3[%c0_9, %c0_10] : memref<2x256xbf16, #tpu.memory_space<vmem>>, vector<2x256xbf16>
    tpu.vector_store %arg3[%c0_9, %c0_10], %10 {strides = array<i32>} : memref<2x256xbf16, #tpu.memory_space<vmem>>, vector<2x256xbf16>,
    return
  }
  func.func @transform_0(%arg0: i32) -> (i32, i32) {
    %c0_i32 = arith.constant 0 : i32
    %c0_i32_0 = arith.constant 0 : i32
    return %arg0, %c0_i32 : i32, i32
  }
  func.func @transform_1(%arg0: i32) -> (i32, i32) {
    %c0_i32 = arith.constant 0 : i32
    %c0_i32_0 = arith.constant 0 : i32
    %c0_i32_1 = arith.constant 0 : i32
    return %c0_i32, %c0_i32_0 : i32, i32
  }
  func.func @transform_2(%arg0: i32) -> (i32, i32) {
    %c0_i32 = arith.constant 0 : i32
    %c0_i32_0 = arith.constant 0 : i32
    return %arg0, %c0_i32 : i32, i32
  }
  func.func @transform_3(%arg0: i32) -> (i32, i32) {
    %c0_i32 = arith.constant 0 : i32
    %c0_i32_0 = arith.constant 0 : i32
    %c0_i32_1 = arith.constant 0 : i32
    return %c0_i32, %c0_i32_0 : i32, i32
  }
  func.func @transform_4(%arg0: i32) -> (i32, i32) {
    %c0_i32 = arith.constant 0 : i32
    %c0_i32_0 = arith.constant 0 : i32
    %c0_i32_1 = arith.constant 0 : i32
    return %c0_i32, %c0_i32_0 : i32, i32
  }
}

module attributes {stable_mosaic.version = 11 : i64} {
  func.func @_mm_bn_kernel(%arg0: i32, %arg1: memref<8x1152xbf16, #tpu.memory_space<vmem>>, %arg2: memref<1152x128xbf16, #tpu.memory_space<vmem>>, %arg3: memref<8x128xbf16, #tpu.memory_space<vmem>>, %arg4: memref<1x128xf32, #tpu.memory_space<vmem>>, %arg5: memref<1x128xf32, #tpu.memory_space<vmem>>) attributes {dimension_semantics = [#tpu.dimension_semantics<parallel>], iteration_bounds = array<i64: 1>, scalar_prefetch = 0 : i64, scratch_operands = 0 : i64, tpu.core_type = #tpu.core_type<tc>, window_params = [{transform_indices = @transform_0, window_bounds = array<i64: 8, 1152>}, {pipeline_mode = #tpu.pipeline_mode<synchronous>, transform_indices = @transform_1, window_bounds = array<i64: 1152, 128>}, {transform_indices = @transform_2, window_bounds = array<i64: 8, 128>}, {pipeline_mode = #tpu.pipeline_mode<synchronous>, transform_indices = @transform_3, window_bounds = array<i64: 1, 128>}, {pipeline_mode = #tpu.pipeline_mode<synchronous>, transform_indices = @transform_4, window_bounds = array<i64: 1, 128>}]} {
    %c0 = arith.constant 0 : index
    %c0_0 = arith.constant 0 : index
    %0 = vector.load %arg1[%c0, %c0_0] : memref<8x1152xbf16, #tpu.memory_space<vmem>>, vector<8x1152xbf16>
    %c0_1 = arith.constant 0 : index
    %c0_2 = arith.constant 0 : index
    %1 = vector.load %arg2[%c0_1, %c0_2] : memref<1152x128xbf16, #tpu.memory_space<vmem>>, vector<1152x128xbf16>
    %cst = arith.constant dense<0.000000e+00> : vector<8x128xf32>
    %2 = tpu.matmul %0, %1, %cst {dimension_numbers = #tpu.dot_dimension_numbers<[1], [0], [0], [1], [0, 0, 1, 1], [], []>} : vector<8x1152xbf16>, vector<1152x128xbf16>, vector<8x128xf32> -> vector<8x128xf32>
    %cst_3 = arith.constant dense<0.000000e+00> : vector<128xf32>
    %3 = vector.multi_reduction <add>, %2, %cst_3 [0] : vector<8x128xf32> to vector<128xf32>
    %4 = vector.shape_cast %3 : vector<128xf32> to vector<1x128xf32>
    %c0_4 = arith.constant 0 : index
    %c0_5 = arith.constant 0 : index
    %5 = vector.load %arg4[%c0_4, %c0_5] : memref<1x128xf32, #tpu.memory_space<vmem>>, vector<1x128xf32>
    tpu.vector_store %arg4[%c0_4, %c0_5], %4 {strides = array<i32>} : memref<1x128xf32, #tpu.memory_space<vmem>>, vector<1x128xf32>,
    %6 = arith.mulf %2, %2 : vector<8x128xf32>
    %cst_6 = arith.constant dense<0.000000e+00> : vector<128xf32>
    %7 = vector.multi_reduction <add>, %6, %cst_6 [0] : vector<8x128xf32> to vector<128xf32>
    %8 = vector.shape_cast %7 : vector<128xf32> to vector<1x128xf32>
    %c0_7 = arith.constant 0 : index
    %c0_8 = arith.constant 0 : index
    %9 = vector.load %arg5[%c0_7, %c0_8] : memref<1x128xf32, #tpu.memory_space<vmem>>, vector<1x128xf32>
    tpu.vector_store %arg5[%c0_7, %c0_8], %8 {strides = array<i32>} : memref<1x128xf32, #tpu.memory_space<vmem>>, vector<1x128xf32>,
    %10 = arith.truncf %2 : vector<8x128xf32> to vector<8x128xbf16>
    %c0_9 = arith.constant 0 : index
    %c0_10 = arith.constant 0 : index
    %11 = vector.load %arg3[%c0_9, %c0_10] : memref<8x128xbf16, #tpu.memory_space<vmem>>, vector<8x128xbf16>
    tpu.vector_store %arg3[%c0_9, %c0_10], %10 {strides = array<i32>} : memref<8x128xbf16, #tpu.memory_space<vmem>>, vector<8x128xbf16>,
    return
  }
  func.func @transform_0(%arg0: i32) -> (i32, i32) {
    %c0_i32 = arith.constant 0 : i32
    %c0_i32_0 = arith.constant 0 : i32
    return %arg0, %c0_i32 : i32, i32
  }
  func.func @transform_1(%arg0: i32) -> (i32, i32) {
    %c0_i32 = arith.constant 0 : i32
    %c0_i32_0 = arith.constant 0 : i32
    %c0_i32_1 = arith.constant 0 : i32
    return %c0_i32, %c0_i32_0 : i32, i32
  }
  func.func @transform_2(%arg0: i32) -> (i32, i32) {
    %c0_i32 = arith.constant 0 : i32
    %c0_i32_0 = arith.constant 0 : i32
    return %arg0, %c0_i32 : i32, i32
  }
  func.func @transform_3(%arg0: i32) -> (i32, i32) {
    %c0_i32 = arith.constant 0 : i32
    %c0_i32_0 = arith.constant 0 : i32
    %c0_i32_1 = arith.constant 0 : i32
    return %c0_i32, %c0_i32_0 : i32, i32
  }
  func.func @transform_4(%arg0: i32) -> (i32, i32) {
    %c0_i32 = arith.constant 0 : i32
    %c0_i32_0 = arith.constant 0 : i32
    %c0_i32_1 = arith.constant 0 : i32
    return %c0_i32, %c0_i32_0 : i32, i32
  }
}

module attributes {stable_mosaic.version = 11 : i64} {
  func.func @_mm_bn_kernel(%arg0: i32, %arg1: memref<32x576xbf16, #tpu.memory_space<vmem>>, %arg2: memref<576x64xbf16, #tpu.memory_space<vmem>>, %arg3: memref<32x64xbf16, #tpu.memory_space<vmem>>, %arg4: memref<1x64xf32, #tpu.memory_space<vmem>>, %arg5: memref<1x64xf32, #tpu.memory_space<vmem>>) attributes {dimension_semantics = [#tpu.dimension_semantics<parallel>], iteration_bounds = array<i64: 1>, scalar_prefetch = 0 : i64, scratch_operands = 0 : i64, tpu.core_type = #tpu.core_type<tc>, window_params = [{transform_indices = @transform_0, window_bounds = array<i64: 32, 576>}, {pipeline_mode = #tpu.pipeline_mode<synchronous>, transform_indices = @transform_1, window_bounds = array<i64: 576, 64>}, {transform_indices = @transform_2, window_bounds = array<i64: 32, 64>}, {pipeline_mode = #tpu.pipeline_mode<synchronous>, transform_indices = @transform_3, window_bounds = array<i64: 1, 64>}, {pipeline_mode = #tpu.pipeline_mode<synchronous>, transform_indices = @transform_4, window_bounds = array<i64: 1, 64>}]} {
    %c0 = arith.constant 0 : index
    %c0_0 = arith.constant 0 : index
    %0 = vector.load %arg1[%c0, %c0_0] : memref<32x576xbf16, #tpu.memory_space<vmem>>, vector<32x576xbf16>
    %c0_1 = arith.constant 0 : index
    %c0_2 = arith.constant 0 : index
    %1 = vector.load %arg2[%c0_1, %c0_2] : memref<576x64xbf16, #tpu.memory_space<vmem>>, vector<576x64xbf16>
    %cst = arith.constant dense<0.000000e+00> : vector<32x64xf32>
    %2 = tpu.matmul %0, %1, %cst {dimension_numbers = #tpu.dot_dimension_numbers<[1], [0], [0], [1], [0, 0, 1, 1], [], []>} : vector<32x576xbf16>, vector<576x64xbf16>, vector<32x64xf32> -> vector<32x64xf32>
    %cst_3 = arith.constant dense<0.000000e+00> : vector<64xf32>
    %3 = vector.multi_reduction <add>, %2, %cst_3 [0] : vector<32x64xf32> to vector<64xf32>
    %4 = vector.shape_cast %3 : vector<64xf32> to vector<1x64xf32>
    %c0_4 = arith.constant 0 : index
    %c0_5 = arith.constant 0 : index
    %5 = vector.load %arg4[%c0_4, %c0_5] : memref<1x64xf32, #tpu.memory_space<vmem>>, vector<1x64xf32>
    tpu.vector_store %arg4[%c0_4, %c0_5], %4 {strides = array<i32>} : memref<1x64xf32, #tpu.memory_space<vmem>>, vector<1x64xf32>,
    %6 = arith.mulf %2, %2 : vector<32x64xf32>
    %cst_6 = arith.constant dense<0.000000e+00> : vector<64xf32>
    %7 = vector.multi_reduction <add>, %6, %cst_6 [0] : vector<32x64xf32> to vector<64xf32>
    %8 = vector.shape_cast %7 : vector<64xf32> to vector<1x64xf32>
    %c0_7 = arith.constant 0 : index
    %c0_8 = arith.constant 0 : index
    %9 = vector.load %arg5[%c0_7, %c0_8] : memref<1x64xf32, #tpu.memory_space<vmem>>, vector<1x64xf32>
    tpu.vector_store %arg5[%c0_7, %c0_8], %8 {strides = array<i32>} : memref<1x64xf32, #tpu.memory_space<vmem>>, vector<1x64xf32>,
    %10 = arith.truncf %2 : vector<32x64xf32> to vector<32x64xbf16>
    %c0_9 = arith.constant 0 : index
    %c0_10 = arith.constant 0 : index
    %11 = vector.load %arg3[%c0_9, %c0_10] : memref<32x64xbf16, #tpu.memory_space<vmem>>, vector<32x64xbf16>
    tpu.vector_store %arg3[%c0_9, %c0_10], %10 {strides = array<i32>} : memref<32x64xbf16, #tpu.memory_space<vmem>>, vector<32x64xbf16>,
    return
  }
  func.func @transform_0(%arg0: i32) -> (i32, i32) {
    %c0_i32 = arith.constant 0 : i32
    %c0_i32_0 = arith.constant 0 : i32
    return %arg0, %c0_i32 : i32, i32
  }
  func.func @transform_1(%arg0: i32) -> (i32, i32) {
    %c0_i32 = arith.constant 0 : i32
    %c0_i32_0 = arith.constant 0 : i32
    %c0_i32_1 = arith.constant 0 : i32
    return %c0_i32, %c0_i32_0 : i32, i32
  }
  func.func @transform_2(%arg0: i32) -> (i32, i32) {
    %c0_i32 = arith.constant 0 : i32
    %c0_i32_0 = arith.constant 0 : i32
    return %arg0, %c0_i32 : i32, i32
  }
  func.func @transform_3(%arg0: i32) -> (i32, i32) {
    %c0_i32 = arith.constant 0 : i32
    %c0_i32_0 = arith.constant 0 : i32
    %c0_i32_1 = arith.constant 0 : i32
    return %c0_i32, %c0_i32_0 : i32, i32
  }
  func.func @transform_4(%arg0: i32) -> (i32, i32) {
    %c0_i32 = arith.constant 0 : i32
    %c0_i32_0 = arith.constant 0 : i32
    %c0_i32_1 = arith.constant 0 : i32
    return %c0_i32, %c0_i32_0 : i32, i32
  }
}

module attributes {stable_mosaic.version = 11 : i64} {
  func.func @_mm_bn_kernel(%arg0: i32, %arg1: memref<128x288xbf16, #tpu.memory_space<vmem>>, %arg2: memref<288x32xbf16, #tpu.memory_space<vmem>>, %arg3: memref<128x32xbf16, #tpu.memory_space<vmem>>, %arg4: memref<1x32xf32, #tpu.memory_space<vmem>>, %arg5: memref<1x32xf32, #tpu.memory_space<vmem>>) attributes {dimension_semantics = [#tpu.dimension_semantics<parallel>], iteration_bounds = array<i64: 1>, scalar_prefetch = 0 : i64, scratch_operands = 0 : i64, tpu.core_type = #tpu.core_type<tc>, window_params = [{transform_indices = @transform_0, window_bounds = array<i64: 128, 288>}, {pipeline_mode = #tpu.pipeline_mode<synchronous>, transform_indices = @transform_1, window_bounds = array<i64: 288, 32>}, {transform_indices = @transform_2, window_bounds = array<i64: 128, 32>}, {pipeline_mode = #tpu.pipeline_mode<synchronous>, transform_indices = @transform_3, window_bounds = array<i64: 1, 32>}, {pipeline_mode = #tpu.pipeline_mode<synchronous>, transform_indices = @transform_4, window_bounds = array<i64: 1, 32>}]} {
    %c0 = arith.constant 0 : index
    %c0_0 = arith.constant 0 : index
    %0 = vector.load %arg1[%c0, %c0_0] : memref<128x288xbf16, #tpu.memory_space<vmem>>, vector<128x288xbf16>
    %c0_1 = arith.constant 0 : index
    %c0_2 = arith.constant 0 : index
    %1 = vector.load %arg2[%c0_1, %c0_2] : memref<288x32xbf16, #tpu.memory_space<vmem>>, vector<288x32xbf16>
    %cst = arith.constant dense<0.000000e+00> : vector<128x32xf32>
    %2 = tpu.matmul %0, %1, %cst {dimension_numbers = #tpu.dot_dimension_numbers<[1], [0], [0], [1], [0, 0, 1, 1], [], []>} : vector<128x288xbf16>, vector<288x32xbf16>, vector<128x32xf32> -> vector<128x32xf32>
    %cst_3 = arith.constant dense<0.000000e+00> : vector<32xf32>
    %3 = vector.multi_reduction <add>, %2, %cst_3 [0] : vector<128x32xf32> to vector<32xf32>
    %4 = vector.shape_cast %3 : vector<32xf32> to vector<1x32xf32>
    %c0_4 = arith.constant 0 : index
    %c0_5 = arith.constant 0 : index
    %5 = vector.load %arg4[%c0_4, %c0_5] : memref<1x32xf32, #tpu.memory_space<vmem>>, vector<1x32xf32>
    tpu.vector_store %arg4[%c0_4, %c0_5], %4 {strides = array<i32>} : memref<1x32xf32, #tpu.memory_space<vmem>>, vector<1x32xf32>,
    %6 = arith.mulf %2, %2 : vector<128x32xf32>
    %cst_6 = arith.constant dense<0.000000e+00> : vector<32xf32>
    %7 = vector.multi_reduction <add>, %6, %cst_6 [0] : vector<128x32xf32> to vector<32xf32>
    %8 = vector.shape_cast %7 : vector<32xf32> to vector<1x32xf32>
    %c0_7 = arith.constant 0 : index
    %c0_8 = arith.constant 0 : index
    %9 = vector.load %arg5[%c0_7, %c0_8] : memref<1x32xf32, #tpu.memory_space<vmem>>, vector<1x32xf32>
    tpu.vector_store %arg5[%c0_7, %c0_8], %8 {strides = array<i32>} : memref<1x32xf32, #tpu.memory_space<vmem>>, vector<1x32xf32>,
    %10 = arith.truncf %2 : vector<128x32xf32> to vector<128x32xbf16>
    %c0_9 = arith.constant 0 : index
    %c0_10 = arith.constant 0 : index
    %11 = vector.load %arg3[%c0_9, %c0_10] : memref<128x32xbf16, #tpu.memory_space<vmem>>, vector<128x32xbf16>
    tpu.vector_store %arg3[%c0_9, %c0_10], %10 {strides = array<i32>} : memref<128x32xbf16, #tpu.memory_space<vmem>>, vector<128x32xbf16>,
    return
  }
  func.func @transform_0(%arg0: i32) -> (i32, i32) {
    %c0_i32 = arith.constant 0 : i32
    %c0_i32_0 = arith.constant 0 : i32
    return %arg0, %c0_i32 : i32, i32
  }
  func.func @transform_1(%arg0: i32) -> (i32, i32) {
    %c0_i32 = arith.constant 0 : i32
    %c0_i32_0 = arith.constant 0 : i32
    %c0_i32_1 = arith.constant 0 : i32
    return %c0_i32, %c0_i32_0 : i32, i32
  }
  func.func @transform_2(%arg0: i32) -> (i32, i32) {
    %c0_i32 = arith.constant 0 : i32
    %c0_i32_0 = arith.constant 0 : i32
    return %arg0, %c0_i32 : i32, i32
  }
  func.func @transform_3(%arg0: i32) -> (i32, i32) {
    %c0_i32 = arith.constant 0 : i32
    %c0_i32_0 = arith.constant 0 : i32
    %c0_i32_1 = arith.constant 0 : i32
    return %c0_i32, %c0_i32_0 : i32, i32
  }
  func.func @transform_4(%arg0: i32) -> (i32, i32) {
    %c0_i32 = arith.constant 0 : i32
    %c0_i32_0 = arith.constant 0 : i32
    %c0_i32_1 = arith.constant 0 : i32
    return %c0_i32, %c0_i32_0 : i32, i32
  }
}

module attributes {stable_mosaic.version = 11 : i64} {
  func.func @_mm_bias_tanh_kernel(%arg0: i32, %arg1: memref<512x144xbf16, #tpu.memory_space<vmem>>, %arg2: memref<144x8xbf16, #tpu.memory_space<vmem>>, %arg3: memref<1x8xf32, #tpu.memory_space<vmem>>, %arg4: memref<512x8xf32, #tpu.memory_space<vmem>>) attributes {dimension_semantics = [#tpu.dimension_semantics<parallel>], iteration_bounds = array<i64: 1>, scalar_prefetch = 0 : i64, scratch_operands = 0 : i64, tpu.core_type = #tpu.core_type<tc>, window_params = [{transform_indices = @transform_0, window_bounds = array<i64: 512, 144>}, {pipeline_mode = #tpu.pipeline_mode<synchronous>, transform_indices = @transform_1, window_bounds = array<i64: 144, 8>}, {pipeline_mode = #tpu.pipeline_mode<synchronous>, transform_indices = @transform_2, window_bounds = array<i64: 1, 8>}, {transform_indices = @transform_3, window_bounds = array<i64: 512, 8>}]} {
    %c0 = arith.constant 0 : index
    %c0_0 = arith.constant 0 : index
    %0 = vector.load %arg1[%c0, %c0_0] : memref<512x144xbf16, #tpu.memory_space<vmem>>, vector<512x144xbf16>
    %c0_1 = arith.constant 0 : index
    %c0_2 = arith.constant 0 : index
    %1 = vector.load %arg2[%c0_1, %c0_2] : memref<144x8xbf16, #tpu.memory_space<vmem>>, vector<144x8xbf16>
    %cst = arith.constant dense<0.000000e+00> : vector<512x8xf32>
    %2 = tpu.matmul %0, %1, %cst {dimension_numbers = #tpu.dot_dimension_numbers<[1], [0], [0], [1], [0, 0, 1, 1], [], []>} : vector<512x144xbf16>, vector<144x8xbf16>, vector<512x8xf32> -> vector<512x8xf32>
    %c0_3 = arith.constant 0 : index
    %c0_4 = arith.constant 0 : index
    %3 = vector.load %arg3[%c0_3, %c0_4] : memref<1x8xf32, #tpu.memory_space<vmem>>, vector<1x8xf32>
    %4 = vector.broadcast %3 : vector<1x8xf32> to vector<512x8xf32>
    %5 = arith.addf %2, %4 : vector<512x8xf32>
    %6 = math.tanh %5 : vector<512x8xf32>
    %c0_5 = arith.constant 0 : index
    %c0_6 = arith.constant 0 : index
    %7 = vector.load %arg4[%c0_5, %c0_6] : memref<512x8xf32, #tpu.memory_space<vmem>>, vector<512x8xf32>
    tpu.vector_store %arg4[%c0_5, %c0_6], %6 {strides = array<i32>} : memref<512x8xf32, #tpu.memory_space<vmem>>, vector<512x8xf32>,
    return
  }
  func.func @transform_0(%arg0: i32) -> (i32, i32) {
    %c0_i32 = arith.constant 0 : i32
    %c0_i32_0 = arith.constant 0 : i32
    return %arg0, %c0_i32 : i32, i32
  }
  func.func @transform_1(%arg0: i32) -> (i32, i32) {
    %c0_i32 = arith.constant 0 : i32
    %c0_i32_0 = arith.constant 0 : i32
    %c0_i32_1 = arith.constant 0 : i32
    return %c0_i32, %c0_i32_0 : i32, i32
  }
  func.func @transform_2(%arg0: i32) -> (i32, i32) {
    %c0_i32 = arith.constant 0 : i32
    %c0_i32_0 = arith.constant 0 : i32
    %c0_i32_1 = arith.constant 0 : i32
    return %c0_i32, %c0_i32_0 : i32, i32
  }
  func.func @transform_3(%arg0: i32) -> (i32, i32) {
    %c0_i32 = arith.constant 0 : i32
    %c0_i32_0 = arith.constant 0 : i32
    return %arg0, %c0_i32 : i32, i32
  }
}

</mosaic_0001>

<bundles_post_ra>
// kernel: _lambda_.10
= control target key start
LH: loop header
LB: loop body
LE: loop exit
PB: predicated region body
PF: predicated region fallthrough
CT: control target
= control target key end

     0   :  { %7 = vsyncpa [#allocation3], 0  ;;  %s889_s12 = smov [#allocation2]   ;;  %s890_s14 = smov 64   ;;  %s1294_s0 = inlined_call_operand.vmem [shape: bf16[512,16], index: 0, kind: input, shape index: {}]   ;;  %s1295_s1 = inlined_call_operand.hbm [shape: bf16[16,8], index: 1, kind: input, shape index: {}]   ;;  %s1296_s2 = inlined_call_operand.vmem [shape: bf16[512,8], index: 2, kind: output, shape index: {}]  }
   0x1   :  { %s14_s11 = sshll.u32 %s1295_s1, 4  ;;  %s16_s13 = sshll.u32 %s889_s12, 4  ;;  %s15_s11 = int_to_ptr.hbm [resolvable:$true] %s14_s11  ;;  %s17_s13 = int_to_ptr.vmem [resolvable:$true] %s16_s13 }
   0x2   :  { %s891_s15 = smov 4  }
   0x3   :  { %22 = dma.hbm_to_vmem [thread:$0]  %s15_s11, 128, %s17_s13, [#allocation3], %s890_s14, %s890_s14, %s891_s15  }
   0x4   :  { %887 = dma.done.wait [#allocation3], 128  }
   0x5   :  { %888 = vsyncadd [#allocation3], 4294967168  ;;  %v856_v0 = vld [vmem:[#allocation2] sm:$0xff]  ;;  %vm260_vm0 = vcmask 130048   ;;  %v825_v5 = vld [vmem:[%s1294_s0 + $0x8] sm:$0xff]  ;;  %vm590_vm1 = vcmask 60416  }
   0x6   :  { %v824_v1 = vld [vmem:[%s1294_s0] sm:$0xff]  ;;  %364 = vmatpush.bf16.msra.mxu0 %v856_v0  ;;  %857 = vmatpush.bf16.msra.mxu1 %v856_v0  ;;  %v833_v6 = vld [vmem:[%s1294_s0 + $0x48] sm:$0xff]  ;;  %v826_v9 = vld [vmem:[%s1294_s0 + $0x10] sm:$0xff] }
   0x7   :  { %v832_v2 = vld [vmem:[%s1294_s0 + $0x40] sm:$0xff]  ;;  %858 = vmatpush.bf16.msra.mxu2 %v856_v0  ;;  %859 = vmatpush.bf16.msra.mxu3 %v856_v0  ;;  %v841_v7 = vld [vmem:[%s1294_s0 + $0x88] sm:$0xff]  ;;  %v834_v10 = vld [vmem:[%s1294_s0 + $0x50] sm:$0xff] }
   0x8   :  { %v840_v3 = vld [vmem:[%s1294_s0 + $0x80] sm:$0xff]  ;;  %v849_v8 = vld [vmem:[%s1294_s0 + $0xc8] sm:$0xff]  ;;  %v842_v11 = vld [vmem:[%s1294_s0 + $0x90] sm:$0xff] }
   0x9   :  { %v848_v4 = vld [vmem:[%s1294_s0 + $0xc0] sm:$0xff]  ;;  %792 = vmatmul.msk.bf16.vlgmr.msra.gmra.mxu0 %vm260_vm0, %v824_v1  ;;  %800 = vmatmul.msk.bf16.vlgmr.msra.gmra.mxu1 %vm260_vm0, %v832_v2  ;;  %v850_v12 = vld [vmem:[%s1294_s0 + $0xd0] sm:$0xff]  ;;  %v827_v13 = vld [vmem:[%s1294_s0 + $0x18] sm:$0xff] }
   0xa   :  { %808 = vmatmul.msk.bf16.vlgmr.msra.gmra.mxu2 %vm260_vm0, %v840_v3  ;;  %816 = vmatmul.msk.bf16.vlgmr.msra.gmra.mxu3 %vm260_vm0, %v848_v4  ;;  %v835_v14 = vld [vmem:[%s1294_s0 + $0x58] sm:$0xff]  ;;  %v828_v17 = vld [vmem:[%s1294_s0 + $0x20] sm:$0xff]  ;;  %v829_v21 = vld [vmem:[%s1294_s0 + $0x28] sm:$0xff] }
   0xb   :  { %v843_v15 = vld [vmem:[%s1294_s0 + $0x98] sm:$0xff]  ;;  %v836_v18 = vld [vmem:[%s1294_s0 + $0x60] sm:$0xff]  ;;  %v837_v22 = vld [vmem:[%s1294_s0 + $0x68] sm:$0xff] }
   0xc   :  { %v851_v16 = vld [vmem:[%s1294_s0 + $0xd8] sm:$0xff]  ;;  %v844_v19 = vld [vmem:[%s1294_s0 + $0xa0] sm:$0xff]  ;;  %v845_v23 = vld [vmem:[%s1294_s0 + $0xa8] sm:$0xff] }
   0xd   :  { %v852_v20 = vld [vmem:[%s1294_s0 + $0xe0] sm:$0xff]  ;;  %v853_v24 = vld [vmem:[%s1294_s0 + $0xe8] sm:$0xff]  ;;  %v830_v25 = vld [vmem:[%s1294_s0 + $0x30] sm:$0xff] }
   0xe   :  { %v838_v26 = vld [vmem:[%s1294_s0 + $0x70] sm:$0xff]  ;;  %v831_v29 = vld [vmem:[%s1294_s0 + $0x38] sm:$0xff] }
   0xf   :  { %v846_v27 = vld [vmem:[%s1294_s0 + $0xb0] sm:$0xff]  ;;  %v839_v30 = vld [vmem:[%s1294_s0 + $0x78] sm:$0xff] }
  0x10   :  { %v854_v28 = vld [vmem:[%s1294_s0 + $0xf0] sm:$0xff]  ;;  %v847_v31 = vld [vmem:[%s1294_s0 + $0xb8] sm:$0xff] }
  0x11   :  { %v855_v32 = vld [vmem:[%s1294_s0 + $0xf8] sm:$0xff] }
  0x19   :  { %793 = vmatmul.msk.bf16.gmra.mxu0 %vm260_vm0, %v825_v5  ;;  %801 = vmatmul.msk.bf16.gmra.mxu1 %vm260_vm0, %v833_v6 }
  0x1a   :  { %809 = vmatmul.msk.bf16.gmra.mxu2 %vm260_vm0, %v841_v7  ;;  %817 = vmatmul.msk.bf16.gmra.mxu3 %vm260_vm0, %v849_v8 }
  0x29   :  { %794 = vmatmul.msk.bf16.gmra.mxu0 %vm260_vm0, %v826_v9  ;;  %802 = vmatmul.msk.bf16.gmra.mxu1 %vm260_vm0, %v834_v10 }
  0x2a   :  { %810 = vmatmul.msk.bf16.gmra.mxu2 %vm260_vm0, %v842_v11  ;;  %818 = vmatmul.msk.bf16.gmra.mxu3 %vm260_vm0, %v850_v12 }
  0x39   :  { %795 = vmatmul.msk.bf16.gmra.mxu0 %vm260_vm0, %v827_v13  ;;  %803 = vmatmul.msk.bf16.gmra.mxu1 %vm260_vm0, %v835_v14 }
  0x3a   :  { %811 = vmatmul.msk.bf16.gmra.mxu2 %vm260_vm0, %v843_v15  ;;  %819 = vmatmul.msk.bf16.gmra.mxu3 %vm260_vm0, %v851_v16 }
  0x49   :  { %796 = vmatmul.msk.bf16.gmra.mxu0 %vm260_vm0, %v828_v17  ;;  %804 = vmatmul.msk.bf16.gmra.mxu1 %vm260_vm0, %v836_v18 }
  0x4a   :  { %812 = vmatmul.msk.bf16.gmra.mxu2 %vm260_vm0, %v844_v19  ;;  %820 = vmatmul.msk.bf16.gmra.mxu3 %vm260_vm0, %v852_v20 }
  0x59   :  { %797 = vmatmul.msk.bf16.gmra.mxu0 %vm260_vm0, %v829_v21  ;;  %805 = vmatmul.msk.bf16.gmra.mxu1 %vm260_vm0, %v837_v22 }
  0x5a   :  { %813 = vmatmul.msk.bf16.gmra.mxu2 %vm260_vm0, %v845_v23  ;;  %821 = vmatmul.msk.bf16.gmra.mxu3 %vm260_vm0, %v853_v24 }
  0x69   :  { %798 = vmatmul.msk.bf16.gmra.mxu0 %vm260_vm0, %v830_v25  ;;  %806 = vmatmul.msk.bf16.gmra.mxu1 %vm260_vm0, %v838_v26 }
  0x6a   :  { %814 = vmatmul.msk.bf16.gmra.mxu2 %vm260_vm0, %v846_v27  ;;  %822 = vmatmul.msk.bf16.gmra.mxu3 %vm260_vm0, %v854_v28 }
  0x79   :  { %799 = vmatmul.msk.bf16.gmra.mxu0 %vm260_vm0, %v831_v29  ;;  %807 = vmatmul.msk.bf16.gmra.mxu1 %vm260_vm0, %v839_v30 }
  0x7a   :  { %815 = vmatmul.msk.bf16.gmra.mxu2 %vm260_vm0, %v847_v31  ;;  %823 = vmatmul.msk.bf16.gmra.mxu3 %vm260_vm0, %v855_v32 }
  0x86   :  { %v366_v33 = vpop.f32.mrf.mxu0  ;;  %v406_v34 = vpop.f32.mrf.mxu1 }
  0x87   :  { %v526_v35 = vpack.c.bf16 %v366_v33, %v366_v33  ;;  %v542_v36 = vpack.c.bf16 %v406_v34, %v406_v34 }
  0x89   :  { %591 = vst.msk [vmem:[%s1296_s2] sm:$0xf] %vm590_vm1, %v526_v35 }
  0x8a   :  { %607 = vst.msk [vmem:[%s1296_s2 + $0x40] sm:$0xf] %vm590_vm1, %v542_v36 }
  0x8d   :  { %v446_v37 = vpop.f32.mrf.mxu2  ;;  %v486_v38 = vpop.f32.mrf.mxu3 }
  0x8e   :  { %v558_v39 = vpack.c.bf16 %v446_v37, %v446_v37  ;;  %v574_v40 = vpack.c.bf16 %v486_v38, %v486_v38  ;;  %v368_v41 = vpop.f32.mrf.mxu0  ;;  %v408_v42 = vpop.f32.mrf.mxu1 }
  0x8f   :  { %v527_v43 = vpack.c.bf16 %v368_v41, %v368_v41  ;;  %v543_v44 = vpack.c.bf16 %v408_v42, %v408_v42 }
  0x90   :  { %623 = vst.msk [vmem:[%s1296_s2 + $0x80] sm:$0xf] %vm590_vm1, %v558_v39 }
  0x91   :  { %639 = vst.msk [vmem:[%s1296_s2 + $0xc0] sm:$0xf] %vm590_vm1, %v574_v40 }
  0x92   :  { %592 = vst.msk [vmem:[%s1296_s2 + $0x4] sm:$0xf] %vm590_vm1, %v527_v43 }
  0x93   :  { %608 = vst.msk [vmem:[%s1296_s2 + $0x44] sm:$0xf] %vm590_vm1, %v543_v44 }
  0x95   :  { %v448_v45 = vpop.f32.mrf.mxu2  ;;  %v488_v46 = vpop.f32.mrf.mxu3 }
  0x96   :  { %v559_v47 = vpack.c.bf16 %v448_v45, %v448_v45  ;;  %v575_v48 = vpack.c.bf16 %v488_v46, %v488_v46  ;;  %v371_v49 = vpop.f32.mrf.mxu0  ;;  %v411_v50 = vpop.f32.mrf.mxu1 }
  0x97   :  { %v528_v51 = vpack.c.bf16 %v371_v49, %v371_v49  ;;  %v544_v52 = vpack.c.bf16 %v411_v50, %v411_v50 }
  0x98   :  { %624 = vst.msk [vmem:[%s1296_s2 + $0x84] sm:$0xf] %vm590_vm1, %v559_v47 }
  0x99   :  { %640 = vst.msk [vmem:[%s1296_s2 + $0xc4] sm:$0xf] %vm590_vm1, %v575_v48 }
  0x9a   :  { %593 = vst.msk [vmem:[%s1296_s2 + $0x8] sm:$0xf] %vm590_vm1, %v528_v51 }
  0x9b   :  { %609 = vst.msk [vmem:[%s1296_s2 + $0x48] sm:$0xf] %vm590_vm1, %v544_v52 }
  0x9d   :  { %v451_v53 = vpop.f32.mrf.mxu2  ;;  %v491_v54 = vpop.f32.mrf.mxu3 }
  0x9e   :  { %v560_v55 = vpack.c.bf16 %v451_v53, %v451_v53  ;;  %v576_v56 = vpack.c.bf16 %v491_v54, %v491_v54  ;;  %v373_v57 = vpop.f32.mrf.mxu0  ;;  %v413_v58 = vpop.f32.mrf.mxu1 }
  0x9f   :  { %v529_v59 = vpack.c.bf16 %v373_v57, %v373_v57  ;;  %v545_v60 = vpack.c.bf16 %v413_v58, %v413_v58 }
  0xa0   :  { %625 = vst.msk [vmem:[%s1296_s2 + $0x88] sm:$0xf] %vm590_vm1, %v560_v55 }
  0xa1   :  { %641 = vst.msk [vmem:[%s1296_s2 + $0xc8] sm:$0xf] %vm590_vm1, %v576_v56 }
  0xa2   :  { %594 = vst.msk [vmem:[%s1296_s2 + $0xc] sm:$0xf] %vm590_vm1, %v529_v59 }
  0xa3   :  { %610 = vst.msk [vmem:[%s1296_s2 + $0x4c] sm:$0xf] %vm590_vm1, %v545_v60 }
  0xa5   :  { %v453_v61 = vpop.f32.mrf.mxu2  ;;  %v493_v62 = vpop.f32.mrf.mxu3 }
  0xa6   :  { %v561_v63 = vpack.c.bf16 %v453_v61, %v453_v61  ;;  %v577_v0 = vpack.c.bf16 %v493_v62, %v493_v62  ;;  %v376_v1 = vpop.f32.mrf.mxu0  ;;  %v416_v2 = vpop.f32.mrf.mxu1 }
  0xa7   :  { %v530_v3 = vpack.c.bf16 %v376_v1, %v376_v1  ;;  %v546_v4 = vpack.c.bf16 %v416_v2, %v416_v2 }
  0xa8   :  { %626 = vst.msk [vmem:[%s1296_s2 + $0x8c] sm:$0xf] %vm590_vm1, %v561_v63 }
  0xa9   :  { %642 = vst.msk [vmem:[%s1296_s2 + $0xcc] sm:$0xf] %vm590_vm1, %v577_v0 }
  0xaa   :  { %595 = vst.msk [vmem:[%s1296_s2 + $0x10] sm:$0xf] %vm590_vm1, %v530_v3 }
  0xab   :  { %611 = vst.msk [vmem:[%s1296_s2 + $0x50] sm:$0xf] %vm590_vm1, %v546_v4 }
  0xad   :  { %v456_v5 = vpop.f32.mrf.mxu2  ;;  %v496_v6 = vpop.f32.mrf.mxu3 }
  0xae   :  { %v562_v7 = vpack.c.bf16 %v456_v5, %v456_v5  ;;  %v578_v8 = vpack.c.bf16 %v496_v6, %v496_v6  ;;  %v378_v9 = vpop.f32.mrf.mxu0  ;;  %v418_v10 = vpop.f32.mrf.mxu1 }
  0xaf   :  { %v531_v11 = vpack.c.bf16 %v378_v9, %v378_v9  ;;  %v547_v12 = vpack.c.bf16 %v418_v10, %v418_v10 }
  0xb0   :  { %627 = vst.msk [vmem:[%s1296_s2 + $0x90] sm:$0xf] %vm590_vm1, %v562_v7 }
  0xb1   :  { %643 = vst.msk [vmem:[%s1296_s2 + $0xd0] sm:$0xf] %vm590_vm1, %v578_v8 }
  0xb2   :  { %596 = vst.msk [vmem:[%s1296_s2 + $0x14] sm:$0xf] %vm590_vm1, %v531_v11 }
  0xb3   :  { %612 = vst.msk [vmem:[%s1296_s2 + $0x54] sm:$0xf] %vm590_vm1, %v547_v12 }
  0xb5   :  { %v458_v13 = vpop.f32.mrf.mxu2  ;;  %v498_v14 = vpop.f32.mrf.mxu3 }
  0xb6   :  { %v563_v15 = vpack.c.bf16 %v458_v13, %v458_v13  ;;  %v579_v16 = vpack.c.bf16 %v498_v14, %v498_v14  ;;  %v381_v17 = vpop.f32.mrf.mxu0  ;;  %v421_v18 = vpop.f32.mrf.mxu1 }
  0xb7   :  { %v532_v19 = vpack.c.bf16 %v381_v17, %v381_v17  ;;  %v548_v20 = vpack.c.bf16 %v421_v18, %v421_v18 }
  0xb8   :  { %628 = vst.msk [vmem:[%s1296_s2 + $0x94] sm:$0xf] %vm590_vm1, %v563_v15 }
  0xb9   :  { %644 = vst.msk [vmem:[%s1296_s2 + $0xd4] sm:$0xf] %vm590_vm1, %v579_v16 }
  0xba   :  { %597 = vst.msk [vmem:[%s1296_s2 + $0x18] sm:$0xf] %vm590_vm1, %v532_v19 }
  0xbb   :  { %613 = vst.msk [vmem:[%s1296_s2 + $0x58] sm:$0xf] %vm590_vm1, %v548_v20 }
  0xbd   :  { %v461_v21 = vpop.f32.mrf.mxu2  ;;  %v501_v22 = vpop.f32.mrf.mxu3 }
  0xbe   :  { %v564_v23 = vpack.c.bf16 %v461_v21, %v461_v21  ;;  %v580_v24 = vpack.c.bf16 %v501_v22, %v501_v22  ;;  %v383_v25 = vpop.f32.mrf.mxu0  ;;  %v423_v26 = vpop.f32.mrf.mxu1 }
  0xbf   :  { %v533_v27 = vpack.c.bf16 %v383_v25, %v383_v25  ;;  %v549_v28 = vpack.c.bf16 %v423_v26, %v423_v26 }
  0xc0   :  { %629 = vst.msk [vmem:[%s1296_s2 + $0x98] sm:$0xf] %vm590_vm1, %v564_v23 }
  0xc1   :  { %645 = vst.msk [vmem:[%s1296_s2 + $0xd8] sm:$0xf] %vm590_vm1, %v580_v24 }
  0xc2   :  { %598 = vst.msk [vmem:[%s1296_s2 + $0x1c] sm:$0xf] %vm590_vm1, %v533_v27 }
  0xc3   :  { %614 = vst.msk [vmem:[%s1296_s2 + $0x5c] sm:$0xf] %vm590_vm1, %v549_v28 }
  0xc5   :  { %v463_v29 = vpop.f32.mrf.mxu2  ;;  %v503_v30 = vpop.f32.mrf.mxu3 }
  0xc6   :  { %v565_v31 = vpack.c.bf16 %v463_v29, %v463_v29  ;;  %v581_v32 = vpack.c.bf16 %v503_v30, %v503_v30  ;;  %v386_v33 = vpop.f32.mrf.mxu0  ;;  %v426_v34 = vpop.f32.mrf.mxu1 }
  0xc7   :  { %v534_v35 = vpack.c.bf16 %v386_v33, %v386_v33  ;;  %v550_v36 = vpack.c.bf16 %v426_v34, %v426_v34 }
  0xc8   :  { %630 = vst.msk [vmem:[%s1296_s2 + $0x9c] sm:$0xf] %vm590_vm1, %v565_v31 }
  0xc9   :  { %646 = vst.msk [vmem:[%s1296_s2 + $0xdc] sm:$0xf] %vm590_vm1, %v581_v32 }
  0xca   :  { %599 = vst.msk [vmem:[%s1296_s2 + $0x20] sm:$0xf] %vm590_vm1, %v534_v35 }
  0xcb   :  { %615 = vst.msk [vmem:[%s1296_s2 + $0x60] sm:$0xf] %vm590_vm1, %v550_v36 }
  0xcd   :  { %v466_v37 = vpop.f32.mrf.mxu2  ;;  %v506_v38 = vpop.f32.mrf.mxu3 }
  0xce   :  { %v566_v39 = vpack.c.bf16 %v466_v37, %v466_v37  ;;  %v582_v40 = vpack.c.bf16 %v506_v38, %v506_v38  ;;  %v388_v41 = vpop.f32.mrf.mxu0  ;;  %v428_v42 = vpop.f32.mrf.mxu1 }
  0xcf   :  { %v535_v43 = vpack.c.bf16 %v388_v41, %v388_v41  ;;  %v551_v44 = vpack.c.bf16 %v428_v42, %v428_v42 }
  0xd0   :  { %631 = vst.msk [vmem:[%s1296_s2 + $0xa0] sm:$0xf] %vm590_vm1, %v566_v39 }
  0xd1   :  { %647 = vst.msk [vmem:[%s1296_s2 + $0xe0] sm:$0xf] %vm590_vm1, %v582_v40 }
  0xd2   :  { %600 = vst.msk [vmem:[%s1296_s2 + $0x24] sm:$0xf] %vm590_vm1, %v535_v43 }
  0xd3   :  { %616 = vst.msk [vmem:[%s1296_s2 + $0x64] sm:$0xf] %vm590_vm1, %v551_v44 }
  0xd5   :  { %v468_v45 = vpop.f32.mrf.mxu2  ;;  %v508_v46 = vpop.f32.mrf.mxu3 }
  0xd6   :  { %v567_v47 = vpack.c.bf16 %v468_v45, %v468_v45  ;;  %v583_v48 = vpack.c.bf16 %v508_v46, %v508_v46  ;;  %v391_v49 = vpop.f32.mrf.mxu0  ;;  %v431_v50 = vpop.f32.mrf.mxu1 }
  0xd7   :  { %v536_v51 = vpack.c.bf16 %v391_v49, %v391_v49  ;;  %v552_v52 = vpack.c.bf16 %v431_v50, %v431_v50 }
  0xd8   :  { %632 = vst.msk [vmem:[%s1296_s2 + $0xa4] sm:$0xf] %vm590_vm1, %v567_v47 }
  0xd9   :  { %648 = vst.msk [vmem:[%s1296_s2 + $0xe4] sm:$0xf] %vm590_vm1, %v583_v48 }
  0xda   :  { %601 = vst.msk [vmem:[%s1296_s2 + $0x28] sm:$0xf] %vm590_vm1, %v536_v51 }
  0xdb   :  { %617 = vst.msk [vmem:[%s1296_s2 + $0x68] sm:$0xf] %vm590_vm1, %v552_v52 }
  0xdd   :  { %v471_v53 = vpop.f32.mrf.mxu2  ;;  %v511_v54 = vpop.f32.mrf.mxu3 }
  0xde   :  { %v568_v55 = vpack.c.bf16 %v471_v53, %v471_v53  ;;  %v584_v56 = vpack.c.bf16 %v511_v54, %v511_v54  ;;  %v393_v57 = vpop.f32.mrf.mxu0  ;;  %v433_v58 = vpop.f32.mrf.mxu1 }
  0xdf   :  { %v537_v59 = vpack.c.bf16 %v393_v57, %v393_v57  ;;  %v553_v60 = vpack.c.bf16 %v433_v58, %v433_v58 }
  0xe0   :  { %633 = vst.msk [vmem:[%s1296_s2 + $0xa8] sm:$0xf] %vm590_vm1, %v568_v55 }
  0xe1   :  { %649 = vst.msk [vmem:[%s1296_s2 + $0xe8] sm:$0xf] %vm590_vm1, %v584_v56 }
  0xe2   :  { %602 = vst.msk [vmem:[%s1296_s2 + $0x2c] sm:$0xf] %vm590_vm1, %v537_v59 }
  0xe3   :  { %618 = vst.msk [vmem:[%s1296_s2 + $0x6c] sm:$0xf] %vm590_vm1, %v553_v60 }
  0xe5   :  { %v473_v61 = vpop.f32.mrf.mxu2  ;;  %v513_v62 = vpop.f32.mrf.mxu3 }
  0xe6   :  { %v569_v63 = vpack.c.bf16 %v473_v61, %v473_v61  ;;  %v585_v0 = vpack.c.bf16 %v513_v62, %v513_v62  ;;  %v396_v1 = vpop.f32.mrf.mxu0  ;;  %v436_v2 = vpop.f32.mrf.mxu1 }
  0xe7   :  { %v538_v3 = vpack.c.bf16 %v396_v1, %v396_v1  ;;  %v554_v4 = vpack.c.bf16 %v436_v2, %v436_v2 }
  0xe8   :  { %634 = vst.msk [vmem:[%s1296_s2 + $0xac] sm:$0xf] %vm590_vm1, %v569_v63 }
  0xe9   :  { %650 = vst.msk [vmem:[%s1296_s2 + $0xec] sm:$0xf] %vm590_vm1, %v585_v0 }
  0xea   :  { %603 = vst.msk [vmem:[%s1296_s2 + $0x30] sm:$0xf] %vm590_vm1, %v538_v3 }
  0xeb   :  { %619 = vst.msk [vmem:[%s1296_s2 + $0x70] sm:$0xf] %vm590_vm1, %v554_v4 }
  0xed   :  { %v476_v5 = vpop.f32.mrf.mxu2  ;;  %v516_v6 = vpop.f32.mrf.mxu3 }
  0xee   :  { %v570_v7 = vpack.c.bf16 %v476_v5, %v476_v5  ;;  %v586_v8 = vpack.c.bf16 %v516_v6, %v516_v6  ;;  %v398_v9 = vpop.f32.mrf.mxu0  ;;  %v438_v10 = vpop.f32.mrf.mxu1 }
  0xef   :  { %v539_v11 = vpack.c.bf16 %v398_v9, %v398_v9  ;;  %v555_v12 = vpack.c.bf16 %v438_v10, %v438_v10 }
  0xf0   :  { %635 = vst.msk [vmem:[%s1296_s2 + $0xb0] sm:$0xf] %vm590_vm1, %v570_v7 }
  0xf1   :  { %651 = vst.msk [vmem:[%s1296_s2 + $0xf0] sm:$0xf] %vm590_vm1, %v586_v8 }
  0xf2   :  { %604 = vst.msk [vmem:[%s1296_s2 + $0x34] sm:$0xf] %vm590_vm1, %v539_v11 }
  0xf3   :  { %620 = vst.msk [vmem:[%s1296_s2 + $0x74] sm:$0xf] %vm590_vm1, %v555_v12 }
  0xf5   :  { %v478_v13 = vpop.f32.mrf.mxu2  ;;  %v518_v14 = vpop.f32.mrf.mxu3 }
  0xf6   :  { %v571_v15 = vpack.c.bf16 %v478_v13, %v478_v13  ;;  %v587_v16 = vpack.c.bf16 %v518_v14, %v518_v14  ;;  %v401_v17 = vpop.f32.mrf.mxu0  ;;  %v441_v18 = vpop.f32.mrf.mxu1 }
  0xf7   :  { %v540_v19 = vpack.c.bf16 %v401_v17, %v401_v17  ;;  %v556_v20 = vpack.c.bf16 %v441_v18, %v441_v18 }
  0xf8   :  { %636 = vst.msk [vmem:[%s1296_s2 + $0xb4] sm:$0xf] %vm590_vm1, %v571_v15 }
  0xf9   :  { %652 = vst.msk [vmem:[%s1296_s2 + $0xf4] sm:$0xf] %vm590_vm1, %v587_v16 }
  0xfa   :  { %605 = vst.msk [vmem:[%s1296_s2 + $0x38] sm:$0xf] %vm590_vm1, %v540_v19 }
  0xfb   :  { %621 = vst.msk [vmem:[%s1296_s2 + $0x78] sm:$0xf] %vm590_vm1, %v556_v20 }
  0xfd   :  { %v481_v21 = vpop.f32.mrf.mxu2  ;;  %v521_v22 = vpop.f32.mrf.mxu3 }
  0xfe   :  { %v572_v23 = vpack.c.bf16 %v481_v21, %v481_v21  ;;  %v588_v24 = vpack.c.bf16 %v521_v22, %v521_v22  ;;  %v403_v25 = vpop.f32.mrf.mxu0  ;;  %v443_v26 = vpop.f32.mrf.mxu1 }
  0xff   :  { %v541_v27 = vpack.c.bf16 %v403_v25, %v403_v25  ;;  %v557_v28 = vpack.c.bf16 %v443_v26, %v443_v26 }
 0x100   :  { %637 = vst.msk [vmem:[%s1296_s2 + $0xb8] sm:$0xf] %vm590_vm1, %v572_v23 }
 0x101   :  { %653 = vst.msk [vmem:[%s1296_s2 + $0xf8] sm:$0xf] %vm590_vm1, %v588_v24 }
 0x102   :  { %606 = vst.msk [vmem:[%s1296_s2 + $0x3c] sm:$0xf] %vm590_vm1, %v541_v27 }
 0x103   :  { %622 = vst.msk [vmem:[%s1296_s2 + $0x7c] sm:$0xf] %vm590_vm1, %v557_v28 }
 0x105   :  { %v483_v29 = vpop.f32.mrf.mxu2  ;;  %v523_v30 = vpop.f32.mrf.mxu3 }
 0x106   :  { %v573_v31 = vpack.c.bf16 %v483_v29, %v483_v29  ;;  %v589_v32 = vpack.c.bf16 %v523_v30, %v523_v30 }
 0x108   :  { %638 = vst.msk [vmem:[%s1296_s2 + $0xbc] sm:$0xf] %vm590_vm1, %v573_v31 }
 0x109   :  { %654 = vst.msk [vmem:[%s1296_s2 + $0xfc] sm:$0xf] %vm590_vm1, %v589_v32 }
 0x10a   :  { %659 = vsyncpa [#allocation3], 1 }

// kernel: _lambda_.11
= control target key start
LH: loop header
LB: loop body
LE: loop exit
PB: predicated region body
PF: predicated region fallthrough
CT: control target
= control target key end

     0   :  { %vm301_vm0 = vcmask 125952   ;;  %vm191_vm1 = vcmask 130048   ;;  %vm229_vm2 = vcmask 122880   ;;  %s644_s1 = inlined_call_operand.vmem [shape: bf16[128,16], index: 1, kind: input, shape index: {}]   ;;  %s645_s0 = inlined_call_operand.vmem [shape: bf16[128,128], index: 0, kind: input, shape index: {}]   ;;  %s646_s2 = inlined_call_operand.vmem [shape: bf16[128,16], index: 2, kind: output, shape index: {0}]   ;;  %s647_s3 = inlined_call_operand.vmem [shape: f32[1,16], index: 3, kind: output, shape index: {1}]   ;;  %s648_s4 = inlined_call_operand.vmem [shape: f32[1,16], index: 4, kind: output, shape index: {2}]  }
   0x1   :  { %v409_v0 = vld [vmem:[%s644_s1 + $0x38] sm:$0xff]  ;;  %v408_v1 = vld [vmem:[%s644_s1 + $0x30] sm:$0xff]  ;;  %v407_v2 = vld [vmem:[%s644_s1 + $0x28] sm:$0xff] }
   0x2   :  { %142 = vmatpush.bf16.msra.mxu0 %v409_v0  ;;  %410 = vmatpush.bf16.msra.mxu1 %v409_v0  ;;  %v406_v3 = vld [vmem:[%s644_s1 + $0x20] sm:$0xff]  ;;  %v405_v4 = vld [vmem:[%s644_s1 + $0x18] sm:$0xff]  ;;  %v404_v5 = vld [vmem:[%s644_s1 + $0x10] sm:$0xff] }
   0x3   :  { %411 = vmatpush.bf16.msra.mxu2 %v409_v0  ;;  %412 = vmatpush.bf16.msra.mxu3 %v409_v0  ;;  %v403_v6 = vld [vmem:[%s644_s1 + $0x8] sm:$0xff]  ;;  %v402_v7 = vld [vmem:[%s644_s1] sm:$0xff]  ;;  %v396_v9 = vld [vmem:[%s645_s0 + $0x10] sm:$0xff] }
   0x4   :  { %v394_v8 = vld [vmem:[%s645_s0] sm:$0xff]  ;;  %v400_v11 = vld [vmem:[%s645_s0 + $0x30] sm:$0xff]  ;;  %v395_v12 = vld [vmem:[%s645_s0 + $0x8] sm:$0xff] }
   0x5   :  { %v398_v10 = vld [vmem:[%s645_s0 + $0x20] sm:$0xff]  ;;  %v397_v13 = vld [vmem:[%s645_s0 + $0x18] sm:$0xff]  ;;  %v399_v14 = vld [vmem:[%s645_s0 + $0x28] sm:$0xff] }
   0x6   :  { %143 = vmatpush.bf16.msra.mxu0 %v408_v1  ;;  %413 = vmatpush.bf16.msra.mxu1 %v408_v1  ;;  %v401_v15 = vld [vmem:[%s645_s0 + $0x38] sm:$0xff] }
   0x7   :  { %414 = vmatpush.bf16.msra.mxu2 %v408_v1  ;;  %415 = vmatpush.bf16.msra.mxu3 %v408_v1 }
   0xa   :  { %144 = vmatpush.bf16.msra.mxu0 %v407_v2  ;;  %416 = vmatpush.bf16.msra.mxu1 %v407_v2 }
   0xb   :  { %417 = vmatpush.bf16.msra.mxu2 %v407_v2  ;;  %418 = vmatpush.bf16.msra.mxu3 %v407_v2 }
   0xe   :  { %145 = vmatpush.bf16.msra.mxu0 %v406_v3  ;;  %419 = vmatpush.bf16.msra.mxu1 %v406_v3 }
   0xf   :  { %420 = vmatpush.bf16.msra.mxu2 %v406_v3  ;;  %421 = vmatpush.bf16.msra.mxu3 %v406_v3 }
  0x12   :  { %146 = vmatpush.bf16.msra.mxu0 %v405_v4  ;;  %422 = vmatpush.bf16.msra.mxu1 %v405_v4 }
  0x13   :  { %423 = vmatpush.bf16.msra.mxu2 %v405_v4  ;;  %424 = vmatpush.bf16.msra.mxu3 %v405_v4 }
  0x16   :  { %147 = vmatpush.bf16.msra.mxu0 %v404_v5  ;;  %425 = vmatpush.bf16.msra.mxu1 %v404_v5 }
  0x17   :  { %426 = vmatpush.bf16.msra.mxu2 %v404_v5  ;;  %427 = vmatpush.bf16.msra.mxu3 %v404_v5 }
  0x1a   :  { %148 = vmatpush.bf16.msra.mxu0 %v403_v6  ;;  %428 = vmatpush.bf16.msra.mxu1 %v403_v6 }
  0x1b   :  { %429 = vmatpush.bf16.msra.mxu2 %v403_v6  ;;  %430 = vmatpush.bf16.msra.mxu3 %v403_v6 }
  0x1e   :  { %149 = vmatpush.bf16.msra.mxu0 %v402_v7  ;;  %431 = vmatpush.bf16.msra.mxu1 %v402_v7 }
  0x1f   :  { %432 = vmatpush.bf16.msra.mxu2 %v402_v7  ;;  %433 = vmatpush.bf16.msra.mxu3 %v402_v7 }
  0x21   :  { %150 = vmatmul.bf16.vlgmr.msra.gmra.mxu0 %v394_v8  ;;  %160 = vmatmul.bf16.vlgmr.msra.gmra.mxu1 %v396_v9 }
  0x22   :  { %170 = vmatmul.bf16.vlgmr.msra.gmra.mxu2 %v398_v10  ;;  %180 = vmatmul.bf16.vlgmr.msra.gmra.mxu3 %v400_v11 }
  0x31   :  { %155 = vmatmul.bf16.gmra.mxu0 %v395_v12  ;;  %165 = vmatmul.bf16.gmra.mxu1 %v397_v13 }
  0x32   :  { %175 = vmatmul.bf16.gmra.mxu2 %v399_v14  ;;  %185 = vmatmul.bf16.gmra.mxu3 %v401_v15 }
  0x9e   :  { %v151_v16 = vpop.f32.mrf.mxu0  ;;  %v161_v17 = vpop.f32.mrf.mxu1 }
  0x9f   :  { %v285_v18 = vpack.c.bf16 %v151_v16, %v151_v16  ;;  %v289_v19 = vpack.c.bf16 %v161_v17, %v161_v17  ;;  %v231_v36 = vmul.f32 %v151_v16, %v151_v16  ;;  %v192_v40 = vsel %vm191_vm1, %v151_v16, 0.0 }
  0xa0   :  { %v235_v53 = vmul.f32 %v161_v17, %v161_v17  ;;  %v199_v60 = vsel %vm191_vm1, %v161_v17, 0.0 }
  0xa1   :  { %302 = vst.msk [vmem:[%s646_s2] sm:$0xf] %vm301_vm0, %v285_v18  ;;  %v247_v44 = vsel %vm191_vm1, %v231_v36, 0.0 }
  0xa2   :  { %306 = vst.msk [vmem:[%s646_s2 + $0x10] sm:$0xf] %vm301_vm0, %v289_v19  ;;  %v254_v2 = vsel %vm191_vm1, %v235_v53, 0.0 }
  0xa5   :  { %v515_v20 = vpop.f32.mrf.mxu2  ;;  %v517_v21 = vpop.f32.mrf.mxu3 }
  0xa6   :  { %v153_v22 = vpop.f32.mrf.mxu0  ;;  %v163_v23 = vpop.f32.mrf.mxu1  ;;  %v293_v24 = vpack.c.bf16 %v515_v20, %v515_v20  ;;  %v297_v27 = vpack.c.bf16 %v517_v21, %v517_v21  ;;  %v239_v12 = vmul.f32 %v515_v20, %v515_v20 }
  0xa7   :  { %v286_v25 = vpack.c.bf16 %v153_v22, %v153_v22  ;;  %v290_v26 = vpack.c.bf16 %v163_v23, %v163_v23  ;;  %v232_v33 = vmul.f32 %v153_v22, %v153_v22  ;;  %v193_v37 = vsel %vm191_vm1, %v153_v22, 0.0 }
  0xa8   :  { %310 = vst.msk [vmem:[%s646_s2 + $0x20] sm:$0xf] %vm301_vm0, %v293_v24  ;;  %v194_v43 = vadd.f32 %v193_v37, %v192_v40  ;;  %v236_v61 = vmul.f32 %v163_v23, %v163_v23  ;;  %v201_v3 = vsel %vm191_vm1, %v163_v23, 0.0  ;;  %v207_v23 = vsel %vm191_vm1, %v515_v20, 0.0 }
  0xa9   :  { %303 = vst.msk [vmem:[%s646_s2 + $0x4] sm:$0xf] %vm301_vm0, %v286_v25  ;;  %v248_v41 = vsel %vm191_vm1, %v232_v33, 0.0 }
  0xaa   :  { %307 = vst.msk [vmem:[%s646_s2 + $0x14] sm:$0xf] %vm301_vm0, %v290_v26  ;;  %v249_v48 = vadd.f32 %v248_v41, %v247_v44  ;;  %v256_v7 = vsel %vm191_vm1, %v236_v61, 0.0 }
  0xab   :  { %314 = vst.msk [vmem:[%s646_s2 + $0x30] sm:$0xf] %vm301_vm0, %v297_v27 }
  0xad   :  { %v539_v28 = vpop.f32.mrf.mxu2  ;;  %v541_v29 = vpop.f32.mrf.mxu3 }
  0xae   :  { %v156_v30 = vpop.f32.mrf.mxu0  ;;  %v166_v31 = vpop.f32.mrf.mxu1  ;;  %v294_v32 = vpack.c.bf16 %v539_v28, %v539_v28  ;;  %v298_v39 = vpack.c.bf16 %v541_v29, %v541_v29  ;;  %v240_v24 = vmul.f32 %v539_v28, %v539_v28  ;;  %v209_v20 = vsel %vm191_vm1, %v539_v28, 0.0 }
  0xaf   :  { %v287_v34 = vpack.c.bf16 %v156_v30, %v156_v30  ;;  %v291_v35 = vpack.c.bf16 %v166_v31, %v166_v31  ;;  %v233_v38 = vmul.f32 %v156_v30, %v156_v30  ;;  %v195_v42 = vsel %vm191_vm1, %v156_v30, 0.0 }
  0xb0   :  { %311 = vst.msk [vmem:[%s646_s2 + $0x24] sm:$0xf] %vm301_vm0, %v294_v32  ;;  %v196_v49 = vadd.f32 %v195_v42, %v194_v43  ;;  %v237_v4 = vmul.f32 %v166_v31, %v166_v31  ;;  %v203_v8 = vsel %vm191_vm1, %v166_v31, 0.0  ;;  %v262_v30 = vsel %vm191_vm1, %v239_v12, 0.0 }
  0xb1   :  { %304 = vst.msk [vmem:[%s646_s2 + $0x8] sm:$0xf] %vm301_vm0, %v287_v34  ;;  %v250_v45 = vsel %vm191_vm1, %v233_v38, 0.0  ;;  %v264_v34 = vsel %vm191_vm1, %v240_v24, 0.0  ;;  %v215_v28 = vsel %vm191_vm1, %v517_v21, 0.0  ;;  %v244_v44 = vmul.f32 %v541_v29, %v541_v29 }
  0xb2   :  { %308 = vst.msk [vmem:[%s646_s2 + $0x18] sm:$0xf] %vm301_vm0, %v291_v35  ;;  %v251_v57 = vadd.f32 %v250_v45, %v249_v48  ;;  %v258_v15 = vsel %vm191_vm1, %v237_v4, 0.0 }
  0xb3   :  { %315 = vst.msk [vmem:[%s646_s2 + $0x34] sm:$0xf] %vm301_vm0, %v298_v39  ;;  %v243_v39 = vmul.f32 %v517_v21, %v517_v21 }
  0xb5   :  { %v176_v46 = vpop.f32.mrf.mxu2  ;;  %v569_v47 = vpop.f32.mrf.mxu3 }
  0xb6   :  { %v158_v50 = vpop.f32.mrf.mxu0  ;;  %v168_v51 = vpop.f32.mrf.mxu1  ;;  %v295_v52 = vpack.c.bf16 %v176_v46, %v176_v46  ;;  %v299_v63 = vpack.c.bf16 %v569_v47, %v569_v47  ;;  %v241_v31 = vmul.f32 %v176_v46, %v176_v46  ;;  %v211_v35 = vsel %vm191_vm1, %v176_v46, 0.0 }
  0xb7   :  { %v197_v54 = vsel %vm191_vm1, %v158_v50, 0.0  ;;  %v234_v55 = vmul.f32 %v158_v50, %v158_v50  ;;  %v288_v56 = vpack.c.bf16 %v158_v50, %v158_v50  ;;  %v292_v59 = vpack.c.bf16 %v168_v51, %v168_v51 }
  0xb8   :  { %v198_v58 = vadd.f32 %v197_v54, %v196_v49  ;;  %312 = vst.msk [vmem:[%s646_s2 + $0x28] sm:$0xf] %vm301_vm0, %v295_v52  ;;  %v238_v9 = vmul.f32 %v168_v51, %v168_v51  ;;  %v205_v16 = vsel %vm191_vm1, %v168_v51, 0.0  ;;  %v266_v40 = vsel %vm191_vm1, %v241_v31, 0.0 }
  0xb9   :  { %v252_v62 = vsel %vm191_vm1, %v234_v55, 0.0  ;;  %305 = vst.msk [vmem:[%s646_s2 + $0xc] sm:$0xf] %vm301_vm0, %v288_v56  ;;  %v270_v49 = vsel %vm191_vm1, %v243_v39, 0.0  ;;  %v217_v50 = vsel %vm191_vm1, %v541_v29, 0.0  ;;  %v245_v51 = vmul.f32 %v569_v47, %v569_v47 }
  0xba   :  { %v200_v0 = vadd.f32 %v199_v60, %v198_v58  ;;  %v253_v1 = vadd.f32 %v252_v62, %v251_v57  ;;  %309 = vst.msk [vmem:[%s646_s2 + $0x1c] sm:$0xf] %vm301_vm0, %v292_v59  ;;  %v260_v25 = vsel %vm191_vm1, %v238_v9, 0.0  ;;  %v272_v54 = vsel %vm191_vm1, %v244_v44, 0.0 }
  0xbb   :  { %316 = vst.msk [vmem:[%s646_s2 + $0x38] sm:$0xf] %vm301_vm0, %v299_v63  ;;  %v219_v21 = vsel %vm191_vm1, %v569_v47, 0.0  ;;  %v274_v58 = vsel %vm191_vm1, %v245_v51, 0.0 }
  0xbc   :  { %v255_v5 = vadd.f32 %v254_v2, %v253_v1  ;;  %v202_v6 = vadd.f32 %v201_v3, %v200_v0 }
  0xbd   :  { %v178_v10 = vpop.f32.mrf.mxu2  ;;  %v188_v11 = vpop.f32.mrf.mxu3 }
  0xbe   :  { %v204_v13 = vadd.f32 %v203_v8, %v202_v6  ;;  %v257_v14 = vadd.f32 %v256_v7, %v255_v5  ;;  %v296_v17 = vpack.c.bf16 %v178_v10, %v178_v10  ;;  %v300_v18 = vpack.c.bf16 %v188_v11, %v188_v11 }
  0xbf   :  { %v242_v36 = vmul.f32 %v178_v10, %v178_v10  ;;  %v213_v41 = vsel %vm191_vm1, %v178_v10, 0.0  ;;  %v246_v55 = vmul.f32 %v188_v11, %v188_v11  ;;  %v221_v59 = vsel %vm191_vm1, %v188_v11, 0.0 }
  0xc0   :  { %v206_v19 = vadd.f32 %v205_v16, %v204_v13  ;;  %v259_v22 = vadd.f32 %v258_v15, %v257_v14  ;;  %313 = vst.msk [vmem:[%s646_s2 + $0x2c] sm:$0xf] %vm301_vm0, %v296_v17 }
  0xc1   :  { %317 = vst.msk [vmem:[%s646_s2 + $0x3c] sm:$0xf] %vm301_vm0, %v300_v18  ;;  %v268_v45 = vsel %vm191_vm1, %v242_v36, 0.0  ;;  %v276_v29 = vsel %vm191_vm1, %v246_v55, 0.0 }
  0xc2   :  { %v208_v26 = vadd.f32 %v207_v23, %v206_v19  ;;  %v261_v27 = vadd.f32 %v260_v25, %v259_v22 }
  0xc4   :  { %v263_v32 = vadd.f32 %v262_v30, %v261_v27  ;;  %v210_v33 = vadd.f32 %v209_v20, %v208_v26 }
  0xc6   :  { %v212_v37 = vadd.f32 %v211_v35, %v210_v33  ;;  %v265_v38 = vadd.f32 %v264_v34, %v263_v32 }
  0xc8   :  { %v267_v42 = vadd.f32 %v266_v40, %v265_v38  ;;  %v214_v43 = vadd.f32 %v213_v41, %v212_v37 }
  0xca   :  { %v216_v46 = vadd.f32 %v215_v28, %v214_v43  ;;  %v269_v48 = vadd.f32 %v268_v45, %v267_v42 }
  0xcc   :  { %v271_v52 = vadd.f32 %v270_v49, %v269_v48  ;;  %v218_v53 = vadd.f32 %v217_v50, %v216_v46 }
  0xce   :  { %v220_v56 = vadd.f32 %v219_v21, %v218_v53  ;;  %v273_v57 = vadd.f32 %v272_v54, %v271_v52 }
  0xd0   :  { %v275_v60 = vadd.f32 %v274_v58, %v273_v57  ;;  %v222_v61 = vadd.f32 %v221_v59, %v220_v56 }
  0xd2   :  { %v223_v62 = vrot.slane %v222_v61, 4  ;;  %v277_v63 = vadd.f32 %v276_v29, %v275_v60 }
  0xd4   :  { %v224_v0 = vadd.f32 %v223_v62, %v222_v61  ;;  %v278_v1 = vrot.slane %v277_v63, 4 }
  0xd6   :  { %v225_v2 = vrot.slane %v224_v0, 2  ;;  %v279_v3 = vadd.f32 %v278_v1, %v277_v63 }
  0xd8   :  { %v226_v4 = vadd.f32 %v225_v2, %v224_v0  ;;  %v280_v5 = vrot.slane %v279_v3, 2 }
  0xda   :  { %v227_v47 = vrot.slane %v226_v4, 1  ;;  %v281_v6 = vadd.f32 %v280_v5, %v279_v3 }
  0xdc   :  { %v228_v7 = vadd.f32 %v227_v47, %v226_v4  ;;  %v282_v8 = vrot.slane %v281_v6, 1 }
  0xde   :  { %230 = vst.msk [vmem:[%s647_s3] sm:$0x1] %vm229_vm2, %v228_v7  ;;  %v283_v9 = vadd.f32 %v282_v8, %v281_v6 }
  0xe0   :  { %284 = vst.msk [vmem:[%s648_s4] sm:$0x1] %vm229_vm2, %v283_v9 }

// kernel: _lambda_.12
= control target key start
LH: loop header
LB: loop body
LE: loop exit
PB: predicated region body
PF: predicated region fallthrough
CT: control target
= control target key end

     0   :  { %vm242_vm0 = vcmask 257024   ;;  %vm204_vm1 = vcmask 261120   ;;  %vm218_vm2 = vcmask 253952   ;;  %s502_s1 = inlined_call_operand.vmem [shape: bf16[256,32], index: 1, kind: input, shape index: {}]   ;;  %s503_s0 = inlined_call_operand.vmem [shape: bf16[32,256], index: 0, kind: input, shape index: {}]   ;;  %s504_s2 = inlined_call_operand.vmem [shape: bf16[32,32], index: 2, kind: output, shape index: {0}]   ;;  %s505_s3 = inlined_call_operand.vmem [shape: f32[1,32], index: 3, kind: output, shape index: {1}]   ;;  %s506_s4 = inlined_call_operand.vmem [shape: f32[1,32], index: 4, kind: output, shape index: {2}]  }
   0x1   :  { %v350_v0 = vld [vmem:[%s502_s1 + $0x38] sm:$0xff]  ;;  %v349_v2 = vld [vmem:[%s502_s1 + $0x30] sm:$0xff]  ;;  %v348_v4 = vld [vmem:[%s502_s1 + $0x28] sm:$0xff] }
   0x2   :  { %v358_v1 = vld [vmem:[%s502_s1 + $0x78] sm:$0xff]  ;;  %166 = vmatpush.bf16.msra.mxu0 %v350_v0  ;;  %359 = vmatpush.bf16.msra.mxu2 %v350_v0  ;;  %v357_v3 = vld [vmem:[%s502_s1 + $0x70] sm:$0xff]  ;;  %v356_v5 = vld [vmem:[%s502_s1 + $0x68] sm:$0xff] }
   0x3   :  { %185 = vmatpush.bf16.msra.mxu1 %v358_v1  ;;  %367 = vmatpush.bf16.msra.mxu3 %v358_v1  ;;  %v347_v6 = vld [vmem:[%s502_s1 + $0x20] sm:$0xff]  ;;  %v346_v8 = vld [vmem:[%s502_s1 + $0x18] sm:$0xff]  ;;  %v345_v10 = vld [vmem:[%s502_s1 + $0x10] sm:$0xff] }
   0x4   :  { %v355_v7 = vld [vmem:[%s502_s1 + $0x60] sm:$0xff]  ;;  %v354_v9 = vld [vmem:[%s502_s1 + $0x58] sm:$0xff]  ;;  %v353_v11 = vld [vmem:[%s502_s1 + $0x50] sm:$0xff] }
   0x5   :  { %v344_v12 = vld [vmem:[%s502_s1 + $0x8] sm:$0xff]  ;;  %v343_v14 = vld [vmem:[%s502_s1] sm:$0xff]  ;;  %v269_v18 = vld [vmem:[%s503_s0 + $0x10] sm:$0xf] }
   0x6   :  { %167 = vmatpush.bf16.msra.mxu0 %v349_v2  ;;  %360 = vmatpush.bf16.msra.mxu2 %v349_v2  ;;  %v352_v13 = vld [vmem:[%s502_s1 + $0x48] sm:$0xff]  ;;  %v351_v15 = vld [vmem:[%s502_s1 + $0x40] sm:$0xff]  ;;  %v342_v19 = vld [vmem:[%s503_s0 + $0x14] sm:$0xf0] }
   0x7   :  { %186 = vmatpush.bf16.msra.mxu1 %v357_v3  ;;  %368 = vmatpush.bf16.msra.mxu3 %v357_v3  ;;  %v261_v16 = vld [vmem:[%s503_s0] sm:$0xf]  ;;  %v340_v17 = vld [vmem:[%s503_s0 + $0x4] sm:$0xf0]  ;;  %v339_v20 = vld [vmem:[%s503_s0 + $0x4] sm:$0xf]  ;;  %v270_v25 = vor.u32 %v342_v19, %v269_v18 }
   0x8   :  { %v263_v21 = vld [vmem:[%s503_s0 + $0x8] sm:$0xf0]  ;;  %v341_v22 = vld [vmem:[%s503_s0 + $0x14] sm:$0xf]  ;;  %v271_v23 = vld [vmem:[%s503_s0 + $0x18] sm:$0xf0]  ;;  %v262_v24 = vor.u32 %v340_v17, %v261_v16 }
   0x9   :  { %v266_v26 = vor.u32 %v339_v20, %v263_v21  ;;  %v274_v27 = vor.u32 %v341_v22, %v271_v23 }
   0xa   :  { %168 = vmatpush.bf16.msra.mxu0 %v348_v4  ;;  %361 = vmatpush.bf16.msra.mxu2 %v348_v4 }
   0xb   :  { %187 = vmatpush.bf16.msra.mxu1 %v356_v5  ;;  %369 = vmatpush.bf16.msra.mxu3 %v356_v5 }
   0xe   :  { %169 = vmatpush.bf16.msra.mxu0 %v347_v6  ;;  %362 = vmatpush.bf16.msra.mxu2 %v347_v6 }
   0xf   :  { %188 = vmatpush.bf16.msra.mxu1 %v355_v7  ;;  %370 = vmatpush.bf16.msra.mxu3 %v355_v7 }
  0x12   :  { %170 = vmatpush.bf16.msra.mxu0 %v346_v8  ;;  %363 = vmatpush.bf16.msra.mxu2 %v346_v8 }
  0x13   :  { %189 = vmatpush.bf16.msra.mxu1 %v354_v9  ;;  %371 = vmatpush.bf16.msra.mxu3 %v354_v9 }
  0x16   :  { %171 = vmatpush.bf16.msra.mxu0 %v345_v10  ;;  %364 = vmatpush.bf16.msra.mxu2 %v345_v10 }
  0x17   :  { %190 = vmatpush.bf16.msra.mxu1 %v353_v11  ;;  %372 = vmatpush.bf16.msra.mxu3 %v353_v11 }
  0x1a   :  { %172 = vmatpush.bf16.msra.mxu0 %v344_v12  ;;  %365 = vmatpush.bf16.msra.mxu2 %v344_v12 }
  0x1b   :  { %191 = vmatpush.bf16.msra.mxu1 %v352_v13  ;;  %373 = vmatpush.bf16.msra.mxu3 %v352_v13 }
  0x1e   :  { %173 = vmatpush.bf16.msra.mxu0 %v343_v14  ;;  %366 = vmatpush.bf16.msra.mxu2 %v343_v14 }
  0x1f   :  { %192 = vmatpush.bf16.msra.mxu1 %v351_v15  ;;  %374 = vmatpush.bf16.msra.mxu3 %v351_v15 }
  0x21   :  { %174 = vmatmul.bf16.vlgmr.msra.gmra.mxu0 %v262_v24  ;;  %179 = vmatmul.bf16.vlgmr.msra.gmra.mxu2 %v270_v25 }
  0x22   :  { %193 = vmatmul.bf16.vlgmr.msra.gmra.mxu1 %v266_v26  ;;  %198 = vmatmul.bf16.vlgmr.msra.gmra.mxu3 %v274_v27 }
  0x9e   :  { %v175_v28 = vpop.f32.mrf.mxu0 }
  0x9f   :  { %v194_v29 = vpop.f32.mrf.mxu1 }
  0xa0   :  { %v195_v30 = vadd.f32 %v194_v29, %v175_v28 }
  0xa2   :  { %v238_v31 = vpack.c.bf16 %v195_v30, %v195_v30  ;;  %v220_v37 = vmul.f32 %v195_v30, %v195_v30  ;;  %v205_v40 = vsel %vm204_vm1, %v195_v30, 0.0 }
  0xa4   :  { %243 = vst.msk [vmem:[%s504_s2] sm:$0xf] %vm242_vm0, %v238_v31  ;;  %v180_v32 = vpop.f32.mrf.mxu2  ;;  %v224_v45 = vsel %vm204_vm1, %v220_v37, 0.0 }
  0xa5   :  { %v199_v33 = vpop.f32.mrf.mxu3 }
  0xa6   :  { %v200_v34 = vadd.f32 %v199_v33, %v180_v32  ;;  %v177_v35 = vpop.f32.mrf.mxu0 }
  0xa7   :  { %v196_v36 = vpop.f32.mrf.mxu1 }
  0xa8   :  { %v240_v38 = vpack.c.bf16 %v200_v34, %v200_v34  ;;  %v197_v39 = vadd.f32 %v196_v36, %v177_v35  ;;  %v222_v46 = vmul.f32 %v200_v34, %v200_v34  ;;  %v208_v51 = vsel %vm204_vm1, %v200_v34, 0.0 }
  0xaa   :  { %245 = vst.msk [vmem:[%s504_s2 + $0x8] sm:$0xf] %vm242_vm0, %v240_v38  ;;  %v206_v41 = vsel %vm204_vm1, %v197_v39, 0.0  ;;  %v221_v42 = vmul.f32 %v197_v39, %v197_v39  ;;  %v239_v43 = vpack.c.bf16 %v197_v39, %v197_v39  ;;  %v227_v54 = vsel %vm204_vm1, %v222_v46, 0.0 }
  0xab   :  { %v207_v44 = vadd.f32 %v206_v41, %v205_v40 }
  0xac   :  { %v225_v47 = vsel %vm204_vm1, %v221_v42, 0.0  ;;  %244 = vst.msk [vmem:[%s504_s2 + $0x4] sm:$0xf] %vm242_vm0, %v239_v43  ;;  %v182_v48 = vpop.f32.mrf.mxu2 }
  0xad   :  { %v226_v49 = vadd.f32 %v225_v47, %v224_v45  ;;  %v201_v50 = vpop.f32.mrf.mxu3  ;;  %v209_v53 = vadd.f32 %v208_v51, %v207_v44 }
  0xae   :  { %v202_v52 = vadd.f32 %v201_v50, %v182_v48 }
  0xaf   :  { %v228_v59 = vadd.f32 %v227_v54, %v226_v49 }
  0xb0   :  { %v210_v55 = vsel %vm204_vm1, %v202_v52, 0.0  ;;  %v223_v56 = vmul.f32 %v202_v52, %v202_v52  ;;  %v241_v57 = vpack.c.bf16 %v202_v52, %v202_v52 }
  0xb1   :  { %v211_v58 = vadd.f32 %v210_v55, %v209_v53 }
  0xb2   :  { %v229_v60 = vsel %vm204_vm1, %v223_v56, 0.0  ;;  %246 = vst.msk [vmem:[%s504_s2 + $0xc] sm:$0xf] %vm242_vm0, %v241_v57 }
  0xb3   :  { %v212_v61 = vrot.slane %v211_v58, 4  ;;  %v230_v62 = vadd.f32 %v229_v60, %v228_v59 }
  0xb5   :  { %v213_v63 = vadd.f32 %v212_v61, %v211_v58  ;;  %v231_v0 = vrot.slane %v230_v62, 4 }
  0xb7   :  { %v214_v1 = vrot.slane %v213_v63, 2  ;;  %v232_v2 = vadd.f32 %v231_v0, %v230_v62 }
  0xb9   :  { %v215_v3 = vadd.f32 %v214_v1, %v213_v63  ;;  %v233_v4 = vrot.slane %v232_v2, 2 }
  0xbb   :  { %v216_v5 = vrot.slane %v215_v3, 1  ;;  %v234_v6 = vadd.f32 %v233_v4, %v232_v2 }
  0xbd   :  { %v217_v7 = vadd.f32 %v216_v5, %v215_v3  ;;  %v235_v8 = vrot.slane %v234_v6, 1 }
  0xbf   :  { %219 = vst.msk [vmem:[%s505_s3] sm:$0x1] %vm218_vm2, %v217_v7  ;;  %v236_v9 = vadd.f32 %v235_v8, %v234_v6 }
  0xc1   :  { %237 = vst.msk [vmem:[%s506_s4] sm:$0x1] %vm218_vm2, %v236_v9 }

// kernel: _lambda_.13
= control target key start
LH: loop header
LB: loop body
LE: loop exit
PB: predicated region body
PF: predicated region fallthrough
CT: control target
= control target key end

     0   :  { %vm338_vm0 = vcmask 523264   ;;  %vm358_vm1 = vcmask 519168   ;;  %vm346_vm2 = vcmask 516096   ;;  %s668_s1 = inlined_call_operand.vmem [shape: bf16[512,64], index: 1, kind: input, shape index: {}]   ;;  %s669_s0 = inlined_call_operand.vmem [shape: bf16[8,512], index: 0, kind: input, shape index: {}]   ;;  %s670_s2 = inlined_call_operand.vmem [shape: bf16[8,64], index: 2, kind: output, shape index: {0}]   ;;  %s671_s3 = inlined_call_operand.vmem [shape: f32[1,64], index: 3, kind: output, shape index: {1}]   ;;  %s672_s4 = inlined_call_operand.vmem [shape: f32[1,64], index: 4, kind: output, shape index: {2}]  }
   0x1   :  { %v507_v0 = vld [vmem:[%s668_s1 + $0x38] sm:$0xff]  ;;  %v506_v4 = vld [vmem:[%s668_s1 + $0x30] sm:$0xff]  ;;  %v505_v8 = vld [vmem:[%s668_s1 + $0x28] sm:$0xff] }
   0x2   :  { %v515_v1 = vld [vmem:[%s668_s1 + $0x78] sm:$0xff]  ;;  %286 = vmatpush.bf16.msra.mxu0 %v507_v0  ;;  %v514_v5 = vld [vmem:[%s668_s1 + $0x70] sm:$0xff]  ;;  %v513_v9 = vld [vmem:[%s668_s1 + $0x68] sm:$0xff] }
   0x3   :  { %v523_v2 = vld [vmem:[%s668_s1 + $0xb8] sm:$0xff]  ;;  %299 = vmatpush.bf16.msra.mxu1 %v515_v1  ;;  %v522_v6 = vld [vmem:[%s668_s1 + $0xb0] sm:$0xff]  ;;  %v521_v10 = vld [vmem:[%s668_s1 + $0xa8] sm:$0xff] }
   0x4   :  { %v531_v3 = vld [vmem:[%s668_s1 + $0xf8] sm:$0xff]  ;;  %312 = vmatpush.bf16.msra.mxu2 %v523_v2  ;;  %v530_v7 = vld [vmem:[%s668_s1 + $0xf0] sm:$0xff]  ;;  %v529_v11 = vld [vmem:[%s668_s1 + $0xe8] sm:$0xff] }
   0x5   :  { %325 = vmatpush.bf16.msra.mxu3 %v531_v3  ;;  %v504_v12 = vld [vmem:[%s668_s1 + $0x20] sm:$0xff]  ;;  %v503_v16 = vld [vmem:[%s668_s1 + $0x18] sm:$0xff]  ;;  %v502_v20 = vld [vmem:[%s668_s1 + $0x10] sm:$0xff] }
   0x6   :  { %287 = vmatpush.bf16.msra.mxu0 %v506_v4  ;;  %v512_v13 = vld [vmem:[%s668_s1 + $0x60] sm:$0xff]  ;;  %v511_v17 = vld [vmem:[%s668_s1 + $0x58] sm:$0xff]  ;;  %v510_v21 = vld [vmem:[%s668_s1 + $0x50] sm:$0xff] }
   0x7   :  { %300 = vmatpush.bf16.msra.mxu1 %v514_v5  ;;  %v520_v14 = vld [vmem:[%s668_s1 + $0xa0] sm:$0xff]  ;;  %v519_v18 = vld [vmem:[%s668_s1 + $0x98] sm:$0xff]  ;;  %v518_v22 = vld [vmem:[%s668_s1 + $0x90] sm:$0xff] }
   0x8   :  { %313 = vmatpush.bf16.msra.mxu2 %v522_v6  ;;  %v528_v15 = vld [vmem:[%s668_s1 + $0xe0] sm:$0xff]  ;;  %v527_v19 = vld [vmem:[%s668_s1 + $0xd8] sm:$0xff]  ;;  %v526_v23 = vld [vmem:[%s668_s1 + $0xd0] sm:$0xff] }
   0x9   :  { %326 = vmatpush.bf16.msra.mxu3 %v530_v7  ;;  %v501_v24 = vld [vmem:[%s668_s1 + $0x8] sm:$0xff]  ;;  %v14_v26 = vld [vmem:[%s669_s0] sm:$0xff] }
   0xa   :  { %288 = vmatpush.bf16.msra.mxu0 %v505_v8  ;;  %v509_v25 = vld [vmem:[%s668_s1 + $0x48] sm:$0xff]  ;;  %v82_v30 = vunpack.c.l.b16 %v14_v26  ;;  %v83_v31 = vunpack.c.h.b16 %v14_v26  ;;  %v500_v32 = vld [vmem:[%s668_s1] sm:$0xff] }
   0xb   :  { %301 = vmatpush.bf16.msra.mxu1 %v513_v9  ;;  %v517_v27 = vld [vmem:[%s668_s1 + $0x88] sm:$0xff]  ;;  %v508_v33 = vld [vmem:[%s668_s1 + $0x40] sm:$0xff] }
   0xc   :  { %314 = vmatpush.bf16.msra.mxu2 %v521_v10  ;;  %v525_v28 = vld [vmem:[%s668_s1 + $0xc8] sm:$0xff]  ;;  %v516_v36 = vld [vmem:[%s668_s1 + $0x80] sm:$0xff]  ;;  %v86_v38 = vpack.c.b16 %v82_v30, %v82_v30  ;;  %v87_v39 = vpack.c.b16 %v83_v31, %v83_v31 }
   0xd   :  { %327 = vmatpush.bf16.msra.mxu3 %v529_v11  ;;  %v15_v29 = vld [vmem:[%s669_s0 + $0x8] sm:$0xff]  ;;  %v524_v37 = vld [vmem:[%s668_s1 + $0xc0] sm:$0xff] }
   0xe   :  { %289 = vmatpush.bf16.msra.mxu0 %v504_v12  ;;  %v84_v34 = vunpack.c.l.b16 %v15_v29  ;;  %v85_v35 = vunpack.c.h.b16 %v15_v29 }
   0xf   :  { %302 = vmatpush.bf16.msra.mxu1 %v512_v13 }
  0x10   :  { %315 = vmatpush.bf16.msra.mxu2 %v520_v14  ;;  %v88_v40 = vpack.c.b16 %v84_v34, %v84_v34  ;;  %v89_v41 = vpack.c.b16 %v85_v35, %v85_v35 }
  0x11   :  { %328 = vmatpush.bf16.msra.mxu3 %v528_v15 }
  0x12   :  { %290 = vmatpush.bf16.msra.mxu0 %v503_v16 }
  0x13   :  { %303 = vmatpush.bf16.msra.mxu1 %v511_v17 }
  0x14   :  { %316 = vmatpush.bf16.msra.mxu2 %v519_v18 }
  0x15   :  { %329 = vmatpush.bf16.msra.mxu3 %v527_v19 }
  0x16   :  { %291 = vmatpush.bf16.msra.mxu0 %v502_v20 }
  0x17   :  { %304 = vmatpush.bf16.msra.mxu1 %v510_v21 }
  0x18   :  { %317 = vmatpush.bf16.msra.mxu2 %v518_v22 }
  0x19   :  { %330 = vmatpush.bf16.msra.mxu3 %v526_v23 }
  0x1a   :  { %292 = vmatpush.bf16.msra.mxu0 %v501_v24 }
  0x1b   :  { %305 = vmatpush.bf16.msra.mxu1 %v509_v25 }
  0x1c   :  { %318 = vmatpush.bf16.msra.mxu2 %v517_v27 }
  0x1d   :  { %331 = vmatpush.bf16.msra.mxu3 %v525_v28 }
  0x1e   :  { %293 = vmatpush.bf16.msra.mxu0 %v500_v32 }
  0x1f   :  { %306 = vmatpush.bf16.msra.mxu1 %v508_v33 }
  0x20   :  { %319 = vmatpush.bf16.msra.mxu2 %v516_v36 }
  0x21   :  { %332 = vmatpush.bf16.msra.mxu3 %v524_v37  ;;  %294 = vmatmul.bf16.vlgmr.msra.gmra.mxu0 %v86_v38 }
  0x22   :  { %307 = vmatmul.bf16.vlgmr.msra.gmra.mxu1 %v87_v39 }
  0x23   :  { %320 = vmatmul.bf16.vlgmr.msra.gmra.mxu2 %v88_v40 }
  0x24   :  { %333 = vmatmul.bf16.vlgmr.msra.gmra.mxu3 %v89_v41 }
  0x9e   :  { %v295_v42 = vpop.f32.mrf.mxu0 }
  0x9f   :  { %v308_v43 = vpop.f32.mrf.mxu1 }
  0xa0   :  { %v309_v44 = vadd.f32 %v308_v43, %v295_v42 }
  0xa6   :  { %v321_v45 = vpop.f32.mrf.mxu2  ;;  %v297_v48 = vpop.f32.mrf.mxu0 }
  0xa7   :  { %v334_v46 = vpop.f32.mrf.mxu3  ;;  %v322_v47 = vadd.f32 %v321_v45, %v309_v44  ;;  %v310_v49 = vpop.f32.mrf.mxu1 }
  0xa9   :  { %v335_v50 = vadd.f32 %v334_v46, %v322_v47 }
  0xab   :  { %v339_v51 = vsel %vm338_vm0, %v335_v50, 0.0  ;;  %v348_v52 = vmul.f32 %v335_v50, %v335_v50  ;;  %v357_v53 = vpack.c.bf16 %v335_v50, %v335_v50 }
  0xac   :  { %v340_v54 = vrot.slane %v339_v51, 4 }
  0xad   :  { %v349_v55 = vsel %vm338_vm0, %v348_v52, 0.0  ;;  %359 = vst.msk [vmem:[%s670_s2] sm:$0xf] %vm358_vm1, %v357_v53 }
  0xae   :  { %v341_v56 = vadd.f32 %v340_v54, %v339_v51  ;;  %v350_v57 = vrot.slane %v349_v55, 4  ;;  %v323_v58 = vpop.f32.mrf.mxu2 }
  0xaf   :  { %v336_v59 = vpop.f32.mrf.mxu3 }
  0xb0   :  { %v342_v60 = vrot.slane %v341_v56, 2  ;;  %v351_v61 = vadd.f32 %v350_v57, %v349_v55 }
  0xb2   :  { %v343_v62 = vadd.f32 %v342_v60, %v341_v56  ;;  %v352_v63 = vrot.slane %v351_v61, 2 }
  0xb4   :  { %v344_v0 = vrot.slane %v343_v62, 1  ;;  %v353_v1 = vadd.f32 %v352_v63, %v351_v61 }
  0xb6   :  { %v345_v2 = vadd.f32 %v344_v0, %v343_v62  ;;  %v354_v3 = vrot.slane %v353_v1, 1 }
  0xb8   :  { %347 = vst.msk [vmem:[%s671_s3] sm:$0x1] %vm346_vm2, %v345_v2  ;;  %v355_v4 = vadd.f32 %v354_v3, %v353_v1 }
  0xba   :  { %356 = vst.msk [vmem:[%s672_s4] sm:$0x1] %vm346_vm2, %v355_v4 }

// kernel: _lambda_.14
= control target key start
LH: loop header
LB: loop body
LE: loop exit
PB: predicated region body
PF: predicated region fallthrough
CT: control target
= control target key end

     0   :  { %vm647_vm0 = vcmask 516096   ;;  %s1186_s1 = inlined_call_operand.vmem [shape: bf16[1024,64], index: 1, kind: input, shape index: {}]   ;;  %s1187_s0 = inlined_call_operand.vmem [shape: bf16[2,1024], index: 0, kind: input, shape index: {}]   ;;  %s1188_s2 = inlined_call_operand.vmem [shape: bf16[2,64], index: 2, kind: output, shape index: {}]  }
   0x1   :  { %v916_v0 = vld [vmem:[%s1186_s1 + $0x38] sm:$0xff]  ;;  %v915_v4 = vld [vmem:[%s1186_s1 + $0x30] sm:$0xff]  ;;  %v914_v8 = vld [vmem:[%s1186_s1 + $0x28] sm:$0xff] }
   0x2   :  { %v924_v1 = vld [vmem:[%s1186_s1 + $0x78] sm:$0xff]  ;;  %542 = vmatpush.bf16.msra.mxu0 %v916_v0  ;;  %v923_v5 = vld [vmem:[%s1186_s1 + $0x70] sm:$0xff]  ;;  %v922_v9 = vld [vmem:[%s1186_s1 + $0x68] sm:$0xff] }
   0x3   :  { %v932_v2 = vld [vmem:[%s1186_s1 + $0xb8] sm:$0xff]  ;;  %555 = vmatpush.bf16.msra.mxu1 %v924_v1  ;;  %v931_v6 = vld [vmem:[%s1186_s1 + $0xb0] sm:$0xff]  ;;  %v930_v10 = vld [vmem:[%s1186_s1 + $0xa8] sm:$0xff] }
   0x4   :  { %v940_v3 = vld [vmem:[%s1186_s1 + $0xf8] sm:$0xff]  ;;  %568 = vmatpush.bf16.msra.mxu2 %v932_v2  ;;  %v939_v7 = vld [vmem:[%s1186_s1 + $0xf0] sm:$0xff]  ;;  %v938_v11 = vld [vmem:[%s1186_s1 + $0xe8] sm:$0xff] }
   0x5   :  { %581 = vmatpush.bf16.msra.mxu3 %v940_v3  ;;  %v913_v12 = vld [vmem:[%s1186_s1 + $0x20] sm:$0xff]  ;;  %v912_v17 = vld [vmem:[%s1186_s1 + $0x18] sm:$0xff]  ;;  %v911_v21 = vld [vmem:[%s1186_s1 + $0x10] sm:$0xff] }
   0x6   :  { %543 = vmatpush.bf16.msra.mxu0 %v915_v4  ;;  %v921_v13 = vld [vmem:[%s1186_s1 + $0x60] sm:$0xff]  ;;  %v920_v18 = vld [vmem:[%s1186_s1 + $0x58] sm:$0xff]  ;;  %v919_v22 = vld [vmem:[%s1186_s1 + $0x50] sm:$0xff] }
   0x7   :  { %556 = vmatpush.bf16.msra.mxu1 %v923_v5  ;;  %v929_v14 = vld [vmem:[%s1186_s1 + $0xa0] sm:$0xff]  ;;  %v928_v19 = vld [vmem:[%s1186_s1 + $0x98] sm:$0xff]  ;;  %v927_v23 = vld [vmem:[%s1186_s1 + $0x90] sm:$0xff] }
   0x8   :  { %569 = vmatpush.bf16.msra.mxu2 %v931_v6  ;;  %v937_v15 = vld [vmem:[%s1186_s1 + $0xe0] sm:$0xff]  ;;  %v936_v20 = vld [vmem:[%s1186_s1 + $0xd8] sm:$0xff]  ;;  %v935_v24 = vld [vmem:[%s1186_s1 + $0xd0] sm:$0xff] }
   0x9   :  { %582 = vmatpush.bf16.msra.mxu3 %v939_v7  ;;  %v11_v16 = vld [vmem:[%s1187_s0] sm:$0xff]  ;;  %v910_v25 = vld [vmem:[%s1186_s1 + $0x8] sm:$0xff]  ;;  %v948_v33 = vld [vmem:[%s1186_s1 + $0x138] sm:$0xff] }
   0xa   :  { %544 = vmatpush.bf16.msra.mxu0 %v914_v8  ;;  %141 = vst [vmem:[#allocation1] ss:$9 sm:$0xff] %v11_v16  ;;  %v918_v26 = vld [vmem:[%s1186_s1 + $0x48] sm:$0xff]  ;;  %v909_v29 = vld [vmem:[%s1186_s1] sm:$0xff]  ;;  %v956_v34 = vld [vmem:[%s1186_s1 + $0x178] sm:$0xff] }
   0xb   :  { %557 = vmatpush.bf16.msra.mxu1 %v922_v9  ;;  %v926_v27 = vld [vmem:[%s1186_s1 + $0x88] sm:$0xff]  ;;  %v917_v30 = vld [vmem:[%s1186_s1 + $0x40] sm:$0xff]  ;;  %v964_v35 = vld [vmem:[%s1186_s1 + $0x1b8] sm:$0xff] }
   0xc   :  { %570 = vmatpush.bf16.msra.mxu2 %v930_v10  ;;  %v934_v28 = vld [vmem:[%s1186_s1 + $0xc8] sm:$0xff]  ;;  %v925_v31 = vld [vmem:[%s1186_s1 + $0x80] sm:$0xff]  ;;  %v972_v36 = vld [vmem:[%s1186_s1 + $0x1f8] sm:$0xff] }
   0xd   :  { %583 = vmatpush.bf16.msra.mxu3 %v938_v11  ;;  %v933_v32 = vld [vmem:[%s1186_s1 + $0xc0] sm:$0xff]  ;;  %v947_v37 = vld [vmem:[%s1186_s1 + $0x130] sm:$0xff]  ;;  %v946_v45 = vld [vmem:[%s1186_s1 + $0x128] sm:$0xff] }
   0xe   :  { %545 = vmatpush.bf16.msra.mxu0 %v913_v12  ;;  %v955_v40 = vld [vmem:[%s1186_s1 + $0x170] sm:$0xff]  ;;  %v954_v46 = vld [vmem:[%s1186_s1 + $0x168] sm:$0xff]  ;;  %v945_v49 = vld [vmem:[%s1186_s1 + $0x120] sm:$0xff] }
   0xf   :  { %558 = vmatpush.bf16.msra.mxu1 %v921_v13  ;;  %v963_v43 = vld [vmem:[%s1186_s1 + $0x1b0] sm:$0xff]  ;;  %v962_v47 = vld [vmem:[%s1186_s1 + $0x1a8] sm:$0xff]  ;;  %v953_v50 = vld [vmem:[%s1186_s1 + $0x160] sm:$0xff] }
  0x10   :  { %571 = vmatpush.bf16.msra.mxu2 %v929_v14  ;;  %v971_v44 = vld [vmem:[%s1186_s1 + $0x1f0] sm:$0xff]  ;;  %v970_v48 = vld [vmem:[%s1186_s1 + $0x1e8] sm:$0xff]  ;;  %v961_v51 = vld [vmem:[%s1186_s1 + $0x1a0] sm:$0xff] }
  0x11   :  { %584 = vmatpush.bf16.msra.mxu3 %v937_v15  ;;  %v144_v38 = vld [vmem:[#allocation1 + $0x12] sm:$0xff]  ;;  %v145_v39 = vld [vmem:[#allocation1 + $0x1b] sm:$0xff]  ;;  %v143_v42 = vld [vmem:[#allocation1 + $0x9] sm:$0xff] }
  0x12   :  { %546 = vmatpush.bf16.msra.mxu0 %v912_v17  ;;  %v142_v41 = vld [vmem:[#allocation1] sm:$0xff]  ;;  %v944_v53 = vld [vmem:[%s1186_s1 + $0x118] sm:$0xff]  ;;  %v943_v57 = vld [vmem:[%s1186_s1 + $0x110] sm:$0xff] }
  0x13   :  { %559 = vmatpush.bf16.msra.mxu1 %v920_v18  ;;  %v969_v52 = vld [vmem:[%s1186_s1 + $0x1e0] sm:$0xff]  ;;  %v952_v54 = vld [vmem:[%s1186_s1 + $0x158] sm:$0xff]  ;;  %v951_v58 = vld [vmem:[%s1186_s1 + $0x150] sm:$0xff] }
  0x14   :  { %572 = vmatpush.bf16.msra.mxu2 %v928_v19  ;;  %v960_v55 = vld [vmem:[%s1186_s1 + $0x198] sm:$0xff]  ;;  %v959_v59 = vld [vmem:[%s1186_s1 + $0x190] sm:$0xff]  ;;  %v942_v61 = vld [vmem:[%s1186_s1 + $0x108] sm:$0xff] }
  0x15   :  { %585 = vmatpush.bf16.msra.mxu3 %v936_v20  ;;  %v968_v56 = vld [vmem:[%s1186_s1 + $0x1d8] sm:$0xff]  ;;  %v967_v60 = vld [vmem:[%s1186_s1 + $0x1d0] sm:$0xff]  ;;  %v950_v62 = vld [vmem:[%s1186_s1 + $0x148] sm:$0xff] }
  0x16   :  { %547 = vmatpush.bf16.msra.mxu0 %v911_v21  ;;  %v958_v63 = vld [vmem:[%s1186_s1 + $0x188] sm:$0xff]  ;;  %v941_v1 = vld [vmem:[%s1186_s1 + $0x100] sm:$0xff]  ;;  %v148_v7 = vld [vmem:[#allocation1 + $0x36] sm:$0xff] }
  0x17   :  { %560 = vmatpush.bf16.msra.mxu1 %v919_v22  ;;  %v966_v0 = vld [vmem:[%s1186_s1 + $0x1c8] sm:$0xff]  ;;  %v949_v2 = vld [vmem:[%s1186_s1 + $0x140] sm:$0xff] }
  0x18   :  { %573 = vmatpush.bf16.msra.mxu2 %v927_v23  ;;  %v957_v3 = vld [vmem:[%s1186_s1 + $0x180] sm:$0xff]  ;;  %v147_v6 = vld [vmem:[#allocation1 + $0x2d] sm:$0xff] }
  0x19   :  { %586 = vmatpush.bf16.msra.mxu3 %v935_v24  ;;  %v965_v4 = vld [vmem:[%s1186_s1 + $0x1c0] sm:$0xff] }
  0x1a   :  { %548 = vmatpush.bf16.msra.mxu0 %v910_v25  ;;  %v146_v5 = vld [vmem:[#allocation1 + $0x24] sm:$0xff] }
  0x1b   :  { %561 = vmatpush.bf16.msra.mxu1 %v918_v26  ;;  %v149_v8 = vld [vmem:[#allocation1 + $0x3f] sm:$0xff] }
  0x1c   :  { %574 = vmatpush.bf16.msra.mxu2 %v926_v27 }
  0x1d   :  { %587 = vmatpush.bf16.msra.mxu3 %v934_v28 }
  0x1e   :  { %549 = vmatpush.bf16.msra.mxu0 %v909_v29 }
  0x1f   :  { %562 = vmatpush.bf16.msra.mxu1 %v917_v30 }
  0x20   :  { %575 = vmatpush.bf16.msra.mxu2 %v925_v31 }
  0x21   :  { %588 = vmatpush.bf16.msra.mxu3 %v933_v32  ;;  %550 = vmatmul.bf16.vlgmr.msra.gmra.mxu0 %v142_v41 }
  0x22   :  { %594 = vmatpush.bf16.msrb.mxu0 %v948_v33  ;;  %563 = vmatmul.bf16.vlgmr.msra.gmra.mxu1 %v143_v42 }
  0x23   :  { %607 = vmatpush.bf16.msrb.mxu1 %v956_v34  ;;  %576 = vmatmul.bf16.vlgmr.msra.gmra.mxu2 %v144_v38 }
  0x24   :  { %620 = vmatpush.bf16.msrb.mxu2 %v964_v35  ;;  %589 = vmatmul.bf16.vlgmr.msra.gmra.mxu3 %v145_v39 }
  0x25   :  { %633 = vmatpush.bf16.msrb.mxu3 %v972_v36 }
  0x26   :  { %595 = vmatpush.bf16.msrb.mxu0 %v947_v37 }
  0x27   :  { %608 = vmatpush.bf16.msrb.mxu1 %v955_v40 }
  0x28   :  { %621 = vmatpush.bf16.msrb.mxu2 %v963_v43 }
  0x29   :  { %634 = vmatpush.bf16.msrb.mxu3 %v971_v44 }
  0x2a   :  { %596 = vmatpush.bf16.msrb.mxu0 %v946_v45 }
  0x2b   :  { %609 = vmatpush.bf16.msrb.mxu1 %v954_v46 }
  0x2c   :  { %622 = vmatpush.bf16.msrb.mxu2 %v962_v47 }
  0x2d   :  { %635 = vmatpush.bf16.msrb.mxu3 %v970_v48 }
  0x2e   :  { %597 = vmatpush.bf16.msrb.mxu0 %v945_v49 }
  0x2f   :  { %610 = vmatpush.bf16.msrb.mxu1 %v953_v50 }
  0x30   :  { %623 = vmatpush.bf16.msrb.mxu2 %v961_v51 }
  0x31   :  { %636 = vmatpush.bf16.msrb.mxu3 %v969_v52 }
  0x32   :  { %598 = vmatpush.bf16.msrb.mxu0 %v944_v53 }
  0x33   :  { %611 = vmatpush.bf16.msrb.mxu1 %v952_v54 }
  0x34   :  { %624 = vmatpush.bf16.msrb.mxu2 %v960_v55 }
  0x35   :  { %637 = vmatpush.bf16.msrb.mxu3 %v968_v56 }
  0x36   :  { %599 = vmatpush.bf16.msrb.mxu0 %v943_v57 }
  0x37   :  { %612 = vmatpush.bf16.msrb.mxu1 %v951_v58 }
  0x38   :  { %625 = vmatpush.bf16.msrb.mxu2 %v959_v59 }
  0x39   :  { %638 = vmatpush.bf16.msrb.mxu3 %v967_v60 }
  0x3a   :  { %600 = vmatpush.bf16.msrb.mxu0 %v942_v61 }
  0x3b   :  { %613 = vmatpush.bf16.msrb.mxu1 %v950_v62 }
  0x3c   :  { %626 = vmatpush.bf16.msrb.mxu2 %v958_v63 }
  0x3d   :  { %639 = vmatpush.bf16.msrb.mxu3 %v966_v0 }
  0x3e   :  { %601 = vmatpush.bf16.msrb.mxu0 %v941_v1 }
  0x3f   :  { %614 = vmatpush.bf16.msrb.mxu1 %v949_v2 }
  0x40   :  { %627 = vmatpush.bf16.msrb.mxu2 %v957_v3 }
  0x41   :  { %640 = vmatpush.bf16.msrb.mxu3 %v965_v4  ;;  %602 = vmatmul.bf16.vlgmr.msrb.gmra.mxu0 %v146_v5 }
  0x42   :  { %615 = vmatmul.bf16.vlgmr.msrb.gmra.mxu1 %v147_v6 }
  0x43   :  { %628 = vmatmul.bf16.vlgmr.msrb.gmra.mxu2 %v148_v7 }
  0x44   :  { %641 = vmatmul.bf16.vlgmr.msrb.gmra.mxu3 %v149_v8 }
  0x9e   :  { %v551_v9 = vpop.f32.mrf.mxu0 }
  0x9f   :  { %v564_v10 = vpop.f32.mrf.mxu1 }
  0xa0   :  { %v565_v17 = vadd.f32 %v564_v10, %v551_v9 }
  0xa6   :  { %v577_v11 = vpop.f32.mrf.mxu2  ;;  %v553_v13 = vpop.f32.mrf.mxu0 }
  0xa7   :  { %v590_v12 = vpop.f32.mrf.mxu3  ;;  %v566_v14 = vpop.f32.mrf.mxu1  ;;  %v578_v18 = vadd.f32 %v577_v11, %v565_v17 }
  0xa9   :  { %v591_v19 = vadd.f32 %v590_v12, %v578_v18 }
  0xae   :  { %v579_v15 = vpop.f32.mrf.mxu2 }
  0xaf   :  { %v592_v16 = vpop.f32.mrf.mxu3 }
  0xbe   :  { %v603_v20 = vpop.f32.mrf.mxu0 }
  0xbf   :  { %v616_v21 = vpop.f32.mrf.mxu1  ;;  %v604_v22 = vadd.f32 %v603_v20, %v591_v19 }
  0xc1   :  { %v617_v23 = vadd.f32 %v616_v21, %v604_v22 }
  0xc6   :  { %v629_v24 = vpop.f32.mrf.mxu2  ;;  %v605_v27 = vpop.f32.mrf.mxu0 }
  0xc7   :  { %v642_v25 = vpop.f32.mrf.mxu3  ;;  %v630_v26 = vadd.f32 %v629_v24, %v617_v23  ;;  %v618_v28 = vpop.f32.mrf.mxu1 }
  0xc9   :  { %v643_v29 = vadd.f32 %v642_v25, %v630_v26 }
  0xcb   :  { %v646_v30 = vpack.c.bf16 %v643_v29, %v643_v29 }
  0xcd   :  { %648 = vst.msk [vmem:[%s1188_s2] sm:$0x1] %vm647_vm0, %v646_v30 }
  0xce   :  { %v631_v31 = vpop.f32.mrf.mxu2 }
  0xcf   :  { %v644_v32 = vpop.f32.mrf.mxu3 }

// kernel: _lambda_.15
= control target key start
LH: loop header
LB: loop body
LE: loop exit
PB: predicated region body
PF: predicated region fallthrough
CT: control target
= control target key end

     0   :  { %vm459_vm0 = vcmask 523264   ;;  %vm592_vm1 = vcmask 1041408   ;;  %vm610_vm2 = vcmask 1040384   ;;  %s1520_s1 = inlined_call_operand.vmem [shape: bf16[576,256], index: 1, kind: input, shape index: {}]   ;;  %s1521_s0 = inlined_call_operand.vmem [shape: bf16[2,576], index: 0, kind: input, shape index: {}]   ;;  %s1522_s2 = inlined_call_operand.vmem [shape: bf16[2,256], index: 2, kind: output, shape index: {0}]   ;;  %s1523_s3 = inlined_call_operand.vmem [shape: f32[1,256], index: 3, kind: output, shape index: {1}]   ;;  %s1524_s4 = inlined_call_operand.vmem [shape: f32[1,256], index: 4, kind: output, shape index: {2}]  }
   0x1   :  { %v718_v0 = vld [vmem:[%s1520_s1 + $0x70] sm:$0xf]  ;;  %v965_v1 = vld [vmem:[%s1520_s1 + $0x74] sm:$0xf0]  ;;  %v710_v11 = vld [vmem:[%s1520_s1 + $0x60] sm:$0xf] }
   0x2   :  { %v782_v2 = vld [vmem:[%s1520_s1 + $0xf0] sm:$0xf]  ;;  %v719_v3 = vor.u32 %v965_v1, %v718_v0  ;;  %v981_v4 = vld [vmem:[%s1520_s1 + $0xf4] sm:$0xf0]  ;;  %v963_v13 = vld [vmem:[%s1520_s1 + $0x64] sm:$0xf0] }
   0x3   :  { %v846_v5 = vld [vmem:[%s1520_s1 + $0x170] sm:$0xf]  ;;  %v997_v6 = vld [vmem:[%s1520_s1 + $0x174] sm:$0xf0]  ;;  %v783_v7 = vor.u32 %v981_v4, %v782_v2  ;;  %v774_v14 = vld [vmem:[%s1520_s1 + $0xe0] sm:$0xf]  ;;  %v711_v16 = vor.u32 %v963_v13, %v710_v11 }
   0x4   :  { %v847_v8 = vor.u32 %v997_v6, %v846_v5  ;;  %v910_v9 = vld [vmem:[%s1520_s1 + $0x1f0] sm:$0xf]  ;;  %v1013_v10 = vld [vmem:[%s1520_s1 + $0x1f4] sm:$0xf0]  ;;  %462 = vmatpush.bf16.msra.mxu0 %v719_v3  ;;  %v979_v15 = vld [vmem:[%s1520_s1 + $0xe4] sm:$0xf0] }
   0x5   :  { %v911_v12 = vor.u32 %v1013_v10, %v910_v9  ;;  %475 = vmatpush.bf16.msra.mxu1 %v783_v7  ;;  %v775_v17 = vor.u32 %v979_v15, %v774_v14  ;;  %v838_v18 = vld [vmem:[%s1520_s1 + $0x160] sm:$0xf]  ;;  %v995_v19 = vld [vmem:[%s1520_s1 + $0x164] sm:$0xf0]  ;;  %v702_v23 = vld [vmem:[%s1520_s1 + $0x50] sm:$0xf] }
   0x6   :  { %488 = vmatpush.bf16.msra.mxu2 %v847_v8  ;;  %v902_v20 = vld [vmem:[%s1520_s1 + $0x1e0] sm:$0xf]  ;;  %v839_v21 = vor.u32 %v995_v19, %v838_v18  ;;  %v1011_v22 = vld [vmem:[%s1520_s1 + $0x1e4] sm:$0xf0]  ;;  %v961_v24 = vld [vmem:[%s1520_s1 + $0x54] sm:$0xf0] }
   0x7   :  { %501 = vmatpush.bf16.msra.mxu3 %v911_v12  ;;  %v903_v25 = vor.u32 %v1011_v22, %v902_v20  ;;  %v766_v26 = vld [vmem:[%s1520_s1 + $0xd0] sm:$0xf]  ;;  %v977_v27 = vld [vmem:[%s1520_s1 + $0xd4] sm:$0xf0]  ;;  %v703_v29 = vor.u32 %v961_v24, %v702_v23  ;;  %v694_v35 = vld [vmem:[%s1520_s1 + $0x40] sm:$0xf] }
   0x8   :  { %v830_v28 = vld [vmem:[%s1520_s1 + $0x150] sm:$0xf]  ;;  %463 = vmatpush.bf16.msra.mxu0 %v711_v16  ;;  %v993_v30 = vld [vmem:[%s1520_s1 + $0x154] sm:$0xf0]  ;;  %v767_v33 = vor.u32 %v977_v27, %v766_v26  ;;  %v959_v36 = vld [vmem:[%s1520_s1 + $0x44] sm:$0xf0] }
   0x9   :  { %v894_v31 = vld [vmem:[%s1520_s1 + $0x1d0] sm:$0xf]  ;;  %v1009_v32 = vld [vmem:[%s1520_s1 + $0x1d4] sm:$0xf0]  ;;  %476 = vmatpush.bf16.msra.mxu1 %v775_v17  ;;  %v831_v34 = vor.u32 %v993_v30, %v830_v28  ;;  %v758_v37 = vld [vmem:[%s1520_s1 + $0xc0] sm:$0xf]  ;;  %v695_v44 = vor.u32 %v959_v36, %v694_v35 }
   0xa   :  { %489 = vmatpush.bf16.msra.mxu2 %v839_v21  ;;  %v895_v38 = vor.u32 %v1009_v32, %v894_v31  ;;  %v975_v39 = vld [vmem:[%s1520_s1 + $0xc4] sm:$0xf0]  ;;  %v822_v40 = vld [vmem:[%s1520_s1 + $0x140] sm:$0xf]  ;;  %v686_v47 = vld [vmem:[%s1520_s1 + $0x30] sm:$0xf] }
   0xb   :  { %502 = vmatpush.bf16.msra.mxu3 %v903_v25  ;;  %v991_v41 = vld [vmem:[%s1520_s1 + $0x144] sm:$0xf0]  ;;  %v886_v42 = vld [vmem:[%s1520_s1 + $0x1c0] sm:$0xf]  ;;  %v759_v45 = vor.u32 %v975_v39, %v758_v37  ;;  %v957_v48 = vld [vmem:[%s1520_s1 + $0x34] sm:$0xf0] }
   0xc   :  { %v1007_v43 = vld [vmem:[%s1520_s1 + $0x1c4] sm:$0xf0]  ;;  %464 = vmatpush.bf16.msra.mxu0 %v703_v29  ;;  %v823_v46 = vor.u32 %v991_v41, %v822_v40  ;;  %v750_v49 = vld [vmem:[%s1520_s1 + $0xb0] sm:$0xf]  ;;  %v973_v51 = vld [vmem:[%s1520_s1 + $0xb4] sm:$0xf0]  ;;  %v687_v56 = vor.u32 %v957_v48, %v686_v47 }
   0xd   :  { %477 = vmatpush.bf16.msra.mxu1 %v767_v33  ;;  %v887_v50 = vor.u32 %v1007_v43, %v886_v42  ;;  %v814_v52 = vld [vmem:[%s1520_s1 + $0x130] sm:$0xf]  ;;  %v989_v53 = vld [vmem:[%s1520_s1 + $0x134] sm:$0xf0]  ;;  %v751_v57 = vor.u32 %v973_v51, %v750_v49  ;;  %v678_v59 = vld [vmem:[%s1520_s1 + $0x20] sm:$0xf] }
   0xe   :  { %490 = vmatpush.bf16.msra.mxu2 %v831_v34  ;;  %v878_v54 = vld [vmem:[%s1520_s1 + $0x1b0] sm:$0xf]  ;;  %v1005_v55 = vld [vmem:[%s1520_s1 + $0x1b4] sm:$0xf0]  ;;  %v815_v58 = vor.u32 %v989_v53, %v814_v52  ;;  %v955_v60 = vld [vmem:[%s1520_s1 + $0x24] sm:$0xf0] }
   0xf   :  { %503 = vmatpush.bf16.msra.mxu3 %v895_v38  ;;  %v742_v61 = vld [vmem:[%s1520_s1 + $0xa0] sm:$0xf]  ;;  %v879_v62 = vor.u32 %v1005_v55, %v878_v54  ;;  %v971_v63 = vld [vmem:[%s1520_s1 + $0xa4] sm:$0xf0]  ;;  %v679_v4 = vor.u32 %v955_v60, %v678_v59  ;;  %v670_v7 = vld [vmem:[%s1520_s1 + $0x10] sm:$0xf] }
  0x10   :  { %465 = vmatpush.bf16.msra.mxu0 %v695_v44  ;;  %v806_v0 = vld [vmem:[%s1520_s1 + $0x120] sm:$0xf]  ;;  %v987_v1 = vld [vmem:[%s1520_s1 + $0x124] sm:$0xf0]  ;;  %v743_v5 = vor.u32 %v971_v63, %v742_v61  ;;  %v953_v8 = vld [vmem:[%s1520_s1 + $0x14] sm:$0xf0] }
  0x11   :  { %478 = vmatpush.bf16.msra.mxu1 %v759_v45  ;;  %v870_v2 = vld [vmem:[%s1520_s1 + $0x1a0] sm:$0xf]  ;;  %v1003_v3 = vld [vmem:[%s1520_s1 + $0x1a4] sm:$0xf0]  ;;  %v807_v6 = vor.u32 %v987_v1, %v806_v0  ;;  %v734_v9 = vld [vmem:[%s1520_s1 + $0x90] sm:$0xf]  ;;  %v671_v17 = vor.u32 %v953_v8, %v670_v7 }
  0x12   :  { %491 = vmatpush.bf16.msra.mxu2 %v823_v46  ;;  %v871_v10 = vor.u32 %v1003_v3, %v870_v2  ;;  %v969_v11 = vld [vmem:[%s1520_s1 + $0x94] sm:$0xf0]  ;;  %v798_v12 = vld [vmem:[%s1520_s1 + $0x110] sm:$0xf]  ;;  %v662_v16 = vld [vmem:[%s1520_s1] sm:$0xf] }
  0x13   :  { %504 = vmatpush.bf16.msra.mxu3 %v887_v50  ;;  %v985_v13 = vld [vmem:[%s1520_s1 + $0x114] sm:$0xf0]  ;;  %v862_v14 = vld [vmem:[%s1520_s1 + $0x190] sm:$0xf]  ;;  %v951_v18 = vld [vmem:[%s1520_s1 + $0x4] sm:$0xf0]  ;;  %v735_v21 = vor.u32 %v969_v11, %v734_v9 }
  0x14   :  { %466 = vmatpush.bf16.msra.mxu0 %v687_v56  ;;  %v1001_v15 = vld [vmem:[%s1520_s1 + $0x194] sm:$0xf0]  ;;  %v726_v19 = vld [vmem:[%s1520_s1 + $0x80] sm:$0xf]  ;;  %v967_v20 = vld [vmem:[%s1520_s1 + $0x84] sm:$0xf0]  ;;  %v799_v22 = vor.u32 %v985_v13, %v798_v12  ;;  %v663_v32 = vor.u32 %v951_v18, %v662_v16 }
  0x15   :  { %479 = vmatpush.bf16.msra.mxu1 %v751_v57  ;;  %v790_v23 = vld [vmem:[%s1520_s1 + $0x100] sm:$0xf]  ;;  %v983_v24 = vld [vmem:[%s1520_s1 + $0x104] sm:$0xf0]  ;;  %v863_v26 = vor.u32 %v1001_v15, %v862_v14  ;;  %v942_v29 = vld [vmem:[%s1520_s1 + $0x230] sm:$0xf]  ;;  %v727_v36 = vor.u32 %v967_v20, %v726_v19 }
  0x16   :  { %492 = vmatpush.bf16.msra.mxu2 %v815_v58  ;;  %v15_v25 = vld [vmem:[%s1521_s0] sm:$0x1f]  ;;  %v999_v28 = vld [vmem:[%s1520_s1 + $0x184] sm:$0xf0]  ;;  %v1021_v30 = vld [vmem:[%s1520_s1 + $0x234] sm:$0xf0]  ;;  %v791_v37 = vor.u32 %v983_v24, %v790_v23 }
  0x17   :  { %505 = vmatpush.bf16.msra.mxu3 %v879_v62  ;;  %v854_v27 = vld [vmem:[%s1520_s1 + $0x180] sm:$0xf]  ;;  %89 = vst [vmem:[#allocation1] ss:$9 sm:$0xff] %v15_v25  ;;  %v964_v31 = vld [vmem:[%s1520_s1 + $0x74] sm:$0xf]  ;;  %v943_v41 = vor.u32 %v1021_v30, %v942_v29 }
  0x18   :  { %467 = vmatpush.bf16.msra.mxu0 %v679_v4  ;;  %v720_v33 = vld [vmem:[%s1520_s1 + $0x78] sm:$0xf0]  ;;  %v980_v34 = vld [vmem:[%s1520_s1 + $0xf4] sm:$0xf]  ;;  %v855_v40 = vor.u32 %v999_v28, %v854_v27  ;;  %v934_v44 = vld [vmem:[%s1520_s1 + $0x220] sm:$0xf] }
  0x19   :  { %480 = vmatpush.bf16.msra.mxu1 %v743_v5  ;;  %v784_v35 = vld [vmem:[%s1520_s1 + $0xf8] sm:$0xf0]  ;;  %v996_v38 = vld [vmem:[%s1520_s1 + $0x174] sm:$0xf]  ;;  %v723_v42 = vor.u32 %v964_v31, %v720_v33  ;;  %v1019_v45 = vld [vmem:[%s1520_s1 + $0x224] sm:$0xf0] }
  0x1a   :  { %493 = vmatpush.bf16.msra.mxu2 %v807_v6  ;;  %v848_v39 = vld [vmem:[%s1520_s1 + $0x178] sm:$0xf0]  ;;  %v787_v43 = vor.u32 %v980_v34, %v784_v35  ;;  %v962_v46 = vld [vmem:[%s1520_s1 + $0x64] sm:$0xf]  ;;  %v712_v48 = vld [vmem:[%s1520_s1 + $0x68] sm:$0xf0]  ;;  %v935_v54 = vor.u32 %v1019_v45, %v934_v44 }
  0x1b   :  { %506 = vmatpush.bf16.msra.mxu3 %v871_v10  ;;  %v851_v47 = vor.u32 %v996_v38, %v848_v39  ;;  %v978_v49 = vld [vmem:[%s1520_s1 + $0xe4] sm:$0xf]  ;;  %v776_v50 = vld [vmem:[%s1520_s1 + $0xe8] sm:$0xf0]  ;;  %v926_v57 = vld [vmem:[%s1520_s1 + $0x210] sm:$0xf]  ;;  %v715_v58 = vor.u32 %v962_v46, %v712_v48 }
  0x1c   :  { %468 = vmatpush.bf16.msra.mxu0 %v671_v17  ;;  %v994_v52 = vld [vmem:[%s1520_s1 + $0x164] sm:$0xf]  ;;  %v840_v53 = vld [vmem:[%s1520_s1 + $0x168] sm:$0xf0]  ;;  %v779_v59 = vor.u32 %v978_v49, %v776_v50  ;;  %v1017_v60 = vld [vmem:[%s1520_s1 + $0x214] sm:$0xf0] }
  0x1d   :  { %481 = vmatpush.bf16.msra.mxu1 %v735_v21  ;;  %v960_v61 = vld [vmem:[%s1520_s1 + $0x54] sm:$0xf]  ;;  %v843_v63 = vor.u32 %v994_v52, %v840_v53  ;;  %v704_v0 = vld [vmem:[%s1520_s1 + $0x58] sm:$0xf0]  ;;  %v927_v5 = vor.u32 %v1017_v60, %v926_v57  ;;  %v918_v6 = vld [vmem:[%s1520_s1 + $0x200] sm:$0xf] }
  0x1e   :  { %494 = vmatpush.bf16.msra.mxu2 %v799_v22  ;;  %v1284_v51 = vld [vmem:[#allocation1] sm:$0xff]  ;;  %v1292_v55 = vld [vmem:[#allocation1 + $0x9] sm:$0xff]  ;;  %v1294_v56 = vld [vmem:[#allocation1 + $0x12] sm:$0xff]  ;;  %v707_v7 = vor.u32 %v960_v61, %v704_v0 }
  0x1f   :  { %507 = vmatpush.bf16.msra.mxu3 %v863_v26  ;;  %v1305_v62 = vld [vmem:[#allocation1 + $0x1b] sm:$0xff]  ;;  %v976_v1 = vld [vmem:[%s1520_s1 + $0xd4] sm:$0xf]  ;;  %v1015_v9 = vld [vmem:[%s1520_s1 + $0x204] sm:$0xf0] }
  0x20   :  { %469 = vmatpush.bf16.msra.mxu0 %v663_v32  ;;  %v768_v2 = vld [vmem:[%s1520_s1 + $0xd8] sm:$0xf0]  ;;  %v992_v3 = vld [vmem:[%s1520_s1 + $0x154] sm:$0xf]  ;;  %v958_v10 = vld [vmem:[%s1520_s1 + $0x44] sm:$0xf]  ;;  %v919_v19 = vor.u32 %v1015_v9, %v918_v6 }
  0x21   :  { %482 = vmatpush.bf16.msra.mxu1 %v727_v36  ;;  %v832_v4 = vld [vmem:[%s1520_s1 + $0x158] sm:$0xf0]  ;;  %v771_v8 = vor.u32 %v976_v1, %v768_v2  ;;  %v696_v11 = vld [vmem:[%s1520_s1 + $0x48] sm:$0xf0]  ;;  %v974_v13 = vld [vmem:[%s1520_s1 + $0xc4] sm:$0xf] }
  0x22   :  { %495 = vmatpush.bf16.msra.mxu2 %v791_v37  ;;  %v835_v12 = vor.u32 %v992_v3, %v832_v4  ;;  %v760_v14 = vld [vmem:[%s1520_s1 + $0xc8] sm:$0xf0]  ;;  %v990_v15 = vld [vmem:[%s1520_s1 + $0x144] sm:$0xf]  ;;  %v1012_v17 = vld [vmem:[%s1520_s1 + $0x1f4] sm:$0xf]  ;;  %v699_v20 = vor.u32 %v958_v10, %v696_v11 }
  0x23   :  { %508 = vmatpush.bf16.msra.mxu3 %v855_v40  ;;  %470 = vmatmul.bf16.vlgmr.msra.gmra.mxu0 %v1284_v51  ;;  %v824_v16 = vld [vmem:[%s1520_s1 + $0x148] sm:$0xf0]  ;;  %v912_v18 = vld [vmem:[%s1520_s1 + $0x1f8] sm:$0xf0]  ;;  %v763_v21 = vor.u32 %v974_v13, %v760_v14  ;;  %v956_v22 = vld [vmem:[%s1520_s1 + $0x34] sm:$0xf] }
  0x24   :  { %518 = vmatpush.bf16.msrb.mxu0 %v943_v41  ;;  %483 = vmatmul.bf16.vlgmr.msra.gmra.mxu1 %v1292_v55  ;;  %v688_v23 = vld [vmem:[%s1520_s1 + $0x38] sm:$0xf0]  ;;  %v827_v24 = vor.u32 %v990_v15, %v824_v16  ;;  %v915_v25 = vor.u32 %v1012_v17, %v912_v18  ;;  %v972_v26 = vld [vmem:[%s1520_s1 + $0xb4] sm:$0xf]  ;;  %v1010_v30 = vld [vmem:[%s1520_s1 + $0x1e4] sm:$0xf] }
  0x25   :  { %527 = vmatpush.bf16.msrb.mxu1 %v723_v42  ;;  %496 = vmatmul.bf16.vlgmr.msra.gmra.mxu2 %v1294_v56  ;;  %v752_v27 = vld [vmem:[%s1520_s1 + $0xb8] sm:$0xf0]  ;;  %v988_v28 = vld [vmem:[%s1520_s1 + $0x134] sm:$0xf]  ;;  %v904_v31 = vld [vmem:[%s1520_s1 + $0x1e8] sm:$0xf0]  ;;  %v691_v32 = vor.u32 %v956_v22, %v688_v23 }
  0x26   :  { %540 = vmatpush.bf16.msrb.mxu2 %v787_v43  ;;  %509 = vmatmul.bf16.vlgmr.msra.gmra.mxu3 %v1305_v62  ;;  %v816_v29 = vld [vmem:[%s1520_s1 + $0x138] sm:$0xf0]  ;;  %v755_v33 = vor.u32 %v972_v26, %v752_v27  ;;  %v954_v34 = vld [vmem:[%s1520_s1 + $0x24] sm:$0xf]  ;;  %v680_v35 = vld [vmem:[%s1520_s1 + $0x28] sm:$0xf0]  ;;  %v907_v37 = vor.u32 %v1010_v30, %v904_v31 }
  0x27   :  { %553 = vmatpush.bf16.msrb.mxu3 %v851_v47  ;;  %v819_v36 = vor.u32 %v988_v28, %v816_v29  ;;  %v970_v38 = vld [vmem:[%s1520_s1 + $0xa4] sm:$0xf]  ;;  %v744_v39 = vld [vmem:[%s1520_s1 + $0xa8] sm:$0xf0]  ;;  %v1008_v42 = vld [vmem:[%s1520_s1 + $0x1d4] sm:$0xf]  ;;  %v683_v45 = vor.u32 %v954_v34, %v680_v35 }
  0x28   :  { %519 = vmatpush.bf16.msrb.mxu0 %v935_v54  ;;  %v986_v40 = vld [vmem:[%s1520_s1 + $0x124] sm:$0xf]  ;;  %v808_v41 = vld [vmem:[%s1520_s1 + $0x128] sm:$0xf0]  ;;  %v896_v43 = vld [vmem:[%s1520_s1 + $0x1d8] sm:$0xf0]  ;;  %v747_v46 = vor.u32 %v970_v38, %v744_v39 }
  0x29   :  { %528 = vmatpush.bf16.msrb.mxu1 %v715_v58  ;;  %v1404_v44 = vld [vmem:[#allocation1 + $0x24] sm:$0xff]  ;;  %v952_v47 = vld [vmem:[%s1520_s1 + $0x14] sm:$0xf]  ;;  %v672_v48 = vld [vmem:[%s1520_s1 + $0x18] sm:$0xf0]  ;;  %v811_v49 = vor.u32 %v986_v40, %v808_v41  ;;  %v899_v50 = vor.u32 %v1008_v42, %v896_v43 }
  0x2a   :  { %541 = vmatpush.bf16.msrb.mxu2 %v779_v59  ;;  %v968_v52 = vld [vmem:[%s1520_s1 + $0x94] sm:$0xf]  ;;  %v736_v53 = vld [vmem:[%s1520_s1 + $0x98] sm:$0xf0]  ;;  %v1006_v58 = vld [vmem:[%s1520_s1 + $0x1c4] sm:$0xf]  ;;  %v675_v60 = vor.u32 %v952_v47, %v672_v48 }
  0x2b   :  { %554 = vmatpush.bf16.msrb.mxu3 %v843_v63  ;;  %v984_v54 = vld [vmem:[%s1520_s1 + $0x114] sm:$0xf]  ;;  %v800_v57 = vld [vmem:[%s1520_s1 + $0x118] sm:$0xf0]  ;;  %v888_v59 = vld [vmem:[%s1520_s1 + $0x1c8] sm:$0xf0]  ;;  %v739_v61 = vor.u32 %v968_v52, %v736_v53 }
  0x2c   :  { %520 = vmatpush.bf16.msrb.mxu0 %v927_v5  ;;  %v950_v63 = vld [vmem:[%s1520_s1 + $0x4] sm:$0xf]  ;;  %v664_v0 = vld [vmem:[%s1520_s1 + $0x8] sm:$0xf0]  ;;  %v803_v1 = vor.u32 %v984_v54, %v800_v57  ;;  %v891_v2 = vor.u32 %v1006_v58, %v888_v59  ;;  %v1020_v9 = vld [vmem:[%s1520_s1 + $0x234] sm:$0xf] }
  0x2d   :  { %529 = vmatpush.bf16.msrb.mxu1 %v707_v7  ;;  %v966_v3 = vld [vmem:[%s1520_s1 + $0x84] sm:$0xf]  ;;  %v728_v4 = vld [vmem:[%s1520_s1 + $0x88] sm:$0xf0]  ;;  %v1004_v7 = vld [vmem:[%s1520_s1 + $0x1b4] sm:$0xf]  ;;  %v667_v11 = vor.u32 %v950_v63, %v664_v0 }
  0x2e   :  { %542 = vmatpush.bf16.msrb.mxu2 %v771_v8  ;;  %v982_v5 = vld [vmem:[%s1520_s1 + $0x104] sm:$0xf]  ;;  %v792_v6 = vld [vmem:[%s1520_s1 + $0x108] sm:$0xf0]  ;;  %v880_v8 = vld [vmem:[%s1520_s1 + $0x1b8] sm:$0xf0] }
  0x2f   :  { %555 = vmatpush.bf16.msrb.mxu3 %v835_v12  ;;  %v944_v10 = vld [vmem:[%s1520_s1 + $0x238] sm:$0xf0]  ;;  %v731_v12 = vor.u32 %v966_v3, %v728_v4  ;;  %v795_v13 = vor.u32 %v982_v5, %v792_v6  ;;  %v883_v14 = vor.u32 %v1004_v7, %v880_v8  ;;  %v1002_v16 = vld [vmem:[%s1520_s1 + $0x1a4] sm:$0xf]  ;;  %v872_v17 = vld [vmem:[%s1520_s1 + $0x1a8] sm:$0xf0] }
  0x30   :  { %521 = vmatpush.bf16.msrb.mxu0 %v919_v19  ;;  %v947_v15 = vor.u32 %v1020_v9, %v944_v10  ;;  %v1018_v18 = vld [vmem:[%s1520_s1 + $0x224] sm:$0xf]  ;;  %v936_v19 = vld [vmem:[%s1520_s1 + $0x228] sm:$0xf0]  ;;  %v1000_v22 = vld [vmem:[%s1520_s1 + $0x194] sm:$0xf] }
  0x31   :  { %530 = vmatpush.bf16.msrb.mxu1 %v699_v20  ;;  %v875_v20 = vor.u32 %v1002_v16, %v872_v17  ;;  %v864_v23 = vld [vmem:[%s1520_s1 + $0x198] sm:$0xf0]  ;;  %v1014_v28 = vld [vmem:[%s1520_s1 + $0x204] sm:$0xf] }
  0x32   :  { %543 = vmatpush.bf16.msrb.mxu2 %v763_v21  ;;  %v939_v21 = vor.u32 %v1018_v18, %v936_v19  ;;  %v867_v26 = vor.u32 %v1000_v22, %v864_v23 }
  0x33   :  { %556 = vmatpush.bf16.msrb.mxu3 %v827_v24  ;;  %948 = vmatmul.msk.bf16.vlgmr.msrb.gmra.mxu0 %vm459_vm0, %v1404_v44  ;;  %v1016_v24 = vld [vmem:[%s1520_s1 + $0x214] sm:$0xf] }
  0x34   :  { %566 = vmatpush.bf16.msra.mxu0 %v915_v25  ;;  %v928_v25 = vld [vmem:[%s1520_s1 + $0x218] sm:$0xf0] }
  0x35   :  { %531 = vmatpush.bf16.msrb.mxu1 %v691_v32  ;;  %v931_v27 = vor.u32 %v1016_v24, %v928_v25  ;;  %v613_v24 = vlaneseq }
  0x36   :  { %544 = vmatpush.bf16.msrb.mxu2 %v755_v33 }
  0x37   :  { %557 = vmatpush.bf16.msrb.mxu3 %v819_v36  ;;  %vm615_vm3 = vcmp.lt.s32.totalorder %v613_v24, 256 }
  0x38   :  { %567 = vmatpush.bf16.msra.mxu0 %v907_v37 }
  0x39   :  { %532 = vmatpush.bf16.msrb.mxu1 %v683_v45 }
  0x3a   :  { %545 = vmatpush.bf16.msrb.mxu2 %v747_v46 }
  0x3b   :  { %558 = vmatpush.bf16.msrb.mxu3 %v811_v49 }
  0x3c   :  { %568 = vmatpush.bf16.msra.mxu0 %v899_v50 }
  0x3d   :  { %533 = vmatpush.bf16.msrb.mxu1 %v675_v60 }
  0x3e   :  { %546 = vmatpush.bf16.msrb.mxu2 %v739_v61 }
  0x3f   :  { %559 = vmatpush.bf16.msrb.mxu3 %v803_v1 }
  0x40   :  { %569 = vmatpush.bf16.msra.mxu0 %v891_v2 }
  0x41   :  { %534 = vmatpush.bf16.msrb.mxu1 %v667_v11 }
  0x42   :  { %547 = vmatpush.bf16.msrb.mxu2 %v731_v12 }
  0x43   :  { %560 = vmatpush.bf16.msrb.mxu3 %v795_v13 }
  0x44   :  { %570 = vmatpush.bf16.msra.mxu0 %v883_v14  ;;  %535 = vmatmul.bf16.vlgmr.msrb.gmra.mxu1 %v1284_v51  ;;  %v998_v51 = vld [vmem:[%s1520_s1 + $0x184] sm:$0xf] }
  0x45   :  { %583 = vmatpush.bf16.msra.mxu1 %v947_v15  ;;  %548 = vmatmul.bf16.vlgmr.msrb.gmra.mxu2 %v1292_v55  ;;  %v856_v55 = vld [vmem:[%s1520_s1 + $0x188] sm:$0xf0] }
  0x46   :  { %561 = vmatmul.bf16.vlgmr.msrb.gmra.mxu3 %v1294_v56  ;;  %v920_v56 = vld [vmem:[%s1520_s1 + $0x208] sm:$0xf0]  ;;  %v859_v29 = vor.u32 %v998_v51, %v856_v55 }
  0x47   :  { %v923_v30 = vor.u32 %v1014_v28, %v920_v56 }
  0x48   :  { %571 = vmatpush.bf16.msra.mxu0 %v875_v20 }
  0x49   :  { %584 = vmatpush.bf16.msra.mxu1 %v939_v21 }
  0x4c   :  { %572 = vmatpush.bf16.msra.mxu0 %v867_v26 }
  0x4d   :  { %585 = vmatpush.bf16.msra.mxu1 %v931_v27 }
  0x50   :  { %573 = vmatpush.bf16.msra.mxu0 %v859_v29 }
  0x51   :  { %586 = vmatpush.bf16.msra.mxu1 %v923_v30 }
  0x53   :  { %574 = vmatmul.bf16.vlgmr.msra.gmra.mxu0 %v1305_v62 }
  0x54   :  { %949 = vmatmul.msk.bf16.vlgmr.msra.gmra.mxu1 %vm459_vm0, %v1404_v44 }
  0xa0   :  { %v471_v31 = vpop.f32.mrf.mxu0 }
  0xa1   :  { %v484_v32 = vpop.f32.mrf.mxu1 }
  0xa2   :  { %v485_v40 = vadd.f32 %v484_v32, %v471_v31 }
  0xa8   :  { %v497_v33 = vpop.f32.mrf.mxu2  ;;  %v473_v34 = vpop.f32.mrf.mxu0 }
  0xa9   :  { %v510_v35 = vpop.f32.mrf.mxu3  ;;  %v486_v36 = vpop.f32.mrf.mxu1  ;;  %v498_v41 = vadd.f32 %v497_v33, %v485_v40 }
  0xab   :  { %v511_v43 = vadd.f32 %v510_v35, %v498_v41 }
  0xb0   :  { %v499_v37 = vpop.f32.mrf.mxu2  ;;  %v523_v39 = vpop.f32.mrf.mxu0 }
  0xb1   :  { %v512_v38 = vpop.f32.mrf.mxu3  ;;  %v524_v46 = vadd.f32 %v523_v39, %v511_v43 }
  0xb3   :  { %v618_v47 = vmul.f32 %v524_v46, %v524_v46  ;;  %v593_v50 = vsel %vm592_vm1, %v524_v46, 0.0 }
  0xb4   :  { %v594_v53 = vrot.slane %v593_v50, 4 }
  0xb5   :  { %v620_v52 = vsel %vm592_vm1, %v618_v47, 0.0 }
  0xb6   :  { %v621_v58 = vrot.slane %v620_v52, 4  ;;  %v595_v63 = vadd.f32 %v594_v53, %v593_v50 }
  0xb8   :  { %v525_v42 = vpop.f32.mrf.mxu0  ;;  %v622_v2 = vadd.f32 %v621_v58, %v620_v52  ;;  %v596_v6 = vrot.slane %v595_v63, 2 }
  0xba   :  { %v623_v11 = vrot.slane %v622_v2, 2  ;;  %v597_v15 = vadd.f32 %v596_v6, %v595_v63 }
  0xbc   :  { %v624_v19 = vadd.f32 %v623_v11, %v622_v2  ;;  %v598_v22 = vrot.slane %v597_v15, 1 }
  0xbe   :  { %v625_v26 = vrot.slane %v624_v19, 1  ;;  %v599_v55 = vadd.f32 %v598_v22, %v597_v15 }
  0xc0   :  { %v626_v29 = vadd.f32 %v625_v26, %v624_v19 }
  0xc1   :  { %v536_v45 = vpop.f32.mrf.mxu1 }
  0xc8   :  { %v549_v62 = vpop.f32.mrf.mxu2 }
  0xc9   :  { %v562_v48 = vpop.f32.mrf.mxu3  ;;  %v550_v44 = vadd.f32 %v549_v62, %v536_v45  ;;  %v538_v49 = vpop.f32.mrf.mxu1 }
  0xcb   :  { %v563_v54 = vadd.f32 %v562_v48, %v550_v44 }
  0xd0   :  { %v575_v57 = vpop.f32.mrf.mxu0  ;;  %v551_v60 = vpop.f32.mrf.mxu2 }
  0xd1   :  { %v576_v59 = vadd.f32 %v575_v57, %v563_v54  ;;  %v564_v61 = vpop.f32.mrf.mxu3  ;;  %v588_v0 = vpop.f32.mrf.mxu1 }
  0xd3   :  { %v589_v1 = vadd.f32 %v588_v0, %v576_v59 }
  0xd5   :  { %v600_v3 = vsel %vm592_vm1, %v589_v1, 0.0  ;;  %v619_v4 = vmul.f32 %v589_v1, %v589_v1  ;;  %v640_v5 = vpack.c.bf16 %v589_v1, %v524_v46 }
  0xd6   :  { %v601_v7 = vrot.slane %v600_v3, 4 }
  0xd7   :  { %v627_v8 = vsel %vm592_vm1, %v619_v4, 0.0  ;;  %v642_v9 = vrot.slane %v640_v5, 3 }
  0xd8   :  { %v577_v10 = vpop.f32.mrf.mxu0  ;;  %v602_v12 = vadd.f32 %v601_v7, %v600_v3  ;;  %v628_v13 = vrot.slane %v627_v8, 4 }
  0xd9   :  { %v645_v14 = vsel %vm610_vm2, %v640_v5, %v642_v9  ;;  %v590_v18 = vpop.f32.mrf.mxu1 }
  0xda   :  { %v603_v16 = vrot.slane %v602_v12, 2  ;;  %v629_v17 = vadd.f32 %v628_v13, %v627_v8  ;;  %647 = vst [vmem:[%s1522_s2] sm:$0x3] %v645_v14 }
  0xdc   :  { %v604_v20 = vadd.f32 %v603_v16, %v602_v12  ;;  %v630_v21 = vrot.slane %v629_v17, 2 }
  0xde   :  { %v605_v23 = vrot.slane %v604_v20, 1  ;;  %v631_v25 = vadd.f32 %v630_v21, %v629_v17 }
  0xe0   :  { %v606_v27 = vadd.f32 %v605_v23, %v604_v20  ;;  %v632_v51 = vrot.slane %v631_v25, 1 }
  0xe2   :  { %v609_v28 = vrot.slane %v606_v27, 7  ;;  %v633_v56 = vadd.f32 %v632_v51, %v631_v25 }
  0xe4   :  { %v611_v30 = vsel %vm610_vm2, %v599_v55, %v609_v28  ;;  %v636_v31 = vrot.slane %v633_v56, 7 }
  0xe5   :  { %617 = vst.msk [vmem:[%s1523_s3] sm:$0x3] %vm615_vm3, %v611_v30 }
  0xe6   :  { %v637_v32 = vsel %vm610_vm2, %v626_v29, %v636_v31 }
  0xe7   :  { %639 = vst.msk [vmem:[%s1524_s4] sm:$0x3] %vm615_vm3, %v637_v32 }

// kernel: _lambda_.16
= control target key start
LH: loop header
LB: loop body
LE: loop exit
PB: predicated region body
PF: predicated region fallthrough
CT: control target
= control target key end

     0   :  { %s1398_s1 = inlined_call_operand.vmem [shape: bf16[1152,128], index: 1, kind: input, shape index: {}]   ;;  %s1399_s0 = inlined_call_operand.vmem [shape: bf16[8,1152], index: 0, kind: input, shape index: {}]   ;;  %s1400_s2 = inlined_call_operand.vmem [shape: bf16[8,128], index: 2, kind: output, shape index: {0}]   ;;  %s1401_s3 = inlined_call_operand.vmem [shape: f32[1,128], index: 3, kind: output, shape index: {1}]   ;;  %s1402_s4 = inlined_call_operand.vmem [shape: f32[1,128], index: 4, kind: output, shape index: {2}]  }
   0x1   :  { %v1068_v0 = vld [vmem:[%s1398_s1 + $0x38] sm:$0xff]  ;;  %v1067_v4 = vld [vmem:[%s1398_s1 + $0x30] sm:$0xff]  ;;  %v1066_v8 = vld [vmem:[%s1398_s1 + $0x28] sm:$0xff] }
   0x2   :  { %v1084_v1 = vld [vmem:[%s1398_s1 + $0xb8] sm:$0xff]  ;;  %627 = vmatpush.bf16.msra.mxu0 %v1068_v0  ;;  %v1083_v5 = vld [vmem:[%s1398_s1 + $0xb0] sm:$0xff]  ;;  %v1082_v9 = vld [vmem:[%s1398_s1 + $0xa8] sm:$0xff] }
   0x3   :  { %v1092_v2 = vld [vmem:[%s1398_s1 + $0xf8] sm:$0xff]  ;;  %653 = vmatpush.bf16.msra.mxu2 %v1084_v1  ;;  %v1091_v6 = vld [vmem:[%s1398_s1 + $0xf0] sm:$0xff]  ;;  %v1090_v10 = vld [vmem:[%s1398_s1 + $0xe8] sm:$0xff] }
   0x4   :  { %v1076_v3 = vld [vmem:[%s1398_s1 + $0x78] sm:$0xff]  ;;  %666 = vmatpush.bf16.msra.mxu3 %v1092_v2  ;;  %v1075_v7 = vld [vmem:[%s1398_s1 + $0x70] sm:$0xff]  ;;  %v1074_v11 = vld [vmem:[%s1398_s1 + $0x68] sm:$0xff] }
   0x5   :  { %640 = vmatpush.bf16.msra.mxu1 %v1076_v3  ;;  %v1065_v12 = vld [vmem:[%s1398_s1 + $0x20] sm:$0xff]  ;;  %v1064_v16 = vld [vmem:[%s1398_s1 + $0x18] sm:$0xff]  ;;  %v1063_v20 = vld [vmem:[%s1398_s1 + $0x10] sm:$0xff] }
   0x6   :  { %628 = vmatpush.bf16.msra.mxu0 %v1067_v4  ;;  %v1081_v13 = vld [vmem:[%s1398_s1 + $0xa0] sm:$0xff]  ;;  %v1080_v17 = vld [vmem:[%s1398_s1 + $0x98] sm:$0xff]  ;;  %v1079_v21 = vld [vmem:[%s1398_s1 + $0x90] sm:$0xff] }
   0x7   :  { %654 = vmatpush.bf16.msra.mxu2 %v1083_v5  ;;  %v1089_v14 = vld [vmem:[%s1398_s1 + $0xe0] sm:$0xff]  ;;  %v1088_v18 = vld [vmem:[%s1398_s1 + $0xd8] sm:$0xff]  ;;  %v1087_v22 = vld [vmem:[%s1398_s1 + $0xd0] sm:$0xff] }
   0x8   :  { %667 = vmatpush.bf16.msra.mxu3 %v1091_v6  ;;  %v1073_v15 = vld [vmem:[%s1398_s1 + $0x60] sm:$0xff]  ;;  %v1072_v19 = vld [vmem:[%s1398_s1 + $0x58] sm:$0xff]  ;;  %v1071_v23 = vld [vmem:[%s1398_s1 + $0x50] sm:$0xff] }
   0x9   :  { %641 = vmatpush.bf16.msra.mxu1 %v1075_v7  ;;  %v1062_v24 = vld [vmem:[%s1398_s1 + $0x8] sm:$0xff]  ;;  %v14_v29 = vld [vmem:[%s1399_s0] sm:$0xff]  ;;  %v1100_v34 = vld [vmem:[%s1398_s1 + $0x138] sm:$0xff] }
   0xa   :  { %629 = vmatpush.bf16.msra.mxu0 %v1066_v8  ;;  %v1078_v25 = vld [vmem:[%s1398_s1 + $0x88] sm:$0xff]  ;;  %v1061_v30 = vld [vmem:[%s1398_s1] sm:$0xff]  ;;  %v168_v33 = vunpack.c.l.b16 %v14_v29  ;;  %v1116_v35 = vld [vmem:[%s1398_s1 + $0x1b8] sm:$0xff]  ;;  %v169_v39 = vunpack.c.h.b16 %v14_v29 }
   0xb   :  { %655 = vmatpush.bf16.msra.mxu2 %v1082_v9  ;;  %v1086_v26 = vld [vmem:[%s1398_s1 + $0xc8] sm:$0xff]  ;;  %v1077_v31 = vld [vmem:[%s1398_s1 + $0x80] sm:$0xff]  ;;  %v1124_v40 = vld [vmem:[%s1398_s1 + $0x1f8] sm:$0xff] }
   0xc   :  { %668 = vmatpush.bf16.msra.mxu3 %v1090_v10  ;;  %v1070_v27 = vld [vmem:[%s1398_s1 + $0x48] sm:$0xff]  ;;  %v1085_v36 = vld [vmem:[%s1398_s1 + $0xc0] sm:$0xff]  ;;  %v1108_v41 = vld [vmem:[%s1398_s1 + $0x178] sm:$0xff]  ;;  %v177_v43 = vpack.c.b16 %v168_v33, %v168_v33  ;;  %v178_v47 = vpack.c.b16 %v169_v39, %v169_v39 }
   0xd   :  { %642 = vmatpush.bf16.msra.mxu1 %v1074_v11  ;;  %v15_v28 = vld [vmem:[%s1399_s0 + $0x8] sm:$0xff]  ;;  %v1069_v37 = vld [vmem:[%s1398_s1 + $0x40] sm:$0xff]  ;;  %v1099_v44 = vld [vmem:[%s1398_s1 + $0x130] sm:$0xff] }
   0xe   :  { %630 = vmatpush.bf16.msra.mxu0 %v1065_v12  ;;  %v170_v32 = vunpack.c.l.b16 %v15_v28  ;;  %v171_v38 = vunpack.c.h.b16 %v15_v28  ;;  %v1115_v45 = vld [vmem:[%s1398_s1 + $0x1b0] sm:$0xff]  ;;  %v1098_v50 = vld [vmem:[%s1398_s1 + $0x128] sm:$0xff]  ;;  %v1097_v54 = vld [vmem:[%s1398_s1 + $0x120] sm:$0xff] }
   0xf   :  { %656 = vmatpush.bf16.msra.mxu2 %v1081_v13  ;;  %v1123_v48 = vld [vmem:[%s1398_s1 + $0x1f0] sm:$0xff]  ;;  %v1114_v51 = vld [vmem:[%s1398_s1 + $0x1a8] sm:$0xff]  ;;  %v1113_v55 = vld [vmem:[%s1398_s1 + $0x1a0] sm:$0xff] }
  0x10   :  { %669 = vmatpush.bf16.msra.mxu3 %v1089_v14  ;;  %v179_v42 = vpack.c.b16 %v170_v32, %v170_v32  ;;  %v180_v46 = vpack.c.b16 %v171_v38, %v171_v38  ;;  %v1107_v49 = vld [vmem:[%s1398_s1 + $0x170] sm:$0xff]  ;;  %v1122_v52 = vld [vmem:[%s1398_s1 + $0x1e8] sm:$0xff]  ;;  %v1121_v56 = vld [vmem:[%s1398_s1 + $0x1e0] sm:$0xff] }
  0x11   :  { %643 = vmatpush.bf16.msra.mxu1 %v1073_v15  ;;  %v1106_v53 = vld [vmem:[%s1398_s1 + $0x168] sm:$0xff]  ;;  %v1105_v57 = vld [vmem:[%s1398_s1 + $0x160] sm:$0xff]  ;;  %v1096_v58 = vld [vmem:[%s1398_s1 + $0x118] sm:$0xff] }
  0x12   :  { %631 = vmatpush.bf16.msra.mxu0 %v1064_v16  ;;  %v1112_v59 = vld [vmem:[%s1398_s1 + $0x198] sm:$0xff]  ;;  %v1095_v62 = vld [vmem:[%s1398_s1 + $0x110] sm:$0xff]  ;;  %v1094_v2 = vld [vmem:[%s1398_s1 + $0x108] sm:$0xff] }
  0x13   :  { %657 = vmatpush.bf16.msra.mxu2 %v1080_v17  ;;  %v1120_v60 = vld [vmem:[%s1398_s1 + $0x1d8] sm:$0xff]  ;;  %v1111_v63 = vld [vmem:[%s1398_s1 + $0x190] sm:$0xff]  ;;  %v1110_v3 = vld [vmem:[%s1398_s1 + $0x188] sm:$0xff] }
  0x14   :  { %670 = vmatpush.bf16.msra.mxu3 %v1088_v18  ;;  %v1104_v61 = vld [vmem:[%s1398_s1 + $0x158] sm:$0xff]  ;;  %v1119_v0 = vld [vmem:[%s1398_s1 + $0x1d0] sm:$0xff]  ;;  %v1118_v6 = vld [vmem:[%s1398_s1 + $0x1c8] sm:$0xff] }
  0x15   :  { %644 = vmatpush.bf16.msra.mxu1 %v1072_v19  ;;  %v1103_v1 = vld [vmem:[%s1398_s1 + $0x150] sm:$0xff]  ;;  %v17_v4 = vld [vmem:[%s1399_s0 + $0x18] sm:$0xff]  ;;  %v1102_v7 = vld [vmem:[%s1398_s1 + $0x148] sm:$0xff] }
  0x16   :  { %632 = vmatpush.bf16.msra.mxu0 %v1063_v20  ;;  %v16_v5 = vld [vmem:[%s1399_s0 + $0x10] sm:$0xff]  ;;  %v174_v8 = vunpack.c.l.b16 %v17_v4  ;;  %v1093_v10 = vld [vmem:[%s1398_s1 + $0x100] sm:$0xff]  ;;  %v1132_v12 = vld [vmem:[%s1398_s1 + $0x238] sm:$0xff]  ;;  %v175_v13 = vunpack.c.h.b16 %v17_v4 }
  0x17   :  { %658 = vmatpush.bf16.msra.mxu2 %v1079_v21  ;;  %v172_v9 = vunpack.c.l.b16 %v16_v5  ;;  %v1109_v11 = vld [vmem:[%s1398_s1 + $0x180] sm:$0xff]  ;;  %v173_v16 = vunpack.c.h.b16 %v16_v5  ;;  %v1131_v19 = vld [vmem:[%s1398_s1 + $0x230] sm:$0xff] }
  0x18   :  { %671 = vmatpush.bf16.msra.mxu3 %v1087_v22  ;;  %v1117_v14 = vld [vmem:[%s1398_s1 + $0x1c0] sm:$0xff]  ;;  %v183_v17 = vpack.c.b16 %v174_v8, %v174_v8  ;;  %v184_v20 = vpack.c.b16 %v175_v13, %v175_v13  ;;  %v1130_v22 = vld [vmem:[%s1398_s1 + $0x228] sm:$0xff] }
  0x19   :  { %645 = vmatpush.bf16.msra.mxu1 %v1071_v23  ;;  %v1101_v15 = vld [vmem:[%s1398_s1 + $0x140] sm:$0xff]  ;;  %v181_v18 = vpack.c.b16 %v172_v9, %v172_v9  ;;  %v182_v21 = vpack.c.b16 %v173_v16, %v173_v16 }
  0x1a   :  { %633 = vmatpush.bf16.msra.mxu0 %v1062_v24  ;;  %v1129_v23 = vld [vmem:[%s1398_s1 + $0x220] sm:$0xff]  ;;  %v1128_v24 = vld [vmem:[%s1398_s1 + $0x218] sm:$0xff] }
  0x1b   :  { %659 = vmatpush.bf16.msra.mxu2 %v1078_v25  ;;  %v1127_v25 = vld [vmem:[%s1398_s1 + $0x210] sm:$0xff]  ;;  %v1125_v29 = vld [vmem:[%s1398_s1 + $0x200] sm:$0xff] }
  0x1c   :  { %672 = vmatpush.bf16.msra.mxu3 %v1086_v26  ;;  %v1126_v26 = vld [vmem:[%s1398_s1 + $0x208] sm:$0xff] }
  0x1d   :  { %646 = vmatpush.bf16.msra.mxu1 %v1070_v27  ;;  %v18_v27 = vld [vmem:[%s1399_s0 + $0x20] sm:$0xf] }
  0x1e   :  { %634 = vmatpush.bf16.msra.mxu0 %v1061_v30  ;;  %v176_v28 = vunpack.c.l.b16 %v18_v27 }
  0x1f   :  { %660 = vmatpush.bf16.msra.mxu2 %v1077_v31 }
  0x20   :  { %673 = vmatpush.bf16.msra.mxu3 %v1085_v36  ;;  %v185_v30 = vpack.c.b16 %v176_v28, %v176_v28 }
  0x21   :  { %647 = vmatpush.bf16.msra.mxu1 %v1069_v37  ;;  %635 = vmatmul.bf16.vlgmr.msra.gmra.mxu0 %v177_v43 }
  0x22   :  { %679 = vmatpush.bf16.msrb.mxu0 %v1100_v34  ;;  %661 = vmatmul.bf16.vlgmr.msra.gmra.mxu2 %v179_v42 }
  0x23   :  { %705 = vmatpush.bf16.msrb.mxu2 %v1116_v35  ;;  %674 = vmatmul.bf16.vlgmr.msra.gmra.mxu3 %v180_v46 }
  0x24   :  { %718 = vmatpush.bf16.msrb.mxu3 %v1124_v40  ;;  %648 = vmatmul.bf16.vlgmr.msra.gmra.mxu1 %v178_v47 }
  0x25   :  { %692 = vmatpush.bf16.msrb.mxu1 %v1108_v41 }
  0x26   :  { %680 = vmatpush.bf16.msrb.mxu0 %v1099_v44 }
  0x27   :  { %706 = vmatpush.bf16.msrb.mxu2 %v1115_v45 }
  0x28   :  { %719 = vmatpush.bf16.msrb.mxu3 %v1123_v48 }
  0x29   :  { %693 = vmatpush.bf16.msrb.mxu1 %v1107_v49 }
  0x2a   :  { %681 = vmatpush.bf16.msrb.mxu0 %v1098_v50 }
  0x2b   :  { %707 = vmatpush.bf16.msrb.mxu2 %v1114_v51 }
  0x2c   :  { %720 = vmatpush.bf16.msrb.mxu3 %v1122_v52 }
  0x2d   :  { %694 = vmatpush.bf16.msrb.mxu1 %v1106_v53 }
  0x2e   :  { %682 = vmatpush.bf16.msrb.mxu0 %v1097_v54 }
  0x2f   :  { %708 = vmatpush.bf16.msrb.mxu2 %v1113_v55 }
  0x30   :  { %721 = vmatpush.bf16.msrb.mxu3 %v1121_v56 }
  0x31   :  { %695 = vmatpush.bf16.msrb.mxu1 %v1105_v57 }
  0x32   :  { %683 = vmatpush.bf16.msrb.mxu0 %v1096_v58 }
  0x33   :  { %709 = vmatpush.bf16.msrb.mxu2 %v1112_v59 }
  0x34   :  { %722 = vmatpush.bf16.msrb.mxu3 %v1120_v60 }
  0x35   :  { %696 = vmatpush.bf16.msrb.mxu1 %v1104_v61 }
  0x36   :  { %684 = vmatpush.bf16.msrb.mxu0 %v1095_v62 }
  0x37   :  { %710 = vmatpush.bf16.msrb.mxu2 %v1111_v63 }
  0x38   :  { %723 = vmatpush.bf16.msrb.mxu3 %v1119_v0 }
  0x39   :  { %697 = vmatpush.bf16.msrb.mxu1 %v1103_v1 }
  0x3a   :  { %685 = vmatpush.bf16.msrb.mxu0 %v1094_v2 }
  0x3b   :  { %711 = vmatpush.bf16.msrb.mxu2 %v1110_v3 }
  0x3c   :  { %724 = vmatpush.bf16.msrb.mxu3 %v1118_v6 }
  0x3d   :  { %698 = vmatpush.bf16.msrb.mxu1 %v1102_v7 }
  0x3e   :  { %686 = vmatpush.bf16.msrb.mxu0 %v1093_v10 }
  0x3f   :  { %712 = vmatpush.bf16.msrb.mxu2 %v1109_v11 }
  0x40   :  { %725 = vmatpush.bf16.msrb.mxu3 %v1117_v14 }
  0x41   :  { %699 = vmatpush.bf16.msrb.mxu1 %v1101_v15  ;;  %687 = vmatmul.bf16.vlgmr.msrb.gmra.mxu0 %v181_v18 }
  0x42   :  { %731 = vmatpush.bf16.msra.mxu0 %v1132_v12  ;;  %713 = vmatmul.bf16.vlgmr.msrb.gmra.mxu2 %v183_v17 }
  0x43   :  { %726 = vmatmul.bf16.vlgmr.msrb.gmra.mxu3 %v184_v20 }
  0x44   :  { %700 = vmatmul.bf16.vlgmr.msrb.gmra.mxu1 %v182_v21 }
  0x46   :  { %732 = vmatpush.bf16.msra.mxu0 %v1131_v19 }
  0x4a   :  { %733 = vmatpush.bf16.msra.mxu0 %v1130_v22 }
  0x4e   :  { %734 = vmatpush.bf16.msra.mxu0 %v1129_v23 }
  0x52   :  { %735 = vmatpush.bf16.msra.mxu0 %v1128_v24 }
  0x56   :  { %736 = vmatpush.bf16.msra.mxu0 %v1127_v25 }
  0x5a   :  { %737 = vmatpush.bf16.msra.mxu0 %v1126_v26 }
  0x5e   :  { %738 = vmatpush.bf16.msra.mxu0 %v1125_v29 }
  0x61   :  { %739 = vmatmul.bf16.vlgmr.msra.gmra.mxu0 %v185_v30 }
  0x9e   :  { %v636_v31 = vpop.f32.mrf.mxu0 }
  0xa1   :  { %v649_v32 = vpop.f32.mrf.mxu1 }
  0xa2   :  { %v650_v41 = vadd.f32 %v649_v32, %v636_v31 }
  0xa5   :  { %v662_v33 = vpop.f32.mrf.mxu2 }
  0xa6   :  { %v675_v34 = vpop.f32.mrf.mxu3  ;;  %v638_v35 = vpop.f32.mrf.mxu0  ;;  %v663_v43 = vadd.f32 %v662_v33, %v650_v41 }
  0xa8   :  { %v676_v47 = vadd.f32 %v675_v34, %v663_v43 }
  0xa9   :  { %v651_v36 = vpop.f32.mrf.mxu1 }
  0xad   :  { %v664_v37 = vpop.f32.mrf.mxu2 }
  0xae   :  { %v677_v38 = vpop.f32.mrf.mxu3 }
  0xbe   :  { %v688_v39 = vpop.f32.mrf.mxu0 }
  0xbf   :  { %v689_v49 = vadd.f32 %v688_v39, %v676_v47 }
  0xc1   :  { %v701_v40 = vpop.f32.mrf.mxu1 }
  0xc2   :  { %v702_v51 = vadd.f32 %v701_v40, %v689_v49 }
  0xc5   :  { %v714_v42 = vpop.f32.mrf.mxu2 }
  0xc6   :  { %v727_v44 = vpop.f32.mrf.mxu3  ;;  %v690_v45 = vpop.f32.mrf.mxu0  ;;  %v715_v52 = vadd.f32 %v714_v42, %v702_v51 }
  0xc8   :  { %v728_v53 = vadd.f32 %v727_v44, %v715_v52 }
  0xc9   :  { %v703_v46 = vpop.f32.mrf.mxu1 }
  0xcd   :  { %v716_v48 = vpop.f32.mrf.mxu2 }
  0xce   :  { %v729_v50 = vpop.f32.mrf.mxu3 }
  0xde   :  { %v740_v54 = vpop.f32.mrf.mxu0 }
  0xdf   :  { %v741_v55 = vadd.f32 %v740_v54, %v728_v53 }
  0xe1   :  { %v744_v56 = vrot.slane %v741_v55, 4  ;;  %v751_v57 = vmul.f32 %v741_v55, %v741_v55  ;;  %v759_v58 = vpack.c.bf16 %v741_v55, %v741_v55 }
  0xe3   :  { %v745_v59 = vadd.f32 %v744_v56, %v741_v55  ;;  %v752_v60 = vrot.slane %v751_v57, 4  ;;  %760 = vst [vmem:[%s1400_s2] sm:$0xf] %v759_v58 }
  0xe5   :  { %v746_v61 = vrot.slane %v745_v59, 2  ;;  %v753_v62 = vadd.f32 %v752_v60, %v751_v57 }
  0xe6   :  { %v742_v63 = vpop.f32.mrf.mxu0 }
  0xe7   :  { %v747_v0 = vadd.f32 %v746_v61, %v745_v59  ;;  %v754_v1 = vrot.slane %v753_v62, 2 }
  0xe9   :  { %v748_v2 = vrot.slane %v747_v0, 1  ;;  %v755_v3 = vadd.f32 %v754_v1, %v753_v62 }
  0xeb   :  { %v749_v4 = vadd.f32 %v748_v2, %v747_v0  ;;  %v756_v5 = vrot.slane %v755_v3, 1 }
  0xed   :  { %750 = vst [vmem:[%s1401_s3] sm:$0x1] %v749_v4  ;;  %v757_v6 = vadd.f32 %v756_v5, %v755_v3 }
  0xef   :  { %758 = vst [vmem:[%s1402_s4] sm:$0x1] %v757_v6 }

// kernel: _lambda_.17
= control target key start
LH: loop header
LB: loop body
LE: loop exit
PB: predicated region body
PF: predicated region fallthrough
CT: control target
= control target key end

     0   :  { %vm365_vm0 = vcmask 523264   ;;  %vm504_vm1 = vcmask 519168   ;;  %vm480_vm2 = vcmask 516096   ;;  %s982_s1 = inlined_call_operand.vmem [shape: bf16[576,64], index: 1, kind: input, shape index: {}]   ;;  %s983_s0 = inlined_call_operand.vmem [shape: bf16[32,576], index: 0, kind: input, shape index: {}]   ;;  %s984_s2 = inlined_call_operand.vmem [shape: bf16[32,64], index: 2, kind: output, shape index: {0}]   ;;  %s985_s3 = inlined_call_operand.vmem [shape: f32[1,64], index: 3, kind: output, shape index: {1}]   ;;  %s986_s4 = inlined_call_operand.vmem [shape: f32[1,64], index: 4, kind: output, shape index: {2}]  }
   0x1   :  { %v724_v0 = vld [vmem:[%s982_s1 + $0x38] sm:$0xff]  ;;  %v723_v4 = vld [vmem:[%s982_s1 + $0x30] sm:$0xff]  ;;  %v722_v8 = vld [vmem:[%s982_s1 + $0x28] sm:$0xff] }
   0x2   :  { %v732_v1 = vld [vmem:[%s982_s1 + $0x78] sm:$0xff]  ;;  %372 = vmatpush.bf16.msra.mxu0 %v724_v0  ;;  %v731_v5 = vld [vmem:[%s982_s1 + $0x70] sm:$0xff]  ;;  %v730_v9 = vld [vmem:[%s982_s1 + $0x68] sm:$0xff] }
   0x3   :  { %v740_v2 = vld [vmem:[%s982_s1 + $0xb8] sm:$0xff]  ;;  %391 = vmatpush.bf16.msra.mxu1 %v732_v1  ;;  %v739_v6 = vld [vmem:[%s982_s1 + $0xb0] sm:$0xff]  ;;  %v738_v10 = vld [vmem:[%s982_s1 + $0xa8] sm:$0xff] }
   0x4   :  { %v748_v3 = vld [vmem:[%s982_s1 + $0xf8] sm:$0xff]  ;;  %410 = vmatpush.bf16.msra.mxu2 %v740_v2  ;;  %v747_v7 = vld [vmem:[%s982_s1 + $0xf0] sm:$0xff]  ;;  %v746_v11 = vld [vmem:[%s982_s1 + $0xe8] sm:$0xff] }
   0x5   :  { %429 = vmatpush.bf16.msra.mxu3 %v748_v3  ;;  %v721_v12 = vld [vmem:[%s982_s1 + $0x20] sm:$0xff]  ;;  %v720_v16 = vld [vmem:[%s982_s1 + $0x18] sm:$0xff]  ;;  %v719_v20 = vld [vmem:[%s982_s1 + $0x10] sm:$0xff] }
   0x6   :  { %373 = vmatpush.bf16.msra.mxu0 %v723_v4  ;;  %v729_v13 = vld [vmem:[%s982_s1 + $0x60] sm:$0xff]  ;;  %v728_v17 = vld [vmem:[%s982_s1 + $0x58] sm:$0xff]  ;;  %v727_v21 = vld [vmem:[%s982_s1 + $0x50] sm:$0xff] }
   0x7   :  { %392 = vmatpush.bf16.msra.mxu1 %v731_v5  ;;  %v737_v14 = vld [vmem:[%s982_s1 + $0xa0] sm:$0xff]  ;;  %v736_v18 = vld [vmem:[%s982_s1 + $0x98] sm:$0xff]  ;;  %v735_v22 = vld [vmem:[%s982_s1 + $0x90] sm:$0xff] }
   0x8   :  { %411 = vmatpush.bf16.msra.mxu2 %v739_v6  ;;  %v745_v15 = vld [vmem:[%s982_s1 + $0xe0] sm:$0xff]  ;;  %v744_v19 = vld [vmem:[%s982_s1 + $0xd8] sm:$0xff]  ;;  %v743_v23 = vld [vmem:[%s982_s1 + $0xd0] sm:$0xff] }
   0x9   :  { %430 = vmatpush.bf16.msra.mxu3 %v747_v7  ;;  %v718_v24 = vld [vmem:[%s982_s1 + $0x8] sm:$0xff]  ;;  %v717_v28 = vld [vmem:[%s982_s1] sm:$0xff]  ;;  %v709_v33 = vld [vmem:[%s983_s0 + $0x10] sm:$0xf0] }
   0xa   :  { %374 = vmatpush.bf16.msra.mxu0 %v722_v8  ;;  %v726_v25 = vld [vmem:[%s982_s1 + $0x48] sm:$0xff]  ;;  %v725_v29 = vld [vmem:[%s982_s1 + $0x40] sm:$0xff]  ;;  %v525_v35 = vld [vmem:[%s983_s0 + $0x14] sm:$0xf0] }
   0xb   :  { %393 = vmatpush.bf16.msra.mxu1 %v730_v9  ;;  %v734_v26 = vld [vmem:[%s982_s1 + $0x88] sm:$0xff]  ;;  %v733_v30 = vld [vmem:[%s982_s1 + $0x80] sm:$0xff]  ;;  %v710_v37 = vld [vmem:[%s983_s0 + $0x18] sm:$0xf0] }
   0xc   :  { %412 = vmatpush.bf16.msra.mxu2 %v738_v10  ;;  %v742_v27 = vld [vmem:[%s982_s1 + $0xc8] sm:$0xff]  ;;  %v741_v31 = vld [vmem:[%s982_s1 + $0xc0] sm:$0xff]  ;;  %v752_v40 = vld [vmem:[%s982_s1 + $0x118] sm:$0xff] }
   0xd   :  { %431 = vmatpush.bf16.msra.mxu3 %v746_v11  ;;  %v523_v32 = vld [vmem:[%s983_s0] sm:$0xf]  ;;  %v707_v34 = vld [vmem:[%s983_s0 + $0x4] sm:$0xf]  ;;  %v531_v36 = vld [vmem:[%s983_s0 + $0x8] sm:$0xf] }
   0xe   :  { %375 = vmatpush.bf16.msra.mxu0 %v721_v12  ;;  %v708_v38 = vld [vmem:[%s983_s0 + $0xc] sm:$0xf]  ;;  %v533_v39 = vld [vmem:[%s983_s0 + $0x1c] sm:$0xf0]  ;;  %v524_v41 = vor.u32 %v709_v33, %v523_v32  ;;  %v528_v42 = vor.u32 %v707_v34, %v525_v35  ;;  %v532_v43 = vor.u32 %v710_v37, %v531_v36  ;;  %v751_v45 = vld [vmem:[%s982_s1 + $0x110] sm:$0xff] }
   0xf   :  { %394 = vmatpush.bf16.msra.mxu1 %v729_v13  ;;  %v536_v44 = vor.u32 %v708_v38, %v533_v39  ;;  %v750_v46 = vld [vmem:[%s982_s1 + $0x108] sm:$0xff]  ;;  %v749_v47 = vld [vmem:[%s982_s1 + $0x100] sm:$0xff]  ;;  %v714_v49 = vld [vmem:[%s983_s0 + $0x38] sm:$0xf0] }
  0x10   :  { %413 = vmatpush.bf16.msra.mxu2 %v737_v14  ;;  %v543_v48 = vld [vmem:[%s983_s0 + $0x28] sm:$0xf]  ;;  %v712_v50 = vld [vmem:[%s983_s0 + $0x2c] sm:$0xf]  ;;  %v545_v51 = vld [vmem:[%s983_s0 + $0x3c] sm:$0xf0] }
  0x11   :  { %432 = vmatpush.bf16.msra.mxu3 %v745_v15  ;;  %v551_v52 = vld [vmem:[%s983_s0 + $0x30] sm:$0xf]  ;;  %v715_v53 = vld [vmem:[%s983_s0 + $0x40] sm:$0xf0]  ;;  %v713_v54 = vld [vmem:[%s983_s0 + $0x34] sm:$0xf]  ;;  %v544_v56 = vor.u32 %v714_v49, %v543_v48  ;;  %v548_v57 = vor.u32 %v712_v50, %v545_v51 }
  0x12   :  { %376 = vmatpush.bf16.msra.mxu0 %v720_v16  ;;  %v553_v55 = vld [vmem:[%s983_s0 + $0x44] sm:$0xf0]  ;;  %v552_v58 = vor.u32 %v715_v53, %v551_v52  ;;  %v539_v60 = vld [vmem:[%s983_s0 + $0x10] sm:$0xf]  ;;  %v711_v61 = vld [vmem:[%s983_s0 + $0x20] sm:$0xf0] }
  0x13   :  { %395 = vmatpush.bf16.msra.mxu1 %v728_v17  ;;  %v556_v59 = vor.u32 %v713_v54, %v553_v55  ;;  %v559_v62 = vld [vmem:[%s983_s0 + $0x38] sm:$0xf]  ;;  %v716_v63 = vld [vmem:[%s983_s0 + $0x48] sm:$0xf0]  ;;  %v540_v0 = vor.u32 %v711_v61, %v539_v60 }
  0x14   :  { %414 = vmatpush.bf16.msra.mxu2 %v736_v18  ;;  %v560_v1 = vor.u32 %v716_v63, %v559_v62 }
  0x15   :  { %433 = vmatpush.bf16.msra.mxu3 %v744_v19 }
  0x16   :  { %377 = vmatpush.bf16.msra.mxu0 %v719_v20 }
  0x17   :  { %396 = vmatpush.bf16.msra.mxu1 %v727_v21 }
  0x18   :  { %415 = vmatpush.bf16.msra.mxu2 %v735_v22 }
  0x19   :  { %434 = vmatpush.bf16.msra.mxu3 %v743_v23 }
  0x1a   :  { %378 = vmatpush.bf16.msra.mxu0 %v718_v24 }
  0x1b   :  { %397 = vmatpush.bf16.msra.mxu1 %v726_v25 }
  0x1c   :  { %416 = vmatpush.bf16.msra.mxu2 %v734_v26 }
  0x1d   :  { %435 = vmatpush.bf16.msra.mxu3 %v742_v27 }
  0x1e   :  { %379 = vmatpush.bf16.msra.mxu0 %v717_v28 }
  0x1f   :  { %398 = vmatpush.bf16.msra.mxu1 %v725_v29 }
  0x20   :  { %417 = vmatpush.bf16.msra.mxu2 %v733_v30 }
  0x21   :  { %436 = vmatpush.bf16.msra.mxu3 %v741_v31  ;;  %380 = vmatmul.bf16.vlgmr.msra.gmra.mxu0 %v524_v41 }
  0x22   :  { %452 = vmatpush.bf16.msrb.mxu0 %v752_v40  ;;  %399 = vmatmul.bf16.vlgmr.msra.gmra.mxu1 %v528_v42 }
  0x23   :  { %753 = vmatpush.bf16.msrb.mxu1 %v752_v40  ;;  %418 = vmatmul.bf16.vlgmr.msra.gmra.mxu2 %v532_v43 }
  0x24   :  { %437 = vmatmul.bf16.vlgmr.msra.gmra.mxu3 %v536_v44 }
  0x26   :  { %453 = vmatpush.bf16.msrb.mxu0 %v751_v45 }
  0x27   :  { %754 = vmatpush.bf16.msrb.mxu1 %v751_v45 }
  0x2a   :  { %454 = vmatpush.bf16.msrb.mxu0 %v750_v46 }
  0x2b   :  { %755 = vmatpush.bf16.msrb.mxu1 %v750_v46 }
  0x2e   :  { %455 = vmatpush.bf16.msrb.mxu0 %v749_v47 }
  0x2f   :  { %756 = vmatpush.bf16.msrb.mxu1 %v749_v47 }
  0x31   :  { %385 = vmatmul.bf16.gmra.mxu0 %v544_v56 }
  0x32   :  { %404 = vmatmul.bf16.gmra.mxu1 %v548_v57 }
  0x33   :  { %423 = vmatmul.bf16.gmra.mxu2 %v552_v58 }
  0x34   :  { %442 = vmatmul.bf16.gmra.mxu3 %v556_v59 }
  0x41   :  { %705 = vmatmul.msk.bf16.vlgmr.msrb.gmra.mxu0 %vm365_vm0, %v540_v0 }
  0x42   :  { %706 = vmatmul.msk.bf16.vlgmr.msrb.gmra.mxu1 %vm365_vm0, %v560_v1 }
  0x9e   :  { %v381_v2 = vpop.f32.mrf.mxu0 }
  0x9f   :  { %v400_v3 = vpop.f32.mrf.mxu1 }
  0xa0   :  { %v401_v15 = vadd.f32 %v400_v3, %v381_v2 }
  0xa6   :  { %v419_v4 = vpop.f32.mrf.mxu2  ;;  %v383_v6 = vpop.f32.mrf.mxu0 }
  0xa7   :  { %v438_v5 = vpop.f32.mrf.mxu3  ;;  %v402_v7 = vpop.f32.mrf.mxu1  ;;  %v420_v18 = vadd.f32 %v419_v4, %v401_v15 }
  0xa8   :  { %v403_v25 = vadd.f32 %v402_v7, %v383_v6 }
  0xa9   :  { %v439_v20 = vadd.f32 %v438_v5, %v420_v18 }
  0xae   :  { %v421_v8 = vpop.f32.mrf.mxu2  ;;  %v386_v10 = vpop.f32.mrf.mxu0 }
  0xaf   :  { %v440_v9 = vpop.f32.mrf.mxu3  ;;  %v405_v11 = vpop.f32.mrf.mxu1  ;;  %v422_v29 = vadd.f32 %v421_v8, %v403_v25 }
  0xb0   :  { %v406_v16 = vadd.f32 %v405_v11, %v386_v10 }
  0xb1   :  { %v441_v34 = vadd.f32 %v440_v9, %v422_v29 }
  0xb6   :  { %v424_v12 = vpop.f32.mrf.mxu2  ;;  %v388_v13 = vpop.f32.mrf.mxu0 }
  0xb7   :  { %v407_v14 = vpop.f32.mrf.mxu1  ;;  %v443_v17 = vpop.f32.mrf.mxu3  ;;  %v425_v19 = vadd.f32 %v424_v12, %v406_v16 }
  0xb8   :  { %v408_v26 = vadd.f32 %v407_v14, %v388_v13 }
  0xb9   :  { %v444_v21 = vadd.f32 %v443_v17, %v425_v19 }
  0xbe   :  { %v426_v22 = vpop.f32.mrf.mxu2  ;;  %v457_v23 = vpop.f32.mrf.mxu0 }
  0xbf   :  { %v462_v24 = vpop.f32.mrf.mxu1  ;;  %v458_v27 = vadd.f32 %v457_v23, %v439_v20  ;;  %v427_v30 = vadd.f32 %v426_v22, %v408_v26  ;;  %v445_v32 = vpop.f32.mrf.mxu3 }
  0xc0   :  { %v463_v28 = vadd.f32 %v462_v24, %v444_v21 }
  0xc1   :  { %v500_v31 = vpack.c.bf16 %v458_v27, %v458_v27  ;;  %v446_v35 = vadd.f32 %v445_v32, %v427_v30  ;;  %v482_v38 = vmul.f32 %v458_v27, %v458_v27  ;;  %v467_v41 = vsel %vm365_vm0, %v458_v27, 0.0 }
  0xc2   :  { %v502_v33 = vpack.c.bf16 %v463_v28, %v463_v28  ;;  %v484_v42 = vmul.f32 %v463_v28, %v463_v28  ;;  %v470_v49 = vsel %vm365_vm0, %v463_v28, 0.0 }
  0xc3   :  { %505 = vst.msk [vmem:[%s984_s2] sm:$0xf] %vm504_vm1, %v500_v31  ;;  %v486_v48 = vsel %vm365_vm0, %v482_v38, 0.0 }
  0xc4   :  { %507 = vst.msk [vmem:[%s984_s2 + $0x8] sm:$0xf] %vm504_vm1, %v502_v33  ;;  %v489_v54 = vsel %vm365_vm0, %v484_v42, 0.0 }
  0xc6   :  { %v459_v36 = vpop.f32.mrf.mxu0 }
  0xc7   :  { %v464_v37 = vpop.f32.mrf.mxu1  ;;  %v460_v39 = vadd.f32 %v459_v36, %v441_v34 }
  0xc8   :  { %v465_v40 = vadd.f32 %v464_v37, %v446_v35 }
  0xc9   :  { %v468_v43 = vsel %vm365_vm0, %v460_v39, 0.0  ;;  %v483_v44 = vmul.f32 %v460_v39, %v460_v39  ;;  %v501_v45 = vpack.c.bf16 %v460_v39, %v460_v39 }
  0xca   :  { %v469_v46 = vadd.f32 %v468_v43, %v467_v41  ;;  %v503_v47 = vpack.c.bf16 %v465_v40, %v465_v40  ;;  %v485_v51 = vmul.f32 %v465_v40, %v465_v40  ;;  %v472_v55 = vsel %vm365_vm0, %v465_v40, 0.0 }
  0xcb   :  { %v487_v50 = vsel %vm365_vm0, %v483_v44, 0.0  ;;  %506 = vst.msk [vmem:[%s984_s2 + $0x4] sm:$0xf] %vm504_vm1, %v501_v45 }
  0xcc   :  { %v488_v52 = vadd.f32 %v487_v50, %v486_v48  ;;  %v471_v53 = vadd.f32 %v470_v49, %v469_v46  ;;  %508 = vst.msk [vmem:[%s984_s2 + $0xc] sm:$0xf] %vm504_vm1, %v503_v47  ;;  %v491_v58 = vsel %vm365_vm0, %v485_v51, 0.0 }
  0xce   :  { %v473_v56 = vadd.f32 %v472_v55, %v471_v53  ;;  %v490_v57 = vadd.f32 %v489_v54, %v488_v52 }
  0xd0   :  { %v474_v59 = vrot.slane %v473_v56, 4  ;;  %v492_v60 = vadd.f32 %v491_v58, %v490_v57 }
  0xd2   :  { %v475_v61 = vadd.f32 %v474_v59, %v473_v56  ;;  %v493_v62 = vrot.slane %v492_v60, 4 }
  0xd4   :  { %v476_v63 = vrot.slane %v475_v61, 2  ;;  %v494_v0 = vadd.f32 %v493_v62, %v492_v60 }
  0xd6   :  { %v477_v1 = vadd.f32 %v476_v63, %v475_v61  ;;  %v495_v2 = vrot.slane %v494_v0, 2 }
  0xd8   :  { %v478_v3 = vrot.slane %v477_v1, 1  ;;  %v496_v4 = vadd.f32 %v495_v2, %v494_v0 }
  0xda   :  { %v479_v5 = vadd.f32 %v478_v3, %v477_v1  ;;  %v497_v6 = vrot.slane %v496_v4, 1 }
  0xdc   :  { %481 = vst.msk [vmem:[%s985_s3] sm:$0x1] %vm480_vm2, %v479_v5  ;;  %v498_v7 = vadd.f32 %v497_v6, %v496_v4 }
  0xde   :  { %499 = vst.msk [vmem:[%s986_s4] sm:$0x1] %vm480_vm2, %v498_v7 }

// kernel: _lambda_.18
= control target key start
LH: loop header
LB: loop body
LE: loop exit
PB: predicated region body
PF: predicated region fallthrough
CT: control target
= control target key end

     0   :  { %vm311_vm0 = vcmask 261120   ;;  %vm592_vm1 = vcmask 257024   ;;  %vm520_vm2 = vcmask 253952   ;;  %s1206_s1 = inlined_call_operand.vmem [shape: bf16[288,32], index: 1, kind: input, shape index: {}]   ;;  %s1207_s0 = inlined_call_operand.vmem [shape: bf16[128,288], index: 0, kind: input, shape index: {}]   ;;  %s1208_s2 = inlined_call_operand.vmem [shape: bf16[128,32], index: 2, kind: output, shape index: {0}]   ;;  %s1209_s3 = inlined_call_operand.vmem [shape: f32[1,32], index: 3, kind: output, shape index: {1}]   ;;  %s1210_s4 = inlined_call_operand.vmem [shape: f32[1,32], index: 4, kind: output, shape index: {2}]  }
   0x1   :  { %v828_v0 = vld [vmem:[%s1206_s1 + $0x38] sm:$0xff]  ;;  %v838_v2 = vld [vmem:[%s1206_s1 + $0x88] sm:$0xff]  ;;  %v827_v3 = vld [vmem:[%s1206_s1 + $0x30] sm:$0xff] }
   0x2   :  { %v836_v1 = vld [vmem:[%s1206_s1 + $0x78] sm:$0xff]  ;;  %336 = vmatpush.bf16.msra.mxu0 %v828_v0  ;;  %839 = vmatpush.bf16.msra.mxu3 %v828_v0  ;;  %v835_v4 = vld [vmem:[%s1206_s1 + $0x70] sm:$0xff]  ;;  %v837_v5 = vld [vmem:[%s1206_s1 + $0x80] sm:$0xff] }
   0x3   :  { %385 = vmatpush.bf16.msra.mxu1 %v836_v1  ;;  %440 = vmatpush.bf16.msra.mxu2 %v838_v2  ;;  %v631_v6 = vld [vmem:[%s1207_s0 + $0x8] sm:$0xf]  ;;  %v799_v7 = vld [vmem:[%s1207_s0 + $0x10] sm:$0xf0]  ;;  %v825_v11 = vld [vmem:[%s1206_s1 + $0x20] sm:$0xff] }
   0x4   :  { %v632_v8 = vor.u32 %v799_v7, %v631_v6  ;;  %v826_v9 = vld [vmem:[%s1206_s1 + $0x28] sm:$0xff]  ;;  %v833_v12 = vld [vmem:[%s1206_s1 + $0x60] sm:$0xff]  ;;  %v824_v13 = vld [vmem:[%s1206_s1 + $0x18] sm:$0xff] }
   0x5   :  { %v834_v10 = vld [vmem:[%s1206_s1 + $0x68] sm:$0xff]  ;;  %v832_v14 = vld [vmem:[%s1206_s1 + $0x58] sm:$0xff]  ;;  %v823_v15 = vld [vmem:[%s1206_s1 + $0x10] sm:$0xff] }
   0x6   :  { %337 = vmatpush.bf16.msra.mxu0 %v827_v3  ;;  %840 = vmatpush.bf16.msra.mxu3 %v827_v3  ;;  %v831_v16 = vld [vmem:[%s1206_s1 + $0x50] sm:$0xff]  ;;  %v643_v17 = vld [vmem:[%s1207_s0 + $0x20] sm:$0xf]  ;;  %v802_v18 = vld [vmem:[%s1207_s0 + $0x28] sm:$0xf0] }
   0x7   :  { %386 = vmatpush.bf16.msra.mxu1 %v835_v4  ;;  %441 = vmatpush.bf16.msra.mxu2 %v837_v5  ;;  %v644_v19 = vor.u32 %v802_v18, %v643_v17  ;;  %v822_v20 = vld [vmem:[%s1206_s1 + $0x8] sm:$0xff]  ;;  %v821_v22 = vld [vmem:[%s1206_s1] sm:$0xff]  ;;  %v695_v26 = vld [vmem:[%s1207_s0 + $0x90] sm:$0xf] }
   0x8   :  { %v830_v21 = vld [vmem:[%s1206_s1 + $0x48] sm:$0xff]  ;;  %v829_v23 = vld [vmem:[%s1206_s1 + $0x40] sm:$0xff]  ;;  %v816_v27 = vld [vmem:[%s1207_s0 + $0x98] sm:$0xf0] }
   0x9   :  { %v623_v24 = vld [vmem:[%s1207_s0] sm:$0xf]  ;;  %v798_v25 = vld [vmem:[%s1207_s0 + $0x8] sm:$0xf0]  ;;  %v797_v28 = vld [vmem:[%s1207_s0 + $0x4] sm:$0xf]  ;;  %v696_v31 = vor.u32 %v816_v27, %v695_v26 }
   0xa   :  { %789 = vmatmul.msk.bf16.vlgmr.msra.gmra.mxu2 %vm311_vm0, %v632_v8  ;;  %338 = vmatpush.bf16.msra.mxu0 %v826_v9  ;;  %v625_v29 = vld [vmem:[%s1207_s0 + $0xc] sm:$0xf0]  ;;  %v624_v30 = vor.u32 %v798_v25, %v623_v24  ;;  %v655_v33 = vld [vmem:[%s1207_s0 + $0x38] sm:$0xf]  ;;  %v805_v34 = vld [vmem:[%s1207_s0 + $0x40] sm:$0xf0] }
   0xb   :  { %841 = vmatpush.bf16.msra.mxu3 %v826_v9  ;;  %387 = vmatpush.bf16.msra.mxu1 %v834_v10  ;;  %v628_v32 = vor.u32 %v797_v28, %v625_v29  ;;  %v656_v35 = vor.u32 %v805_v34, %v655_v33  ;;  %v635_v36 = vld [vmem:[%s1207_s0 + $0x18] sm:$0xf]  ;;  %v801_v37 = vld [vmem:[%s1207_s0 + $0x20] sm:$0xf0]  ;;  %v707_v38 = vld [vmem:[%s1207_s0 + $0xa8] sm:$0xf] }
   0xc   :  { %v819_v39 = vld [vmem:[%s1207_s0 + $0xb0] sm:$0xf0]  ;;  %v800_v40 = vld [vmem:[%s1207_s0 + $0x1c] sm:$0xf]  ;;  %v637_v41 = vld [vmem:[%s1207_s0 + $0x24] sm:$0xf0]  ;;  %v636_v42 = vor.u32 %v801_v37, %v635_v36 }
   0xd   :  { %v708_v43 = vor.u32 %v819_v39, %v707_v38  ;;  %v640_v44 = vor.u32 %v800_v40, %v637_v41  ;;  %v667_v45 = vld [vmem:[%s1207_s0 + $0x50] sm:$0xf]  ;;  %v808_v46 = vld [vmem:[%s1207_s0 + $0x58] sm:$0xf0]  ;;  %v803_v50 = vld [vmem:[%s1207_s0 + $0x34] sm:$0xf] }
   0xe   :  { %339 = vmatpush.bf16.msra.mxu0 %v825_v11  ;;  %v668_v47 = vor.u32 %v808_v46, %v667_v45  ;;  %v647_v48 = vld [vmem:[%s1207_s0 + $0x30] sm:$0xf]  ;;  %v804_v49 = vld [vmem:[%s1207_s0 + $0x38] sm:$0xf0]  ;;  %v649_v51 = vld [vmem:[%s1207_s0 + $0x3c] sm:$0xf0] }
   0xf   :  { %842 = vmatpush.bf16.msra.mxu3 %v825_v11  ;;  %388 = vmatpush.bf16.msra.mxu1 %v833_v12  ;;  %v815_v52 = vld [vmem:[%s1207_s0 + $0x94] sm:$0xf]  ;;  %v697_v53 = vld [vmem:[%s1207_s0 + $0x9c] sm:$0xf0]  ;;  %v648_v54 = vor.u32 %v804_v49, %v647_v48  ;;  %v652_v55 = vor.u32 %v803_v50, %v649_v51  ;;  %v679_v57 = vld [vmem:[%s1207_s0 + $0x68] sm:$0xf] }
  0x10   :  { %v700_v56 = vor.u32 %v815_v52, %v697_v53  ;;  %v811_v58 = vld [vmem:[%s1207_s0 + $0x70] sm:$0xf0]  ;;  %v659_v60 = vld [vmem:[%s1207_s0 + $0x48] sm:$0xf]  ;;  %v806_v62 = vld [vmem:[%s1207_s0 + $0x4c] sm:$0xf] }
  0x11   :  { %v680_v59 = vor.u32 %v811_v58, %v679_v57  ;;  %v807_v61 = vld [vmem:[%s1207_s0 + $0x50] sm:$0xf0]  ;;  %v661_v63 = vld [vmem:[%s1207_s0 + $0x54] sm:$0xf0]  ;;  %v818_v0 = vld [vmem:[%s1207_s0 + $0xac] sm:$0xf] }
  0x12   :  { %340 = vmatpush.bf16.msra.mxu0 %v824_v13  ;;  %v660_v2 = vor.u32 %v807_v61, %v659_v60  ;;  %v664_v3 = vor.u32 %v806_v62, %v661_v63  ;;  %v691_v5 = vld [vmem:[%s1207_s0 + $0x80] sm:$0xf]  ;;  %v814_v6 = vld [vmem:[%s1207_s0 + $0x88] sm:$0xf0]  ;;  %v673_v11 = vld [vmem:[%s1207_s0 + $0x6c] sm:$0xf0] }
  0x13   :  { %843 = vmatpush.bf16.msra.mxu3 %v824_v13  ;;  %389 = vmatpush.bf16.msra.mxu1 %v832_v14  ;;  %v692_v7 = vor.u32 %v814_v6, %v691_v5  ;;  %v671_v8 = vld [vmem:[%s1207_s0 + $0x60] sm:$0xf]  ;;  %v810_v9 = vld [vmem:[%s1207_s0 + $0x68] sm:$0xf0]  ;;  %v683_v17 = vld [vmem:[%s1207_s0 + $0x78] sm:$0xf] }
  0x14   :  { %v813_v18 = vld [vmem:[%s1207_s0 + $0x80] sm:$0xf0]  ;;  %v820_v24 = vld [vmem:[%s1207_s0 + $0xb8] sm:$0xf0] }
  0x16   :  { %341 = vmatpush.bf16.msra.mxu0 %v823_v15 }
  0x17   :  { %844 = vmatpush.bf16.msra.mxu3 %v823_v15  ;;  %390 = vmatpush.bf16.msra.mxu1 %v831_v16  ;;  %v817_v15 = vld [vmem:[%s1207_s0 + $0xa0] sm:$0xf0] }
  0x1a   :  { %790 = vmatmul.msk.bf16.gmra.mxu2 %vm311_vm0, %v644_v19  ;;  %342 = vmatpush.bf16.msra.mxu0 %v822_v20  ;;  %v812_v19 = vld [vmem:[%s1207_s0 + $0x7c] sm:$0xf] }
  0x1b   :  { %845 = vmatpush.bf16.msra.mxu3 %v822_v20  ;;  %391 = vmatpush.bf16.msra.mxu1 %v830_v21  ;;  %v685_v20 = vld [vmem:[%s1207_s0 + $0x84] sm:$0xf0] }
  0x1e   :  { %343 = vmatpush.bf16.msra.mxu0 %v821_v22 }
  0x1f   :  { %846 = vmatpush.bf16.msra.mxu3 %v821_v22  ;;  %392 = vmatpush.bf16.msra.mxu1 %v829_v23  ;;  %v688_v22 = vor.u32 %v812_v19, %v685_v20 }
  0x21   :  { %344 = vmatmul.bf16.vlgmr.msra.gmra.mxu0 %v624_v30 }
  0x22   :  { %374 = vmatmul.bf16.vlgmr.msra.gmra.mxu3 %v696_v31  ;;  %393 = vmatmul.bf16.vlgmr.msra.gmra.mxu1 %v628_v32 }
  0x23   :  { %847 = vmatpush.bf16.msrb.mxu3 %v836_v1  ;;  %v709_v1 = vld [vmem:[%s1207_s0 + $0xb4] sm:$0xf0] }
  0x27   :  { %848 = vmatpush.bf16.msrb.mxu3 %v835_v4  ;;  %v712_v4 = vor.u32 %v818_v0, %v709_v1 }
  0x2a   :  { %791 = vmatmul.msk.bf16.gmra.mxu2 %vm311_vm0, %v656_v35 }
  0x2b   :  { %849 = vmatpush.bf16.msrb.mxu3 %v834_v10  ;;  %v809_v10 = vld [vmem:[%s1207_s0 + $0x64] sm:$0xf] }
  0x2c   :  { %v676_v13 = vor.u32 %v809_v10, %v673_v11 }
  0x2f   :  { %850 = vmatpush.bf16.msrb.mxu3 %v833_v12  ;;  %v672_v12 = vor.u32 %v810_v9, %v671_v8 }
  0x31   :  { %349 = vmatmul.bf16.gmra.mxu0 %v636_v42 }
  0x32   :  { %379 = vmatmul.bf16.gmra.mxu3 %v708_v43  ;;  %398 = vmatmul.bf16.gmra.mxu1 %v640_v44 }
  0x33   :  { %851 = vmatpush.bf16.msrb.mxu3 %v832_v14  ;;  %v703_v14 = vld [vmem:[%s1207_s0 + $0x98] sm:$0xf] }
  0x37   :  { %852 = vmatpush.bf16.msrb.mxu3 %v831_v16  ;;  %v704_v16 = vor.u32 %v817_v15, %v703_v14 }
  0x3a   :  { %792 = vmatmul.msk.bf16.gmra.mxu2 %vm311_vm0, %v668_v47 }
  0x3b   :  { %853 = vmatpush.bf16.msrb.mxu3 %v830_v21  ;;  %v684_v21 = vor.u32 %v813_v18, %v683_v17 }
  0x3f   :  { %854 = vmatpush.bf16.msrb.mxu3 %v829_v23  ;;  %v715_v23 = vld [vmem:[%s1207_s0 + $0xb0] sm:$0xf] }
  0x40   :  { %v716_v25 = vor.u32 %v820_v24, %v715_v23 }
  0x41   :  { %354 = vmatmul.bf16.gmra.mxu0 %v648_v54 }
  0x42   :  { %403 = vmatmul.bf16.gmra.mxu1 %v652_v55  ;;  %423 = vmatmul.bf16.vlgmr.msrb.gmra.mxu3 %v700_v56 }
  0x4a   :  { %793 = vmatmul.msk.bf16.gmra.mxu2 %vm311_vm0, %v680_v59 }
  0x51   :  { %359 = vmatmul.bf16.gmra.mxu0 %v660_v2 }
  0x52   :  { %408 = vmatmul.bf16.gmra.mxu1 %v664_v3  ;;  %428 = vmatmul.bf16.gmra.mxu3 %v712_v4 }
  0x5a   :  { %794 = vmatmul.msk.bf16.gmra.mxu2 %vm311_vm0, %v692_v7 }
  0x61   :  { %364 = vmatmul.bf16.gmra.mxu0 %v672_v12 }
  0x62   :  { %413 = vmatmul.bf16.gmra.mxu1 %v676_v13 }
  0x6a   :  { %795 = vmatmul.msk.bf16.gmra.mxu2 %vm311_vm0, %v704_v16 }
  0x71   :  { %369 = vmatmul.bf16.gmra.mxu0 %v684_v21 }
  0x72   :  { %418 = vmatmul.bf16.gmra.mxu1 %v688_v22 }
  0x7a   :  { %796 = vmatmul.msk.bf16.gmra.mxu2 %vm311_vm0, %v716_v25 }
  0x8d   :  { %v443_v26 = vpop.f32.mrf.mxu2 }
  0x95   :  { %v445_v27 = vpop.f32.mrf.mxu2 }
  0x9d   :  { %v448_v28 = vpop.f32.mrf.mxu2 }
  0x9e   :  { %v345_v29 = vpop.f32.mrf.mxu0 }
  0x9f   :  { %v394_v30 = vpop.f32.mrf.mxu1 }
  0xa0   :  { %v395_v31 = vadd.f32 %v394_v30, %v345_v29 }
  0xa2   :  { %v444_v32 = vadd.f32 %v443_v26, %v395_v31 }
  0xa4   :  { %v576_v33 = vpack.c.bf16 %v444_v32, %v444_v32  ;;  %v522_v38 = vmul.f32 %v444_v32, %v444_v32  ;;  %v483_v40 = vsel %vm311_vm0, %v444_v32, 0.0 }
  0xa5   :  { %v450_v34 = vpop.f32.mrf.mxu2  ;;  %v375_v59 = vpop.f32.mrf.mxu3 }
  0xa6   :  { %593 = vst.msk [vmem:[%s1208_s2] sm:$0xf] %vm592_vm1, %v576_v33  ;;  %v347_v35 = vpop.f32.mrf.mxu0  ;;  %v538_v46 = vsel %vm311_vm0, %v522_v38, 0.0 }
  0xa7   :  { %v396_v36 = vpop.f32.mrf.mxu1 }
  0xa8   :  { %v397_v37 = vadd.f32 %v396_v36, %v347_v35 }
  0xaa   :  { %v446_v39 = vadd.f32 %v445_v27, %v397_v37 }
  0xac   :  { %v484_v41 = vsel %vm311_vm0, %v446_v39, 0.0  ;;  %v523_v42 = vmul.f32 %v446_v39, %v446_v39  ;;  %v577_v43 = vpack.c.bf16 %v446_v39, %v446_v39 }
  0xad   :  { %v1092_v44 = vadd.f32 %v484_v41, %v483_v40  ;;  %v453_v45 = vpop.f32.mrf.mxu2  ;;  %v1110_v3 = vpop.f32.mrf.mxu3 }
  0xae   :  { %v539_v47 = vsel %vm311_vm0, %v523_v42, 0.0  ;;  %594 = vst.msk [vmem:[%s1208_s2 + $0x4] sm:$0xf] %vm592_vm1, %v577_v43  ;;  %v350_v48 = vpop.f32.mrf.mxu0 }
  0xaf   :  { %v1100_v49 = vadd.f32 %v539_v47, %v538_v46  ;;  %v399_v50 = vpop.f32.mrf.mxu1 }
  0xb0   :  { %v400_v51 = vadd.f32 %v399_v50, %v350_v48 }
  0xb2   :  { %v449_v52 = vadd.f32 %v448_v28, %v400_v51 }
  0xb4   :  { %v578_v53 = vpack.c.bf16 %v449_v52, %v449_v52  ;;  %v524_v32 = vmul.f32 %v449_v52, %v449_v52  ;;  %v486_v35 = vsel %vm311_vm0, %v449_v52, 0.0 }
  0xb5   :  { %v455_v54 = vpop.f32.mrf.mxu2  ;;  %v1120_v12 = vpop.f32.mrf.mxu3  ;;  %v487_v42 = vadd.f32 %v486_v35, %v1092_v44 }
  0xb6   :  { %595 = vst.msk [vmem:[%s1208_s2 + $0x8] sm:$0xf] %vm592_vm1, %v578_v53  ;;  %v352_v55 = vpop.f32.mrf.mxu0  ;;  %v541_v38 = vsel %vm311_vm0, %v524_v32, 0.0 }
  0xb7   :  { %v401_v56 = vpop.f32.mrf.mxu1  ;;  %v542_v50 = vadd.f32 %v541_v38, %v1100_v49 }
  0xb8   :  { %v402_v57 = vadd.f32 %v401_v56, %v352_v55 }
  0xba   :  { %v451_v58 = vadd.f32 %v450_v34, %v402_v57 }
  0xbc   :  { %v579_v60 = vpack.c.bf16 %v451_v58, %v451_v58  ;;  %v525_v36 = vmul.f32 %v451_v58, %v451_v58  ;;  %v488_v39 = vsel %vm311_vm0, %v451_v58, 0.0 }
  0xbd   :  { %v458_v61 = vpop.f32.mrf.mxu2  ;;  %v1126_v21 = vpop.f32.mrf.mxu3  ;;  %v489_v51 = vadd.f32 %v488_v39, %v487_v42 }
  0xbe   :  { %596 = vst.msk [vmem:[%s1208_s2 + $0xc] sm:$0xf] %vm592_vm1, %v579_v60  ;;  %v355_v62 = vpop.f32.mrf.mxu0 }
  0xbf   :  { %v404_v63 = vpop.f32.mrf.mxu1 }
  0xc0   :  { %v405_v0 = vadd.f32 %v404_v63, %v355_v62 }
  0xc2   :  { %v454_v1 = vadd.f32 %v453_v45, %v405_v0  ;;  %v543_v45 = vsel %vm311_vm0, %v525_v36, 0.0 }
  0xc3   :  { %v544_v58 = vadd.f32 %v543_v45, %v542_v50 }
  0xc4   :  { %v580_v2 = vpack.c.bf16 %v454_v1, %v454_v1  ;;  %v526_v40 = vmul.f32 %v454_v1, %v454_v1  ;;  %v490_v46 = vsel %vm311_vm0, %v454_v1, 0.0 }
  0xc5   :  { %v460_v4 = vpop.f32.mrf.mxu2  ;;  %v424_v29 = vpop.f32.mrf.mxu3 }
  0xc6   :  { %597 = vst.msk [vmem:[%s1208_s2 + $0x10] sm:$0xf] %vm592_vm1, %v580_v2  ;;  %v357_v5 = vpop.f32.mrf.mxu0  ;;  %v425_v47 = vadd.f32 %v424_v29, %v375_v59  ;;  %v491_v59 = vadd.f32 %v490_v46, %v489_v51 }
  0xc7   :  { %v406_v6 = vpop.f32.mrf.mxu1 }
  0xc8   :  { %v407_v7 = vadd.f32 %v406_v6, %v357_v5 }
  0xca   :  { %v456_v8 = vadd.f32 %v455_v54, %v407_v7  ;;  %v545_v54 = vsel %vm311_vm0, %v526_v40, 0.0 }
  0xcb   :  { %v546_v1 = vadd.f32 %v545_v54, %v544_v58 }
  0xcc   :  { %v581_v9 = vpack.c.bf16 %v456_v8, %v456_v8  ;;  %v527_v43 = vmul.f32 %v456_v8, %v456_v8  ;;  %v492_v55 = vsel %vm311_vm0, %v456_v8, 0.0 }
  0xcd   :  { %v463_v10 = vpop.f32.mrf.mxu2  ;;  %v426_v52 = vpop.f32.mrf.mxu3  ;;  %v493_v2 = vadd.f32 %v492_v55, %v491_v59 }
  0xce   :  { %598 = vst.msk [vmem:[%s1208_s2 + $0x14] sm:$0xf] %vm592_vm1, %v581_v9  ;;  %v360_v11 = vpop.f32.mrf.mxu0  ;;  %v547_v60 = vsel %vm311_vm0, %v527_v43, 0.0  ;;  %v427_v9 = vadd.f32 %v426_v52, %v1110_v3 }
  0xcf   :  { %v409_v13 = vpop.f32.mrf.mxu1  ;;  %v548_v8 = vadd.f32 %v547_v60, %v546_v1 }
  0xd0   :  { %v410_v14 = vadd.f32 %v409_v13, %v360_v11 }
  0xd2   :  { %v459_v15 = vadd.f32 %v458_v61, %v410_v14 }
  0xd4   :  { %v582_v16 = vpack.c.bf16 %v459_v15, %v459_v15  ;;  %v528_v56 = vmul.f32 %v459_v15, %v459_v15  ;;  %v494_v61 = vsel %vm311_vm0, %v459_v15, 0.0 }
  0xd5   :  { %v465_v17 = vpop.f32.mrf.mxu2 }
  0xd6   :  { %599 = vst.msk [vmem:[%s1208_s2 + $0x18] sm:$0xf] %vm592_vm1, %v582_v16  ;;  %v362_v18 = vpop.f32.mrf.mxu0 }
  0xd7   :  { %v411_v19 = vpop.f32.mrf.mxu1 }
  0xd8   :  { %v412_v20 = vadd.f32 %v411_v19, %v362_v18 }
  0xda   :  { %v461_v22 = vadd.f32 %v460_v4, %v412_v20  ;;  %v549_v4 = vsel %vm311_vm0, %v528_v56, 0.0 }
  0xdb   :  { %v550_v16 = vadd.f32 %v549_v4, %v548_v8 }
  0xdc   :  { %v583_v23 = vpack.c.bf16 %v461_v22, %v461_v22  ;;  %v529_v62 = vmul.f32 %v461_v22, %v461_v22  ;;  %v496_v5 = vsel %vm311_vm0, %v461_v22, 0.0 }
  0xdd   :  { %v468_v24 = vpop.f32.mrf.mxu2 }
  0xde   :  { %600 = vst.msk [vmem:[%s1208_s2 + $0x1c] sm:$0xf] %vm592_vm1, %v583_v23  ;;  %v365_v25 = vpop.f32.mrf.mxu0  ;;  %v551_v11 = vsel %vm311_vm0, %v529_v62, 0.0 }
  0xdf   :  { %v414_v26 = vpop.f32.mrf.mxu1 }
  0xe0   :  { %v415_v27 = vadd.f32 %v414_v26, %v365_v25  ;;  %v552_v25 = vadd.f32 %v551_v11, %v550_v16 }
  0xe2   :  { %v464_v28 = vadd.f32 %v463_v10, %v415_v27  ;;  %v495_v10 = vadd.f32 %v494_v61, %v493_v2 }
  0xe4   :  { %v584_v30 = vpack.c.bf16 %v464_v28, %v464_v28  ;;  %v530_v6 = vmul.f32 %v464_v28, %v464_v28  ;;  %v498_v13 = vsel %vm311_vm0, %v464_v28, 0.0 }
  0xe5   :  { %v1132_v31 = vpop.f32.mrf.mxu2 }
  0xe6   :  { %601 = vst.msk [vmem:[%s1208_s2 + $0x20] sm:$0xf] %vm592_vm1, %v584_v30  ;;  %v367_v33 = vpop.f32.mrf.mxu0  ;;  %v553_v19 = vsel %vm311_vm0, %v530_v6, 0.0 }
  0xe7   :  { %v416_v34 = vpop.f32.mrf.mxu1 }
  0xe8   :  { %v417_v37 = vadd.f32 %v416_v34, %v367_v33  ;;  %v554_v33 = vadd.f32 %v553_v19, %v552_v25 }
  0xea   :  { %v466_v41 = vadd.f32 %v465_v17, %v417_v37  ;;  %v497_v17 = vadd.f32 %v496_v5, %v495_v10 }
  0xec   :  { %v585_v48 = vpack.c.bf16 %v466_v41, %v466_v41  ;;  %v531_v14 = vmul.f32 %v466_v41, %v466_v41  ;;  %v500_v20 = vsel %vm311_vm0, %v466_v41, 0.0  ;;  %v499_v26 = vadd.f32 %v498_v13, %v497_v17 }
  0xed   :  { %v473_v53 = vpop.f32.mrf.mxu2 }
  0xee   :  { %602 = vst.msk [vmem:[%s1208_s2 + $0x24] sm:$0xf] %vm592_vm1, %v585_v48  ;;  %v474_v44 = vadd.f32 %v473_v53, %v425_v47  ;;  %v370_v57 = vpop.f32.mrf.mxu0  ;;  %v555_v28 = vsel %vm311_vm0, %v531_v14, 0.0  ;;  %v501_v34 = vadd.f32 %v500_v20, %v499_v26 }
  0xef   :  { %v419_v49 = vpop.f32.mrf.mxu1  ;;  %v556_v38 = vadd.f32 %v555_v28, %v554_v33 }
  0xf0   :  { %v588_v63 = vpack.c.bf16 %v474_v44, %v474_v44  ;;  %v420_v0 = vadd.f32 %v419_v49, %v370_v57  ;;  %v534_v40 = vmul.f32 %v474_v44, %v474_v44  ;;  %v506_v48 = vsel %vm311_vm0, %v474_v44, 0.0 }
  0xf2   :  { %605 = vst.msk [vmem:[%s1208_s2 + $0x30] sm:$0xf] %vm592_vm1, %v588_v63  ;;  %v469_v7 = vadd.f32 %v468_v24, %v420_v0  ;;  %v429_v24 = vpop.f32.mrf.mxu3  ;;  %v561_v52 = vsel %vm311_vm0, %v534_v40, 0.0 }
  0xf3   :  { %v430_v37 = vadd.f32 %v429_v24, %v1120_v12 }
  0xf4   :  { %v586_v15 = vpack.c.bf16 %v469_v7, %v469_v7  ;;  %v532_v22 = vmul.f32 %v469_v7, %v469_v7  ;;  %v502_v29 = vsel %vm311_vm0, %v469_v7, 0.0 }
  0xf5   :  { %v475_v18 = vpop.f32.mrf.mxu2  ;;  %v503_v39 = vadd.f32 %v502_v29, %v501_v34 }
  0xf6   :  { %603 = vst.msk [vmem:[%s1208_s2 + $0x28] sm:$0xf] %vm592_vm1, %v586_v15  ;;  %v476_v3 = vadd.f32 %v475_v18, %v427_v9  ;;  %v372_v23 = vpop.f32.mrf.mxu0  ;;  %v557_v35 = vsel %vm311_vm0, %v532_v22, 0.0 }
  0xf7   :  { %v421_v27 = vpop.f32.mrf.mxu1  ;;  %v558_v45 = vadd.f32 %v557_v35, %v556_v38 }
  0xf8   :  { %v589_v30 = vpack.c.bf16 %v476_v3, %v476_v3  ;;  %v422_v32 = vadd.f32 %v421_v27, %v372_v23  ;;  %v535_v53 = vmul.f32 %v476_v3, %v476_v3  ;;  %v508_v57 = vsel %vm311_vm0, %v476_v3, 0.0 }
  0xfa   :  { %606 = vst.msk [vmem:[%s1208_s2 + $0x34] sm:$0xf] %vm592_vm1, %v589_v30  ;;  %v471_v36 = vadd.f32 %v1132_v31, %v422_v32  ;;  %v431_v55 = vpop.f32.mrf.mxu3  ;;  %v563_v59 = vsel %vm311_vm0, %v535_v53, 0.0 }
  0xfb   :  { %v432_v58 = vadd.f32 %v431_v55, %v1126_v21 }
  0xfc   :  { %v504_v41 = vsel %vm311_vm0, %v471_v36, 0.0  ;;  %v533_v42 = vmul.f32 %v471_v36, %v471_v36  ;;  %v587_v43 = vpack.c.bf16 %v471_v36, %v471_v36 }
  0xfd   :  { %v505_v46 = vadd.f32 %v504_v41, %v503_v39  ;;  %v478_v47 = vpop.f32.mrf.mxu2 }
  0xfe   :  { %v559_v50 = vsel %vm311_vm0, %v533_v42, 0.0  ;;  %604 = vst.msk [vmem:[%s1208_s2 + $0x2c] sm:$0xf] %vm592_vm1, %v587_v43  ;;  %v479_v12 = vadd.f32 %v478_v47, %v430_v37 }
  0xff   :  { %v560_v31 = vadd.f32 %v559_v50, %v558_v45  ;;  %v507_v51 = vadd.f32 %v506_v48, %v505_v46 }
 0x100   :  { %v590_v54 = vpack.c.bf16 %v479_v12, %v479_v12  ;;  %v536_v60 = vmul.f32 %v479_v12, %v479_v12  ;;  %v510_v62 = vsel %vm311_vm0, %v479_v12, 0.0 }
 0x101   :  { %v562_v56 = vadd.f32 %v561_v52, %v560_v31  ;;  %v509_v44 = vadd.f32 %v508_v57, %v507_v51 }
 0x102   :  { %607 = vst.msk [vmem:[%s1208_s2 + $0x38] sm:$0xf] %vm592_vm1, %v590_v54  ;;  %v565_v1 = vsel %vm311_vm0, %v536_v60, 0.0 }
 0x103   :  { %v564_v49 = vadd.f32 %v563_v59, %v562_v56  ;;  %v511_v0 = vadd.f32 %v510_v62, %v509_v44 }
 0x105   :  { %v480_v61 = vpop.f32.mrf.mxu2  ;;  %v566_v6 = vadd.f32 %v565_v1, %v564_v49 }
 0x106   :  { %v481_v63 = vadd.f32 %v480_v61, %v432_v58 }
 0x108   :  { %v512_v2 = vsel %vm311_vm0, %v481_v63, 0.0  ;;  %v537_v4 = vmul.f32 %v481_v63, %v481_v63  ;;  %v591_v5 = vpack.c.bf16 %v481_v63, %v481_v63 }
 0x109   :  { %v513_v7 = vadd.f32 %v512_v2, %v511_v0 }
 0x10a   :  { %v567_v8 = vsel %vm311_vm0, %v537_v4, 0.0  ;;  %608 = vst.msk [vmem:[%s1208_s2 + $0x3c] sm:$0xf] %vm592_vm1, %v591_v5 }
 0x10b   :  { %v514_v21 = vrot.slane %v513_v7, 4  ;;  %v568_v9 = vadd.f32 %v567_v8, %v566_v6 }
 0x10d   :  { %v515_v10 = vadd.f32 %v514_v21, %v513_v7  ;;  %v569_v11 = vrot.slane %v568_v9, 4 }
 0x10f   :  { %v516_v13 = vrot.slane %v515_v10, 2  ;;  %v570_v14 = vadd.f32 %v569_v11, %v568_v9 }
 0x111   :  { %v517_v15 = vadd.f32 %v516_v13, %v515_v10  ;;  %v571_v16 = vrot.slane %v570_v14, 2 }
 0x113   :  { %v518_v17 = vrot.slane %v517_v15, 1  ;;  %v572_v18 = vadd.f32 %v571_v16, %v570_v14 }
 0x115   :  { %v519_v19 = vadd.f32 %v518_v17, %v517_v15  ;;  %v573_v20 = vrot.slane %v572_v18, 1 }
 0x117   :  { %521 = vst.msk [vmem:[%s1209_s3] sm:$0x1] %vm520_vm2, %v519_v19  ;;  %v574_v22 = vadd.f32 %v573_v20, %v572_v18 }
 0x119   :  { %575 = vst.msk [vmem:[%s1210_s4] sm:$0x1] %vm520_vm2, %v574_v22 }

// kernel: _lambda_.19
= control target key start
LH: loop header
LB: loop body
LE: loop exit
PB: predicated region body
PF: predicated region fallthrough
CT: control target
= control target key end

     0   :  { %vm443_vm0 = vcmask 130048   ;;  %vm942_vm1 = vcmask 64512   ;;  %s2417_s1 = inlined_call_operand.vmem [shape: bf16[144,8], index: 1, kind: input, shape index: {}]   ;;  %s2418_s0 = inlined_call_operand.vmem [shape: bf16[512,144], index: 0, kind: input, shape index: {}]   ;;  %s2419_s2 = inlined_call_operand.vmem [shape: f32[1,8], index: 2, kind: input, shape index: {}]   ;;  %s2420_s3 = inlined_call_operand.vmem [shape: f32[512,8], index: 3, kind: output, shape index: {}]  }
   0x1   :  { %v1406_v0 = vld [vmem:[%s2417_s1 + $0x38] sm:$0xff]  ;;  %v1407_v1 = vld [vmem:[%s2417_s1 + $0x40] sm:$0xff]  ;;  %v1015_v3 = vld [vmem:[%s2418_s0 + $0x8] sm:$0xf0] }
   0x2   :  { %v1335_v2 = vld [vmem:[%s2418_s0 + $0x4] sm:$0xf]  ;;  %540 = vmatpush.bf16.msra.mxu0 %v1406_v0  ;;  %1408 = vmatpush.bf16.msra.mxu2 %v1406_v0  ;;  %v1405_v5 = vld [vmem:[%s2417_s1 + $0x30] sm:$0xff]  ;;  %v1404_v6 = vld [vmem:[%s2417_s1 + $0x28] sm:$0xff] }
   0x3   :  { %v1018_v4 = vor.u32 %v1335_v2, %v1015_v3  ;;  %716 = vmatpush.bf16.msra.mxu1 %v1407_v1  ;;  %1416 = vmatpush.bf16.msra.mxu3 %v1407_v1  ;;  %v1369_v7 = vld [vmem:[%s2418_s0 + $0x114] sm:$0xf]  ;;  %v1151_v8 = vld [vmem:[%s2418_s0 + $0x118] sm:$0xf0]  ;;  %v1403_v10 = vld [vmem:[%s2417_s1 + $0x20] sm:$0xff] }
   0x4   :  { %v1154_v9 = vor.u32 %v1369_v7, %v1151_v8  ;;  %v1402_v11 = vld [vmem:[%s2417_s1 + $0x18] sm:$0xff]  ;;  %v1337_v12 = vld [vmem:[%s2418_s0 + $0x14] sm:$0xf]  ;;  %v1400_v16 = vld [vmem:[%s2417_s1 + $0x8] sm:$0xff] }
   0x5   :  { %v1023_v13 = vld [vmem:[%s2418_s0 + $0x18] sm:$0xf0]  ;;  %v1401_v15 = vld [vmem:[%s2417_s1 + $0x10] sm:$0xff]  ;;  %v1371_v17 = vld [vmem:[%s2418_s0 + $0x124] sm:$0xf] }
   0x6   :  { %1303 = vmatmul.msk.bf16.vlgmr.msra.gmra.mxu1 %vm443_vm0, %v1018_v4  ;;  %541 = vmatpush.bf16.msra.mxu0 %v1405_v5  ;;  %v1026_v14 = vor.u32 %v1337_v12, %v1023_v13  ;;  %v1159_v18 = vld [vmem:[%s2418_s0 + $0x128] sm:$0xf0]  ;;  %v1399_v20 = vld [vmem:[%s2417_s1] sm:$0xff]  ;;  %v1336_v22 = vld [vmem:[%s2418_s0 + $0x4] sm:$0xf0] }
   0x7   :  { %1409 = vmatpush.bf16.msra.mxu2 %v1405_v5  ;;  %1320 = vmatmul.msk.bf16.vlgmr.msra.gmra.mxu3 %vm443_vm0, %v1154_v9  ;;  %v1162_v19 = vor.u32 %v1371_v17, %v1159_v18  ;;  %v1013_v21 = vld [vmem:[%s2418_s0] sm:$0xf]  ;;  %v1368_v24 = vld [vmem:[%s2418_s0 + $0x104] sm:$0xf0]  ;;  %v1339_v27 = vld [vmem:[%s2418_s0 + $0x24] sm:$0xf] }
   0x8   :  { %v1141_v23 = vld [vmem:[%s2418_s0 + $0x100] sm:$0xf]  ;;  %v1014_v25 = vor.u32 %v1336_v22, %v1013_v21  ;;  %v1031_v28 = vld [vmem:[%s2418_s0 + $0x28] sm:$0xf0]  ;;  %v1373_v30 = vld [vmem:[%s2418_s0 + $0x134] sm:$0xf] }
   0x9   :  { %v1142_v26 = vor.u32 %v1368_v24, %v1141_v23  ;;  %v1034_v29 = vor.u32 %v1339_v27, %v1031_v28  ;;  %v1167_v31 = vld [vmem:[%s2418_s0 + $0x138] sm:$0xf0]  ;;  %v1021_v33 = vld [vmem:[%s2418_s0 + $0x10] sm:$0xf]  ;;  %v1338_v34 = vld [vmem:[%s2418_s0 + $0x14] sm:$0xf0] }
   0xa   :  { %542 = vmatpush.bf16.msra.mxu0 %v1404_v6  ;;  %v1170_v32 = vor.u32 %v1373_v30, %v1167_v31  ;;  %v1149_v35 = vld [vmem:[%s2418_s0 + $0x110] sm:$0xf]  ;;  %v1370_v36 = vld [vmem:[%s2418_s0 + $0x114] sm:$0xf0]  ;;  %v1022_v37 = vor.u32 %v1338_v34, %v1021_v33  ;;  %v1341_v39 = vld [vmem:[%s2418_s0 + $0x34] sm:$0xf] }
   0xb   :  { %1410 = vmatpush.bf16.msra.mxu2 %v1404_v6  ;;  %v1150_v38 = vor.u32 %v1370_v36, %v1149_v35  ;;  %v1039_v40 = vld [vmem:[%s2418_s0 + $0x38] sm:$0xf0]  ;;  %v1375_v42 = vld [vmem:[%s2418_s0 + $0x144] sm:$0xf]  ;;  %v1175_v43 = vld [vmem:[%s2418_s0 + $0x148] sm:$0xf0] }
   0xc   :  { %v1042_v41 = vor.u32 %v1341_v39, %v1039_v40  ;;  %v1178_v44 = vor.u32 %v1375_v42, %v1175_v43  ;;  %v1029_v45 = vld [vmem:[%s2418_s0 + $0x20] sm:$0xf]  ;;  %v1340_v46 = vld [vmem:[%s2418_s0 + $0x24] sm:$0xf0]  ;;  %v1343_v51 = vld [vmem:[%s2418_s0 + $0x44] sm:$0xf] }
   0xd   :  { %v1157_v47 = vld [vmem:[%s2418_s0 + $0x120] sm:$0xf]  ;;  %v1372_v48 = vld [vmem:[%s2418_s0 + $0x124] sm:$0xf0]  ;;  %v1030_v49 = vor.u32 %v1340_v46, %v1029_v45  ;;  %v1047_v52 = vld [vmem:[%s2418_s0 + $0x48] sm:$0xf0] }
   0xe   :  { %543 = vmatpush.bf16.msra.mxu0 %v1403_v10  ;;  %v1158_v50 = vor.u32 %v1372_v48, %v1157_v47  ;;  %v1050_v53 = vor.u32 %v1343_v51, %v1047_v52  ;;  %v1377_v54 = vld [vmem:[%s2418_s0 + $0x154] sm:$0xf]  ;;  %v1183_v55 = vld [vmem:[%s2418_s0 + $0x158] sm:$0xf0]  ;;  %v1037_v57 = vld [vmem:[%s2418_s0 + $0x30] sm:$0xf] }
   0xf   :  { %1411 = vmatpush.bf16.msra.mxu2 %v1403_v10  ;;  %v1186_v56 = vor.u32 %v1377_v54, %v1183_v55  ;;  %v1342_v58 = vld [vmem:[%s2418_s0 + $0x34] sm:$0xf0]  ;;  %v1165_v59 = vld [vmem:[%s2418_s0 + $0x130] sm:$0xf]  ;;  %v1345_v63 = vld [vmem:[%s2418_s0 + $0x54] sm:$0xf] }
  0x10   :  { %v1374_v60 = vld [vmem:[%s2418_s0 + $0x134] sm:$0xf0]  ;;  %v1038_v61 = vor.u32 %v1342_v58, %v1037_v57  ;;  %v1055_v0 = vld [vmem:[%s2418_s0 + $0x58] sm:$0xf0]  ;;  %v1379_v2 = vld [vmem:[%s2418_s0 + $0x164] sm:$0xf] }
  0x11   :  { %v1166_v62 = vor.u32 %v1374_v60, %v1165_v59  ;;  %v1058_v1 = vor.u32 %v1345_v63, %v1055_v0  ;;  %v1191_v3 = vld [vmem:[%s2418_s0 + $0x168] sm:$0xf0]  ;;  %v1045_v5 = vld [vmem:[%s2418_s0 + $0x40] sm:$0xf]  ;;  %v1344_v6 = vld [vmem:[%s2418_s0 + $0x44] sm:$0xf0] }
  0x12   :  { %544 = vmatpush.bf16.msra.mxu0 %v1402_v11  ;;  %v1194_v4 = vor.u32 %v1379_v2, %v1191_v3  ;;  %v1173_v7 = vld [vmem:[%s2418_s0 + $0x140] sm:$0xf]  ;;  %v1376_v8 = vld [vmem:[%s2418_s0 + $0x144] sm:$0xf0]  ;;  %v1046_v9 = vor.u32 %v1344_v6, %v1045_v5  ;;  %v1063_v12 = vld [vmem:[%s2418_s0 + $0x68] sm:$0xf0] }
  0x13   :  { %1412 = vmatpush.bf16.msra.mxu2 %v1402_v11  ;;  %v1174_v10 = vor.u32 %v1376_v8, %v1173_v7  ;;  %v1347_v11 = vld [vmem:[%s2418_s0 + $0x64] sm:$0xf]  ;;  %v1346_v17 = vld [vmem:[%s2418_s0 + $0x54] sm:$0xf0]  ;;  %v1349_v23 = vld [vmem:[%s2418_s0 + $0x74] sm:$0xf] }
  0x14   :  { %v1066_v13 = vor.u32 %v1347_v11, %v1063_v12  ;;  %v1071_v24 = vld [vmem:[%s2418_s0 + $0x78] sm:$0xf0]  ;;  %v1207_v27 = vld [vmem:[%s2418_s0 + $0x188] sm:$0xf0]  ;;  %v1061_v28 = vld [vmem:[%s2418_s0 + $0x60] sm:$0xf] }
  0x15   :  { %v1189_v31 = vld [vmem:[%s2418_s0 + $0x160] sm:$0xf]  ;;  %v1351_v35 = vld [vmem:[%s2418_s0 + $0x84] sm:$0xf]  ;;  %v1079_v36 = vld [vmem:[%s2418_s0 + $0x88] sm:$0xf0] }
  0x16   :  { %1304 = vmatmul.msk.bf16.gmra.mxu1 %vm443_vm0, %v1026_v14  ;;  %545 = vmatpush.bf16.msra.mxu0 %v1401_v15  ;;  %v1381_v14 = vld [vmem:[%s2418_s0 + $0x174] sm:$0xf]  ;;  %v1215_v40 = vld [vmem:[%s2418_s0 + $0x198] sm:$0xf0]  ;;  %v1350_v42 = vld [vmem:[%s2418_s0 + $0x74] sm:$0xf0] }
  0x17   :  { %1413 = vmatpush.bf16.msra.mxu2 %v1401_v15  ;;  %1321 = vmatmul.msk.bf16.gmra.mxu3 %vm443_vm0, %v1162_v19  ;;  %v1199_v15 = vld [vmem:[%s2418_s0 + $0x178] sm:$0xf0]  ;;  %v1181_v19 = vld [vmem:[%s2418_s0 + $0x150] sm:$0xf]  ;;  %v1385_v39 = vld [vmem:[%s2418_s0 + $0x194] sm:$0xf] }
  0x18   :  { %v1202_v18 = vor.u32 %v1381_v14, %v1199_v15  ;;  %v1218_v43 = vor.u32 %v1385_v39, %v1215_v40  ;;  %v1197_v45 = vld [vmem:[%s2418_s0 + $0x170] sm:$0xf]  ;;  %v1382_v46 = vld [vmem:[%s2418_s0 + $0x174] sm:$0xf0]  ;;  %v1387_v55 = vld [vmem:[%s2418_s0 + $0x1a4] sm:$0xf] }
  0x19   :  { %v1198_v48 = vor.u32 %v1382_v46, %v1197_v45  ;;  %v1077_v57 = vld [vmem:[%s2418_s0 + $0x80] sm:$0xf]  ;;  %v1352_v58 = vld [vmem:[%s2418_s0 + $0x84] sm:$0xf0]  ;;  %v1095_v5 = vld [vmem:[%s2418_s0 + $0xa8] sm:$0xf0] }
  0x1a   :  { %546 = vmatpush.bf16.msra.mxu0 %v1400_v16  ;;  %v1384_v63 = vld [vmem:[%s2418_s0 + $0x184] sm:$0xf0]  ;;  %v1078_v0 = vor.u32 %v1352_v58, %v1077_v57  ;;  %v1239_v45 = vld [vmem:[%s2418_s0 + $0x1c8] sm:$0xf0]  ;;  %v1093_v46 = vld [vmem:[%s2418_s0 + $0xa0] sm:$0xf] }
  0x1b   :  { %1414 = vmatpush.bf16.msra.mxu2 %v1400_v16  ;;  %v1053_v16 = vld [vmem:[%s2418_s0 + $0x50] sm:$0xf] }
  0x1c   :  { %v1054_v21 = vor.u32 %v1346_v17, %v1053_v16  ;;  %v1389_v16 = vld [vmem:[%s2418_s0 + $0x1b4] sm:$0xf]  ;;  %v1231_v17 = vld [vmem:[%s2418_s0 + $0x1b8] sm:$0xf0] }
  0x1e   :  { %547 = vmatpush.bf16.msra.mxu0 %v1399_v20 }
  0x1f   :  { %1415 = vmatpush.bf16.msra.mxu2 %v1399_v20  ;;  %v1378_v20 = vld [vmem:[%s2418_s0 + $0x154] sm:$0xf0] }
  0x20   :  { %v1182_v22 = vor.u32 %v1378_v20, %v1181_v19  ;;  %v1354_v19 = vld [vmem:[%s2418_s0 + $0x94] sm:$0xf0]  ;;  %v1234_v20 = vor.u32 %v1389_v16, %v1231_v17  ;;  %v1393_v16 = vld [vmem:[%s2418_s0 + $0x1d4] sm:$0xf]  ;;  %v1247_v17 = vld [vmem:[%s2418_s0 + $0x1d8] sm:$0xf0] }
  0x21   :  { %548 = vmatmul.bf16.vlgmr.msra.gmra.mxu0 %v1014_v25  ;;  %v1074_v25 = vor.u32 %v1349_v23, %v1071_v24  ;;  %v1386_v23 = vld [vmem:[%s2418_s0 + $0x194] sm:$0xf0] }
  0x22   :  { %628 = vmatmul.bf16.vlgmr.msra.gmra.mxu2 %v1142_v26  ;;  %v1383_v26 = vld [vmem:[%s2418_s0 + $0x184] sm:$0xf] }
  0x23   :  { %v1210_v30 = vor.u32 %v1383_v26, %v1207_v27 }
  0x26   :  { %1305 = vmatmul.msk.bf16.gmra.mxu1 %vm443_vm0, %v1034_v29  ;;  %v1348_v29 = vld [vmem:[%s2418_s0 + $0x64] sm:$0xf0] }
  0x27   :  { %1322 = vmatmul.msk.bf16.gmra.mxu3 %vm443_vm0, %v1170_v32  ;;  %v1380_v32 = vld [vmem:[%s2418_s0 + $0x164] sm:$0xf0]  ;;  %v1062_v33 = vor.u32 %v1348_v29, %v1061_v28  ;;  %v1357_v29 = vld [vmem:[%s2418_s0 + $0xb4] sm:$0xf] }
  0x28   :  { %v1190_v34 = vor.u32 %v1380_v32, %v1189_v31 }
  0x31   :  { %553 = vmatmul.bf16.gmra.mxu0 %v1022_v37  ;;  %v1082_v37 = vor.u32 %v1351_v35, %v1079_v36 }
  0x32   :  { %633 = vmatmul.bf16.gmra.mxu2 %v1150_v38 }
  0x36   :  { %1306 = vmatmul.msk.bf16.gmra.mxu1 %vm443_vm0, %v1042_v41  ;;  %v1069_v41 = vld [vmem:[%s2418_s0 + $0x70] sm:$0xf] }
  0x37   :  { %1323 = vmatmul.msk.bf16.gmra.mxu3 %vm443_vm0, %v1178_v44  ;;  %v1070_v47 = vor.u32 %v1350_v42, %v1069_v41 }
  0x41   :  { %558 = vmatmul.bf16.gmra.mxu0 %v1030_v49  ;;  %v1353_v49 = vld [vmem:[%s2418_s0 + $0x94] sm:$0xf] }
  0x42   :  { %638 = vmatmul.bf16.gmra.mxu2 %v1158_v50  ;;  %v1087_v50 = vld [vmem:[%s2418_s0 + $0x98] sm:$0xf0] }
  0x43   :  { %v1090_v52 = vor.u32 %v1353_v49, %v1087_v50  ;;  %v1221_v50 = vld [vmem:[%s2418_s0 + $0x1a0] sm:$0xf] }
  0x46   :  { %1307 = vmatmul.msk.bf16.gmra.mxu1 %vm443_vm0, %v1050_v53 }
  0x47   :  { %1324 = vmatmul.msk.bf16.gmra.mxu3 %vm443_vm0, %v1186_v56  ;;  %v1223_v56 = vld [vmem:[%s2418_s0 + $0x1a8] sm:$0xf0] }
  0x48   :  { %v1226_v59 = vor.u32 %v1387_v55, %v1223_v56 }
  0x51   :  { %563 = vmatmul.bf16.gmra.mxu0 %v1038_v61  ;;  %v1842_v61 = vld [vmem:[%s2419_s2] ss:$0 sm:$0xff] }
  0x52   :  { %643 = vmatmul.bf16.gmra.mxu2 %v1166_v62  ;;  %v1205_v62 = vld [vmem:[%s2418_s0 + $0x180] sm:$0xf] }
  0x53   :  { %v1206_v2 = vor.u32 %v1384_v63, %v1205_v62 }
  0x56   :  { %1308 = vmatmul.msk.bf16.gmra.mxu1 %vm443_vm0, %v1058_v1 }
  0x57   :  { %1325 = vmatmul.msk.bf16.gmra.mxu3 %vm443_vm0, %v1194_v4  ;;  %v1355_v4 = vld [vmem:[%s2418_s0 + $0xa4] sm:$0xf] }
  0x58   :  { %v1098_v8 = vor.u32 %v1355_v4, %v1095_v5 }
  0x61   :  { %568 = vmatmul.bf16.gmra.mxu0 %v1046_v9 }
  0x62   :  { %648 = vmatmul.bf16.gmra.mxu2 %v1174_v10 }
  0x66   :  { %1309 = vmatmul.msk.bf16.gmra.mxu1 %vm443_vm0, %v1066_v13 }
  0x67   :  { %1326 = vmatmul.msk.bf16.gmra.mxu3 %vm443_vm0, %v1202_v18  ;;  %v1085_v18 = vld [vmem:[%s2418_s0 + $0x90] sm:$0xf] }
  0x71   :  { %573 = vmatmul.bf16.gmra.mxu0 %v1054_v21 }
  0x72   :  { %653 = vmatmul.bf16.gmra.mxu2 %v1182_v22  ;;  %v1213_v22 = vld [vmem:[%s2418_s0 + $0x190] sm:$0xf] }
  0x73   :  { %v1214_v27 = vor.u32 %v1386_v23, %v1213_v22  ;;  %v1390_v22 = vld [vmem:[%s2418_s0 + $0x1b4] sm:$0xf0] }
  0x76   :  { %1310 = vmatmul.msk.bf16.gmra.mxu1 %vm443_vm0, %v1074_v25  ;;  %v1086_v25 = vor.u32 %v1354_v19, %v1085_v18  ;;  %v1358_v18 = vld [vmem:[%s2418_s0 + $0xb4] sm:$0xf0]  ;;  %v1250_v19 = vor.u32 %v1393_v16, %v1247_v17 }
  0x77   :  { %1327 = vmatmul.msk.bf16.gmra.mxu3 %vm443_vm0, %v1210_v30  ;;  %v1103_v30 = vld [vmem:[%s2418_s0 + $0xb8] sm:$0xf0] }
  0x81   :  { %578 = vmatmul.bf16.gmra.mxu0 %v1062_v33 }
  0x82   :  { %658 = vmatmul.bf16.gmra.mxu2 %v1190_v34  ;;  %v1106_v34 = vor.u32 %v1357_v29, %v1103_v30  ;;  %v1361_v30 = vld [vmem:[%s2418_s0 + $0xd4] sm:$0xf] }
  0x83   :  { %v718_v38 = vpop.f32.mrf.mxu1 }
  0x86   :  { %1311 = vmatmul.msk.bf16.gmra.mxu1 %vm443_vm0, %v1082_v37 }
  0x87   :  { %1328 = vmatmul.msk.bf16.gmra.mxu3 %vm443_vm0, %v1218_v43 }
  0x8a   :  { %v1822_v51 = vpop.f32.mrf.mxu3 }
  0x8b   :  { %v720_v44 = vpop.f32.mrf.mxu1 }
  0x91   :  { %583 = vmatmul.bf16.gmra.mxu0 %v1070_v47  ;;  %v1356_v47 = vld [vmem:[%s2418_s0 + $0xa4] sm:$0xf0] }
  0x92   :  { %663 = vmatmul.bf16.gmra.mxu2 %v1198_v48  ;;  %v1825_v54 = vpop.f32.mrf.mxu3 }
  0x93   :  { %v723_v53 = vpop.f32.mrf.mxu1 }
  0x96   :  { %1312 = vmatmul.msk.bf16.gmra.mxu1 %vm443_vm0, %v1090_v52 }
  0x97   :  { %1329 = vmatmul.msk.bf16.gmra.mxu3 %vm443_vm0, %v1226_v59  ;;  %v1359_v59 = vld [vmem:[%s2418_s0 + $0xc4] sm:$0xf] }
  0x9a   :  { %v1858_v6 = vpop.f32.mrf.mxu3 }
  0x9b   :  { %v725_v60 = vpop.f32.mrf.mxu1 }
  0x9e   :  { %v549_v1 = vpop.f32.mrf.mxu0 }
  0x9f   :  { %v550_v3 = vadd.f32 %v1842_v61, %v549_v1 }
  0xa1   :  { %v719_v7 = vadd.f32 %v718_v38, %v550_v3  ;;  %588 = vmatmul.bf16.gmra.mxu0 %v1078_v0 }
  0xa2   :  { %668 = vmatmul.bf16.gmra.mxu2 %v1206_v2  ;;  %v1866_v13 = vpop.f32.mrf.mxu3 }
  0xa3   :  { %1418 = vtanh.f32 %v719_v7  ;;  %v1860_v9 = vpop.f32.mrf.mxu1 }
  0xa5   :  { %v1862_v10 = vpop.f32.mrf.mxu2 }
  0xa6   :  { %1313 = vmatmul.msk.bf16.gmra.mxu1 %vm443_vm0, %v1098_v8  ;;  %v551_v11 = vpop.f32.mrf.mxu0 }
  0xa7   :  { %v552_v12 = vadd.f32 %v1842_v61, %v551_v11  ;;  %1330 = vmatmul.msk.bf16.gmra.mxu3 %vm443_vm0, %v1234_v20 }
  0xa9   :  { %v1419_v14 = vpop.eup %1418  ;;  %v721_v15 = vadd.f32 %v720_v44, %v552_v12  ;;  %v1391_v44 = vld [vmem:[%s2418_s0 + $0x1c4] sm:$0xf] }
  0xaa   :  { %943 = vst.msk [vmem:[%s2420_s3] sm:$0xff] %vm942_vm1, %v1419_v14  ;;  %v1902_v31 = vpop.f32.mrf.mxu3  ;;  %v1242_v48 = vor.u32 %v1391_v44, %v1239_v45 }
  0xab   :  { %1420 = vtanh.f32 %v721_v15  ;;  %v1884_v21 = vpop.f32.mrf.mxu1 }
  0xad   :  { %v1893_v24 = vpop.f32.mrf.mxu2 }
  0xae   :  { %v554_v26 = vpop.f32.mrf.mxu0 }
  0xaf   :  { %v555_v28 = vadd.f32 %v1842_v61, %v554_v26 }
  0xb1   :  { %v1421_v32 = vpop.eup %1420  ;;  %v724_v33 = vadd.f32 %v723_v53, %v555_v28  ;;  %593 = vmatmul.bf16.gmra.mxu0 %v1086_v25  ;;  %v1094_v53 = vor.u32 %v1356_v47, %v1093_v46 }
  0xb2   :  { %944 = vst.msk [vmem:[%s2420_s3 + $0x8] sm:$0xff] %vm942_vm1, %v1421_v32  ;;  %673 = vmatmul.bf16.gmra.mxu2 %v1214_v27  ;;  %v1913_v40 = vpop.f32.mrf.mxu3  ;;  %v1119_v32 = vld [vmem:[%s2418_s0 + $0xd8] sm:$0xf0] }
  0xb3   :  { %1422 = vtanh.f32 %v724_v33  ;;  %v1908_v35 = vpop.f32.mrf.mxu1 }
  0xb5   :  { %v634_v36 = vpop.f32.mrf.mxu2 }
  0xb6   :  { %v635_v37 = vadd.f32 %v1842_v61, %v634_v36  ;;  %1314 = vmatmul.msk.bf16.gmra.mxu1 %vm443_vm0, %v1106_v34  ;;  %v556_v38 = vpop.f32.mrf.mxu0 }
  0xb7   :  { %v557_v39 = vadd.f32 %v1842_v61, %v556_v38  ;;  %1331 = vmatmul.msk.bf16.gmra.mxu3 %vm443_vm0, %v1242_v48 }
  0xb8   :  { %v804_v41 = vadd.f32 %v1822_v51, %v635_v37  ;;  %v1388_v51 = vld [vmem:[%s2418_s0 + $0x1a4] sm:$0xf0] }
  0xb9   :  { %v1423_v42 = vpop.eup %1422  ;;  %v726_v43 = vadd.f32 %v725_v60, %v557_v39  ;;  %v1222_v57 = vor.u32 %v1388_v51, %v1221_v50  ;;  %v1111_v60 = vld [vmem:[%s2418_s0 + $0xc8] sm:$0xf0]  ;;  %v1122_v39 = vor.u32 %v1361_v30, %v1119_v32  ;;  %v1395_v50 = vld [vmem:[%s2418_s0 + $0x1e4] sm:$0xf] }
  0xba   :  { %945 = vst.msk [vmem:[%s2420_s3 + $0x10] sm:$0xff] %vm942_vm1, %v1423_v42  ;;  %1424 = vtanh.f32 %v804_v41  ;;  %v1949_v62 = vpop.f32.mrf.mxu3  ;;  %v1114_v3 = vor.u32 %v1359_v59, %v1111_v60  ;;  %v1255_v51 = vld [vmem:[%s2418_s0 + $0x1e8] sm:$0xf0] }
  0xbb   :  { %1426 = vtanh.f32 %v726_v43  ;;  %v1932_v49 = vpop.f32.mrf.mxu1 }
  0xbd   :  { %v636_v52 = vpop.f32.mrf.mxu2 }
  0xbe   :  { %v637_v55 = vadd.f32 %v1842_v61, %v636_v52  ;;  %v559_v56 = vpop.f32.mrf.mxu0  ;;  %v1258_v52 = vor.u32 %v1395_v50, %v1255_v51 }
  0xbf   :  { %v560_v58 = vadd.f32 %v1842_v61, %v559_v56  ;;  %v1392_v56 = vld [vmem:[%s2418_s0 + $0x1c4] sm:$0xf0] }
  0xc0   :  { %v1425_v63 = vpop.eup %1424  ;;  %v806_v0 = vadd.f32 %v1825_v54, %v637_v55  ;;  %v1237_v55 = vld [vmem:[%s2418_s0 + $0x1c0] sm:$0xf] }
  0xc1   :  { %v1427_v1 = vpop.eup %1426  ;;  %977 = vst.msk [vmem:[%s2420_s3 + $0x110] sm:$0xff] %vm942_vm1, %v1425_v63  ;;  %v729_v2 = vadd.f32 %v1860_v9, %v560_v58  ;;  %598 = vmatmul.bf16.gmra.mxu0 %v1094_v53  ;;  %v1238_v63 = vor.u32 %v1392_v56, %v1237_v55  ;;  %v1396_v56 = vld [vmem:[%s2418_s0 + $0x1e4] sm:$0xf0] }
  0xc2   :  { %946 = vst.msk [vmem:[%s2420_s3 + $0x18] sm:$0xff] %vm942_vm1, %v1427_v1  ;;  %1428 = vtanh.f32 %v806_v0  ;;  %678 = vmatmul.bf16.gmra.mxu2 %v1222_v57  ;;  %v1966_v9 = vpop.f32.mrf.mxu3  ;;  %v1363_v1 = vld [vmem:[%s2418_s0 + $0xe4] sm:$0xf] }
  0xc3   :  { %1430 = vtanh.f32 %v729_v2  ;;  %v1961_v4 = vpop.f32.mrf.mxu1  ;;  %v1127_v2 = vld [vmem:[%s2418_s0 + $0xe8] sm:$0xf0] }
  0xc5   :  { %v639_v54 = vpop.f32.mrf.mxu2 }
  0xc6   :  { %v640_v5 = vadd.f32 %v1842_v61, %v639_v54  ;;  %1315 = vmatmul.msk.bf16.gmra.mxu1 %vm443_vm0, %v1114_v3  ;;  %v561_v7 = vpop.f32.mrf.mxu0 }
  0xc7   :  { %v562_v8 = vadd.f32 %v1842_v61, %v561_v7  ;;  %1332 = vmatmul.msk.bf16.gmra.mxu3 %vm443_vm0, %v1250_v19  ;;  %v1397_v19 = vld [vmem:[%s2418_s0 + $0x1f4] sm:$0xf] }
  0xc8   :  { %v1429_v11 = vpop.eup %1428  ;;  %v809_v12 = vadd.f32 %v1858_v6, %v640_v5  ;;  %v1101_v6 = vld [vmem:[%s2418_s0 + $0xb0] sm:$0xf] }
  0xc9   :  { %v1431_v14 = vpop.eup %1430  ;;  %978 = vst.msk [vmem:[%s2420_s3 + $0x118] sm:$0xff] %vm942_vm1, %v1429_v11  ;;  %v731_v15 = vadd.f32 %v1884_v21, %v562_v8  ;;  %v1229_v21 = vld [vmem:[%s2418_s0 + $0x1b0] sm:$0xf]  ;;  %v1102_v25 = vor.u32 %v1358_v18, %v1101_v6  ;;  %v1130_v11 = vor.u32 %v1363_v1, %v1127_v2  ;;  %v1367_v1 = vld [vmem:[%s2418_s0 + $0x104] sm:$0xf] }
  0xca   :  { %947 = vst.msk [vmem:[%s2420_s3 + $0x20] sm:$0xff] %vm942_vm1, %v1431_v14  ;;  %1432 = vtanh.f32 %v809_v12  ;;  %v1230_v28 = vor.u32 %v1390_v22, %v1229_v21  ;;  %v2007_v33 = vpop.f32.mrf.mxu3  ;;  %v1263_v21 = vld [vmem:[%s2418_s0 + $0x1f8] sm:$0xf0]  ;;  %v1143_v2 = vld [vmem:[%s2418_s0 + $0x108] sm:$0xf0] }
  0xcb   :  { %1434 = vtanh.f32 %v731_v15  ;;  %v1990_v20 = vpop.f32.mrf.mxu1  ;;  %v1266_v22 = vor.u32 %v1397_v19, %v1263_v21  ;;  %v1133_v21 = vld [vmem:[%s2418_s0 + $0xf0] sm:$0xf] }
  0xcd   :  { %v641_v23 = vpop.f32.mrf.mxu2 }
  0xce   :  { %v642_v26 = vadd.f32 %v1842_v61, %v641_v23  ;;  %v564_v27 = vpop.f32.mrf.mxu0 }
  0xcf   :  { %v565_v29 = vadd.f32 %v1842_v61, %v564_v27 }
  0xd0   :  { %v1433_v34 = vpop.eup %1432  ;;  %v811_v36 = vadd.f32 %v1866_v13, %v642_v26  ;;  %v1394_v26 = vld [vmem:[%s2418_s0 + $0x1d4] sm:$0xf0] }
  0xd1   :  { %v1435_v37 = vpop.eup %1434  ;;  %979 = vst.msk [vmem:[%s2420_s3 + $0x120] sm:$0xff] %vm942_vm1, %v1433_v34  ;;  %v734_v38 = vadd.f32 %v1908_v35, %v565_v29  ;;  %603 = vmatmul.bf16.gmra.mxu0 %v1102_v25  ;;  %v1245_v25 = vld [vmem:[%s2418_s0 + $0x1d0] sm:$0xf] }
  0xd2   :  { %948 = vst.msk [vmem:[%s2420_s3 + $0x28] sm:$0xff] %vm942_vm1, %v1435_v37  ;;  %1436 = vtanh.f32 %v811_v36  ;;  %683 = vmatmul.bf16.gmra.mxu2 %v1230_v28  ;;  %v2024_v44 = vpop.f32.mrf.mxu3  ;;  %v1246_v34 = vor.u32 %v1394_v26, %v1245_v25  ;;  %v1365_v37 = vld [vmem:[%s2418_s0 + $0xf4] sm:$0xf] }
  0xd3   :  { %1438 = vtanh.f32 %v734_v38  ;;  %v2019_v41 = vpop.f32.mrf.mxu1  ;;  %v1135_v38 = vld [vmem:[%s2418_s0 + $0xf8] sm:$0xf0] }
  0xd5   :  { %v644_v13 = vpop.f32.mrf.mxu2 }
  0xd6   :  { %v645_v42 = vadd.f32 %v1842_v61, %v644_v13  ;;  %1316 = vmatmul.msk.bf16.gmra.mxu1 %vm443_vm0, %v1122_v39  ;;  %v566_v43 = vpop.f32.mrf.mxu0 }
  0xd7   :  { %v567_v35 = vadd.f32 %v1842_v61, %v566_v43  ;;  %1333 = vmatmul.msk.bf16.gmra.mxu3 %vm443_vm0, %v1258_v52  ;;  %v1125_v52 = vld [vmem:[%s2418_s0 + $0xe0] sm:$0xf] }
  0xd8   :  { %v1437_v45 = vpop.eup %1436  ;;  %v814_v46 = vadd.f32 %v1902_v31, %v645_v42  ;;  %v1109_v31 = vld [vmem:[%s2418_s0 + $0xc0] sm:$0xf] }
  0xd9   :  { %v1439_v47 = vpop.eup %1438  ;;  %980 = vst.msk [vmem:[%s2420_s3 + $0x128] sm:$0xff] %vm942_vm1, %v1437_v45  ;;  %v736_v48 = vadd.f32 %v1932_v49, %v567_v35  ;;  %v1360_v49 = vld [vmem:[%s2418_s0 + $0xc4] sm:$0xf0]  ;;  %v1138_v35 = vor.u32 %v1365_v37, %v1135_v38 }
  0xda   :  { %949 = vst.msk [vmem:[%s2420_s3 + $0x30] sm:$0xff] %vm942_vm1, %v1439_v47  ;;  %1440 = vtanh.f32 %v814_v46  ;;  %v1110_v58 = vor.u32 %v1360_v49, %v1109_v31  ;;  %v2071_v8 = vpop.f32.mrf.mxu3 }
  0xdb   :  { %1442 = vtanh.f32 %v736_v48  ;;  %v2048_v53 = vpop.f32.mrf.mxu1 }
  0xdd   :  { %v646_v57 = vpop.f32.mrf.mxu2 }
  0xde   :  { %v647_v59 = vadd.f32 %v1842_v61, %v646_v57  ;;  %v569_v60 = vpop.f32.mrf.mxu0 }
  0xdf   :  { %v570_v0 = vadd.f32 %v1842_v61, %v569_v60 }
  0xe0   :  { %v1441_v3 = vpop.eup %1440  ;;  %v816_v54 = vadd.f32 %v1913_v40, %v647_v59 }
  0xe1   :  { %v1443_v5 = vpop.eup %1442  ;;  %981 = vst.msk [vmem:[%s2420_s3 + $0x130] sm:$0xff] %vm942_vm1, %v1441_v3  ;;  %v739_v7 = vadd.f32 %v1961_v4, %v570_v0  ;;  %608 = vmatmul.bf16.gmra.mxu0 %v1110_v58 }
  0xe2   :  { %950 = vst.msk [vmem:[%s2420_s3 + $0x38] sm:$0xff] %vm942_vm1, %v1443_v5  ;;  %1444 = vtanh.f32 %v816_v54  ;;  %688 = vmatmul.bf16.gmra.mxu2 %v1238_v63  ;;  %v2112_v27 = vpop.f32.mrf.mxu3 }
  0xe3   :  { %1446 = vtanh.f32 %v739_v7  ;;  %v2077_v40 = vpop.f32.mrf.mxu1 }
  0xe5   :  { %v649_v12 = vpop.f32.mrf.mxu2 }
  0xe6   :  { %v650_v14 = vadd.f32 %v1842_v61, %v649_v12  ;;  %1317 = vmatmul.msk.bf16.gmra.mxu1 %vm443_vm0, %v1130_v11  ;;  %v571_v4 = vpop.f32.mrf.mxu0  ;;  %v1146_v12 = vor.u32 %v1367_v1, %v1143_v2 }
  0xe7   :  { %v572_v15 = vadd.f32 %v1842_v61, %v571_v4  ;;  %1334 = vmatmul.msk.bf16.gmra.mxu3 %vm443_vm0, %v1266_v22  ;;  %v1398_v22 = vld [vmem:[%s2418_s0 + $0x1f4] sm:$0xf0] }
  0xe8   :  { %v1445_v16 = vpop.eup %1444  ;;  %v819_v17 = vadd.f32 %v1949_v62, %v650_v14  ;;  %v1117_v62 = vld [vmem:[%s2418_s0 + $0xd0] sm:$0xf] }
  0xe9   :  { %v1447_v6 = vpop.eup %1446  ;;  %982 = vst.msk [vmem:[%s2420_s3 + $0x138] sm:$0xff] %vm942_vm1, %v1445_v16  ;;  %v741_v18 = vadd.f32 %v1990_v20, %v572_v15  ;;  %v1362_v20 = vld [vmem:[%s2418_s0 + $0xd4] sm:$0xf0] }
  0xea   :  { %951 = vst.msk [vmem:[%s2420_s3 + $0x40] sm:$0xff] %vm942_vm1, %v1447_v6  ;;  %1448 = vtanh.f32 %v819_v17  ;;  %v1118_v29 = vor.u32 %v1362_v20, %v1117_v62  ;;  %v2135_v46 = vpop.f32.mrf.mxu3  ;;  %v1261_v20 = vld [vmem:[%s2418_s0 + $0x1f0] sm:$0xf] }
  0xeb   :  { %1450 = vtanh.f32 %v741_v18  ;;  %v2104_v23 = vpop.f32.mrf.mxu1 }
  0xed   :  { %v651_v28 = vpop.f32.mrf.mxu2 }
  0xee   :  { %v652_v30 = vadd.f32 %v1842_v61, %v651_v28  ;;  %v574_v32 = vpop.f32.mrf.mxu0 }
  0xef   :  { %v575_v36 = vadd.f32 %v1842_v61, %v574_v32 }
  0xf0   :  { %v1449_v39 = vpop.eup %1448  ;;  %v821_v13 = vadd.f32 %v1966_v9, %v652_v30 }
  0xf1   :  { %v1451_v42 = vpop.eup %1450  ;;  %983 = vst.msk [vmem:[%s2420_s3 + $0x140] sm:$0xff] %vm942_vm1, %v1449_v39  ;;  %v744_v43 = vadd.f32 %v2019_v41, %v575_v36  ;;  %613 = vmatmul.bf16.gmra.mxu0 %v1118_v29  ;;  %v1262_v29 = vor.u32 %v1398_v22, %v1261_v20 }
  0xf2   :  { %952 = vst.msk [vmem:[%s2420_s3 + $0x48] sm:$0xff] %vm942_vm1, %v1451_v42  ;;  %1452 = vtanh.f32 %v821_v13  ;;  %693 = vmatmul.bf16.gmra.mxu2 %v1246_v34  ;;  %v2172_v3 = vpop.f32.mrf.mxu3 }
  0xf3   :  { %1454 = vtanh.f32 %v744_v43  ;;  %v2133_v45 = vpop.f32.mrf.mxu1 }
  0xf5   :  { %v654_v9 = vpop.f32.mrf.mxu2 }
  0xf6   :  { %v655_v47 = vadd.f32 %v1842_v61, %v654_v9  ;;  %1318 = vmatmul.msk.bf16.gmra.mxu1 %vm443_vm0, %v1138_v35  ;;  %v576_v41 = vpop.f32.mrf.mxu0 }
  0xf7   :  { %v577_v48 = vadd.f32 %v1842_v61, %v576_v41 }
  0xf8   :  { %v1453_v50 = vpop.eup %1452  ;;  %v824_v51 = vadd.f32 %v2007_v33, %v655_v47  ;;  %v1364_v33 = vld [vmem:[%s2418_s0 + $0xe4] sm:$0xf0] }
  0xf9   :  { %v1455_v31 = vpop.eup %1454  ;;  %984 = vst.msk [vmem:[%s2420_s3 + $0x148] sm:$0xff] %vm942_vm1, %v1453_v50  ;;  %v746_v49 = vadd.f32 %v2048_v53, %v577_v48  ;;  %v1253_v53 = vld [vmem:[%s2418_s0 + $0x1e0] sm:$0xf]  ;;  %v1126_v58 = vor.u32 %v1364_v33, %v1125_v52 }
  0xfa   :  { %953 = vst.msk [vmem:[%s2420_s3 + $0x50] sm:$0xff] %vm942_vm1, %v1455_v31  ;;  %1456 = vtanh.f32 %v824_v51  ;;  %v1254_v63 = vor.u32 %v1396_v56, %v1253_v53  ;;  %v838_v19 = vpop.f32.mrf.mxu3 }
  0xfb   :  { %1458 = vtanh.f32 %v746_v49  ;;  %v2156_v55 = vpop.f32.mrf.mxu1 }
  0xfd   :  { %v656_v57 = vpop.f32.mrf.mxu2 }
  0xfe   :  { %v657_v59 = vadd.f32 %v1842_v61, %v656_v57  ;;  %v579_v60 = vpop.f32.mrf.mxu0 }
  0xff   :  { %v580_v0 = vadd.f32 %v1842_v61, %v579_v60 }
 0x100   :  { %v1457_v54 = vpop.eup %1456  ;;  %v826_v5 = vadd.f32 %v2024_v44, %v657_v59 }
 0x101   :  { %v1459_v7 = vpop.eup %1458  ;;  %985 = vst.msk [vmem:[%s2420_s3 + $0x150] sm:$0xff] %vm942_vm1, %v1457_v54  ;;  %v749_v11 = vadd.f32 %v2077_v40, %v580_v0  ;;  %618 = vmatmul.bf16.gmra.mxu0 %v1126_v58 }
 0x102   :  { %954 = vst.msk [vmem:[%s2420_s3 + $0x58] sm:$0xff] %vm942_vm1, %v1459_v7  ;;  %1460 = vtanh.f32 %v826_v5  ;;  %698 = vmatmul.bf16.gmra.mxu2 %v1254_v63  ;;  %v840_v39 = vpop.f32.mrf.mxu3 }
 0x103   :  { %1462 = vtanh.f32 %v749_v11  ;;  %v758_v14 = vpop.f32.mrf.mxu1 }
 0x105   :  { %v659_v44 = vpop.f32.mrf.mxu2 }
 0x106   :  { %v660_v4 = vadd.f32 %v1842_v61, %v659_v44  ;;  %1319 = vmatmul.msk.bf16.gmra.mxu1 %vm443_vm0, %v1146_v12  ;;  %v581_v15 = vpop.f32.mrf.mxu0 }
 0x107   :  { %v582_v16 = vadd.f32 %v1842_v61, %v581_v15 }
 0x108   :  { %v1461_v40 = vpop.eup %1460  ;;  %v829_v17 = vadd.f32 %v2071_v8, %v660_v4  ;;  %v1366_v8 = vld [vmem:[%s2418_s0 + $0xf4] sm:$0xf0] }
 0x109   :  { %v1463_v6 = vpop.eup %1462  ;;  %986 = vst.msk [vmem:[%s2420_s3 + $0x158] sm:$0xff] %vm942_vm1, %v1461_v40  ;;  %v751_v18 = vadd.f32 %v2104_v23, %v582_v16  ;;  %v1134_v25 = vor.u32 %v1366_v8, %v1133_v21 }
 0x10a   :  { %955 = vst.msk [vmem:[%s2420_s3 + $0x60] sm:$0xff] %vm942_vm1, %v1463_v6  ;;  %1464 = vtanh.f32 %v829_v17  ;;  %v843_v50 = vpop.f32.mrf.mxu3 }
 0x10b   :  { %1466 = vtanh.f32 %v751_v18  ;;  %v760_v62 = vpop.f32.mrf.mxu1 }
 0x10d   :  { %v661_v23 = vpop.f32.mrf.mxu2 }
 0x10e   :  { %v662_v26 = vadd.f32 %v1842_v61, %v661_v23  ;;  %v584_v28 = vpop.f32.mrf.mxu0 }
 0x10f   :  { %v585_v30 = vadd.f32 %v1842_v61, %v584_v28 }
 0x110   :  { %v1465_v32 = vpop.eup %1464  ;;  %v831_v34 = vadd.f32 %v2112_v27, %v662_v26 }
 0x111   :  { %v1467_v36 = vpop.eup %1466  ;;  %987 = vst.msk [vmem:[%s2420_s3 + $0x160] sm:$0xff] %vm942_vm1, %v1465_v32  ;;  %v754_v37 = vadd.f32 %v2133_v45, %v585_v30  ;;  %623 = vmatmul.bf16.gmra.mxu0 %v1134_v25 }
 0x112   :  { %956 = vst.msk [vmem:[%s2420_s3 + $0x68] sm:$0xff] %vm942_vm1, %v1467_v36  ;;  %1468 = vtanh.f32 %v831_v34  ;;  %703 = vmatmul.bf16.gmra.mxu2 %v1262_v29  ;;  %v845_v60 = vpop.f32.mrf.mxu3 }
 0x113   :  { %1470 = vtanh.f32 %v754_v37  ;;  %v763_v38 = vpop.f32.mrf.mxu1 }
 0x115   :  { %v664_v27 = vpop.f32.mrf.mxu2 }
 0x116   :  { %v665_v13 = vadd.f32 %v1842_v61, %v664_v27  ;;  %v586_v42 = vpop.f32.mrf.mxu0 }
 0x117   :  { %v587_v43 = vadd.f32 %v1842_v61, %v586_v42 }
 0x118   :  { %v1469_v35 = vpop.eup %1468  ;;  %v834_v45 = vadd.f32 %v2135_v46, %v665_v13 }
 0x119   :  { %v1471_v9 = vpop.eup %1470  ;;  %988 = vst.msk [vmem:[%s2420_s3 + $0x168] sm:$0xff] %vm942_vm1, %v1469_v35  ;;  %v756_v47 = vadd.f32 %v2156_v55, %v587_v43 }
 0x11a   :  { %957 = vst.msk [vmem:[%s2420_s3 + $0x70] sm:$0xff] %vm942_vm1, %v1471_v9  ;;  %1472 = vtanh.f32 %v834_v45  ;;  %v848_v15 = vpop.f32.mrf.mxu3 }
 0x11b   :  { %1474 = vtanh.f32 %v756_v47  ;;  %v765_v41 = vpop.f32.mrf.mxu1 }
 0x11d   :  { %v666_v48 = vpop.f32.mrf.mxu2 }
 0x11e   :  { %v667_v46 = vadd.f32 %v1842_v61, %v666_v48  ;;  %v589_v51 = vpop.f32.mrf.mxu0 }
 0x11f   :  { %v590_v31 = vadd.f32 %v1842_v61, %v589_v51 }
 0x120   :  { %v1473_v49 = vpop.eup %1472  ;;  %v836_v52 = vadd.f32 %v2172_v3, %v667_v46 }
 0x121   :  { %v1475_v33 = vpop.eup %1474  ;;  %989 = vst.msk [vmem:[%s2420_s3 + $0x170] sm:$0xff] %vm942_vm1, %v1473_v49  ;;  %v759_v55 = vadd.f32 %v758_v14, %v590_v31 }
 0x122   :  { %958 = vst.msk [vmem:[%s2420_s3 + $0x78] sm:$0xff] %vm942_vm1, %v1475_v33  ;;  %1476 = vtanh.f32 %v836_v52  ;;  %v850_v22 = vpop.f32.mrf.mxu3 }
 0x123   :  { %1478 = vtanh.f32 %v759_v55  ;;  %v768_v53 = vpop.f32.mrf.mxu1 }
 0x125   :  { %v669_v56 = vpop.f32.mrf.mxu2 }
 0x126   :  { %v670_v57 = vadd.f32 %v1842_v61, %v669_v56  ;;  %v591_v58 = vpop.f32.mrf.mxu0 }
 0x127   :  { %v592_v59 = vadd.f32 %v1842_v61, %v591_v58 }
 0x128   :  { %v1477_v63 = vpop.eup %1476  ;;  %v839_v0 = vadd.f32 %v838_v19, %v670_v57 }
 0x129   :  { %v1479_v1 = vpop.eup %1478  ;;  %990 = vst.msk [vmem:[%s2420_s3 + $0x178] sm:$0xff] %vm942_vm1, %v1477_v63  ;;  %v761_v2 = vadd.f32 %v760_v62, %v592_v59 }
 0x12a   :  { %959 = vst.msk [vmem:[%s2420_s3 + $0x80] sm:$0xff] %vm942_vm1, %v1479_v1  ;;  %1480 = vtanh.f32 %v839_v0 }
 0x12b   :  { %1482 = vtanh.f32 %v761_v2  ;;  %v770_v3 = vpop.f32.mrf.mxu1 }
 0x12d   :  { %v671_v54 = vpop.f32.mrf.mxu2 }
 0x12e   :  { %v672_v5 = vadd.f32 %v1842_v61, %v671_v54  ;;  %v594_v7 = vpop.f32.mrf.mxu0 }
 0x12f   :  { %v595_v11 = vadd.f32 %v1842_v61, %v594_v7 }
 0x130   :  { %v1481_v12 = vpop.eup %1480  ;;  %v841_v14 = vadd.f32 %v840_v39, %v672_v5 }
 0x131   :  { %v1483_v44 = vpop.eup %1482  ;;  %991 = vst.msk [vmem:[%s2420_s3 + $0x180] sm:$0xff] %vm942_vm1, %v1481_v12  ;;  %v764_v4 = vadd.f32 %v763_v38, %v595_v11  ;;  %v853_v38 = vpop.f32.mrf.mxu3 }
 0x132   :  { %960 = vst.msk [vmem:[%s2420_s3 + $0x88] sm:$0xff] %vm942_vm1, %v1483_v44  ;;  %1484 = vtanh.f32 %v841_v14 }
 0x133   :  { %1486 = vtanh.f32 %v764_v4  ;;  %v773_v16 = vpop.f32.mrf.mxu1 }
 0x135   :  { %v674_v40 = vpop.f32.mrf.mxu2 }
 0x136   :  { %v675_v17 = vadd.f32 %v1842_v61, %v674_v40  ;;  %v596_v6 = vpop.f32.mrf.mxu0 }
 0x137   :  { %v597_v18 = vadd.f32 %v1842_v61, %v596_v6 }
 0x138   :  { %v1485_v19 = vpop.eup %1484  ;;  %v844_v21 = vadd.f32 %v843_v50, %v675_v17 }
 0x139   :  { %v1487_v8 = vpop.eup %1486  ;;  %992 = vst.msk [vmem:[%s2420_s3 + $0x188] sm:$0xff] %vm942_vm1, %v1485_v19  ;;  %v766_v62 = vadd.f32 %v765_v41, %v597_v18  ;;  %v855_v46 = vpop.f32.mrf.mxu3 }
 0x13a   :  { %961 = vst.msk [vmem:[%s2420_s3 + $0x90] sm:$0xff] %vm942_vm1, %v1487_v8  ;;  %1488 = vtanh.f32 %v844_v21 }
 0x13b   :  { %1490 = vtanh.f32 %v766_v62  ;;  %v775_v20 = vpop.f32.mrf.mxu1 }
 0x13d   :  { %v676_v23 = vpop.f32.mrf.mxu2 }
 0x13e   :  { %v677_v25 = vadd.f32 %v1842_v61, %v676_v23  ;;  %v599_v26 = vpop.f32.mrf.mxu0 }
 0x13f   :  { %v600_v28 = vadd.f32 %v1842_v61, %v599_v26 }
 0x140   :  { %v1489_v29 = vpop.eup %1488  ;;  %v846_v30 = vadd.f32 %v845_v60, %v677_v25 }
 0x141   :  { %v1491_v32 = vpop.eup %1490  ;;  %993 = vst.msk [vmem:[%s2420_s3 + $0x190] sm:$0xff] %vm942_vm1, %v1489_v29  ;;  %v769_v34 = vadd.f32 %v768_v53, %v600_v28  ;;  %v858_v0 = vpop.f32.mrf.mxu3 }
 0x142   :  { %962 = vst.msk [vmem:[%s2420_s3 + $0x98] sm:$0xff] %vm942_vm1, %v1491_v32  ;;  %1492 = vtanh.f32 %v846_v30 }
 0x143   :  { %1494 = vtanh.f32 %v769_v34  ;;  %v778_v36 = vpop.f32.mrf.mxu1 }
 0x145   :  { %v679_v37 = vpop.f32.mrf.mxu2 }
 0x146   :  { %v680_v39 = vadd.f32 %v1842_v61, %v679_v37  ;;  %v601_v27 = vpop.f32.mrf.mxu0 }
 0x147   :  { %v602_v13 = vadd.f32 %v1842_v61, %v601_v27 }
 0x148   :  { %v1493_v42 = vpop.eup %1492  ;;  %v849_v43 = vadd.f32 %v848_v15, %v680_v39 }
 0x149   :  { %v1495_v35 = vpop.eup %1494  ;;  %994 = vst.msk [vmem:[%s2420_s3 + $0x198] sm:$0xff] %vm942_vm1, %v1493_v42  ;;  %v771_v45 = vadd.f32 %v770_v3, %v602_v13  ;;  %v860_v4 = vpop.f32.mrf.mxu3 }
 0x14a   :  { %963 = vst.msk [vmem:[%s2420_s3 + $0xa0] sm:$0xff] %vm942_vm1, %v1495_v35  ;;  %1496 = vtanh.f32 %v849_v43 }
 0x14b   :  { %1498 = vtanh.f32 %v771_v45  ;;  %v780_v9 = vpop.f32.mrf.mxu1 }
 0x14d   :  { %v681_v47 = vpop.f32.mrf.mxu2 }
 0x14e   :  { %v682_v41 = vadd.f32 %v1842_v61, %v681_v47  ;;  %v604_v48 = vpop.f32.mrf.mxu0 }
 0x14f   :  { %v605_v50 = vadd.f32 %v1842_v61, %v604_v48 }
 0x150   :  { %v1497_v51 = vpop.eup %1496  ;;  %v851_v31 = vadd.f32 %v850_v22, %v682_v41 }
 0x151   :  { %v1499_v49 = vpop.eup %1498  ;;  %995 = vst.msk [vmem:[%s2420_s3 + $0x1a0] sm:$0xff] %vm942_vm1, %v1497_v51  ;;  %v774_v52 = vadd.f32 %v773_v16, %v605_v50 }
 0x152   :  { %964 = vst.msk [vmem:[%s2420_s3 + $0xa8] sm:$0xff] %vm942_vm1, %v1499_v49  ;;  %1500 = vtanh.f32 %v851_v31  ;;  %v630_v49 = vadd.f32 %v1842_v61, %v1862_v10 }
 0x153   :  { %1502 = vtanh.f32 %v774_v52  ;;  %v783_v33 = vpop.f32.mrf.mxu1 }
 0x155   :  { %v684_v55 = vpop.f32.mrf.mxu2 }
 0x156   :  { %v685_v53 = vadd.f32 %v1842_v61, %v684_v55  ;;  %v606_v56 = vpop.f32.mrf.mxu0 }
 0x157   :  { %v607_v57 = vadd.f32 %v1842_v61, %v606_v56 }
 0x158   :  { %v1501_v58 = vpop.eup %1500  ;;  %v854_v59 = vadd.f32 %v853_v38, %v685_v53 }
 0x159   :  { %v1503_v60 = vpop.eup %1502  ;;  %996 = vst.msk [vmem:[%s2420_s3 + $0x1a8] sm:$0xff] %vm942_vm1, %v1501_v58  ;;  %v776_v63 = vadd.f32 %v775_v20, %v607_v57  ;;  %v863_v20 = vpop.f32.mrf.mxu3 }
 0x15a   :  { %965 = vst.msk [vmem:[%s2420_s3 + $0xb0] sm:$0xff] %vm942_vm1, %v1503_v60  ;;  %1504 = vtanh.f32 %v854_v59 }
 0x15b   :  { %1506 = vtanh.f32 %v776_v63  ;;  %v785_v1 = vpop.f32.mrf.mxu1  ;;  %v632_v63 = vadd.f32 %v1842_v61, %v1893_v24 }
 0x15d   :  { %v686_v2 = vpop.f32.mrf.mxu2 }
 0x15e   :  { %v687_v3 = vadd.f32 %v1842_v61, %v686_v2  ;;  %v609_v54 = vpop.f32.mrf.mxu0 }
 0x15f   :  { %v610_v5 = vadd.f32 %v1842_v61, %v609_v54 }
 0x160   :  { %v1505_v7 = vpop.eup %1504  ;;  %v856_v11 = vadd.f32 %v855_v46, %v687_v3 }
 0x161   :  { %v1507_v12 = vpop.eup %1506  ;;  %997 = vst.msk [vmem:[%s2420_s3 + $0x1b0] sm:$0xff] %vm942_vm1, %v1505_v7  ;;  %v779_v14 = vadd.f32 %v778_v36, %v610_v5  ;;  %v865_v39 = vpop.f32.mrf.mxu3 }
 0x162   :  { %966 = vst.msk [vmem:[%s2420_s3 + $0xb8] sm:$0xff] %vm942_vm1, %v1507_v12  ;;  %1508 = vtanh.f32 %v856_v11 }
 0x163   :  { %1510 = vtanh.f32 %v779_v14  ;;  %v788_v44 = vpop.f32.mrf.mxu1 }
 0x165   :  { %v689_v15 = vpop.f32.mrf.mxu2 }
 0x166   :  { %v690_v16 = vadd.f32 %v1842_v61, %v689_v15  ;;  %v611_v40 = vpop.f32.mrf.mxu0 }
 0x167   :  { %v612_v17 = vadd.f32 %v1842_v61, %v611_v40 }
 0x168   :  { %v1509_v6 = vpop.eup %1508  ;;  %v859_v18 = vadd.f32 %v858_v0, %v690_v16 }
 0x169   :  { %v1511_v19 = vpop.eup %1510  ;;  %998 = vst.msk [vmem:[%s2420_s3 + $0x1b8] sm:$0xff] %vm942_vm1, %v1509_v6  ;;  %v781_v21 = vadd.f32 %v780_v9, %v612_v17  ;;  %v868_v31 = vpop.f32.mrf.mxu3 }
 0x16a   :  { %967 = vst.msk [vmem:[%s2420_s3 + $0xc0] sm:$0xff] %vm942_vm1, %v1511_v19  ;;  %1512 = vtanh.f32 %v859_v18 }
 0x16b   :  { %1514 = vtanh.f32 %v781_v21  ;;  %v790_v8 = vpop.f32.mrf.mxu1 }
 0x16d   :  { %v691_v62 = vpop.f32.mrf.mxu2 }
 0x16e   :  { %v692_v22 = vadd.f32 %v1842_v61, %v691_v62  ;;  %v614_v23 = vpop.f32.mrf.mxu0 }
 0x16f   :  { %v615_v25 = vadd.f32 %v1842_v61, %v614_v23 }
 0x170   :  { %v1513_v26 = vpop.eup %1512  ;;  %v861_v28 = vadd.f32 %v860_v4, %v692_v22 }
 0x171   :  { %v1515_v29 = vpop.eup %1514  ;;  %999 = vst.msk [vmem:[%s2420_s3 + $0x1c0] sm:$0xff] %vm942_vm1, %v1513_v26  ;;  %v784_v30 = vadd.f32 %v783_v33, %v615_v25  ;;  %v870_v0 = vpop.f32.mrf.mxu3 }
 0x172   :  { %968 = vst.msk [vmem:[%s2420_s3 + $0xc8] sm:$0xff] %vm942_vm1, %v1515_v29  ;;  %1516 = vtanh.f32 %v861_v28 }
 0x173   :  { %1518 = vtanh.f32 %v784_v30  ;;  %v793_v32 = vpop.f32.mrf.mxu1 }
 0x175   :  { %v694_v34 = vpop.f32.mrf.mxu2 }
 0x176   :  { %v695_v36 = vadd.f32 %v1842_v61, %v694_v34  ;;  %v616_v37 = vpop.f32.mrf.mxu0 }
 0x177   :  { %v617_v38 = vadd.f32 %v1842_v61, %v616_v37 }
 0x178   :  { %v1517_v27 = vpop.eup %1516  ;;  %v864_v13 = vadd.f32 %v863_v20, %v695_v36 }
 0x179   :  { %v1519_v42 = vpop.eup %1518  ;;  %1000 = vst.msk [vmem:[%s2420_s3 + $0x1c8] sm:$0xff] %vm942_vm1, %v1517_v27  ;;  %v786_v43 = vadd.f32 %v785_v1, %v617_v38  ;;  %v873_v15 = vpop.f32.mrf.mxu3 }
 0x17a   :  { %969 = vst.msk [vmem:[%s2420_s3 + $0xd0] sm:$0xff] %vm942_vm1, %v1519_v42  ;;  %1520 = vtanh.f32 %v864_v13 }
 0x17b   :  { %1522 = vtanh.f32 %v786_v43  ;;  %v795_v35 = vpop.f32.mrf.mxu1 }
 0x17d   :  { %v696_v45 = vpop.f32.mrf.mxu2 }
 0x17e   :  { %v697_v9 = vadd.f32 %v1842_v61, %v696_v45  ;;  %v619_v47 = vpop.f32.mrf.mxu0 }
 0x17f   :  { %v620_v41 = vadd.f32 %v1842_v61, %v619_v47 }
 0x180   :  { %v1521_v48 = vpop.eup %1520  ;;  %v866_v50 = vadd.f32 %v865_v39, %v697_v9 }
 0x181   :  { %v1523_v46 = vpop.eup %1522  ;;  %1001 = vst.msk [vmem:[%s2420_s3 + $0x1d0] sm:$0xff] %vm942_vm1, %v1521_v48  ;;  %v789_v51 = vadd.f32 %v788_v44, %v620_v41  ;;  %v875_v22 = vpop.f32.mrf.mxu3 }
 0x182   :  { %970 = vst.msk [vmem:[%s2420_s3 + $0xd8] sm:$0xff] %vm942_vm1, %v1523_v46  ;;  %1524 = vtanh.f32 %v866_v50 }
 0x183   :  { %1526 = vtanh.f32 %v789_v51  ;;  %v798_v52 = vpop.f32.mrf.mxu1 }
 0x184   :  { %v799_v33 = vadd.f32 %v798_v52, %v630_v49 }
 0x185   :  { %v699_v55 = vpop.f32.mrf.mxu2 }
 0x186   :  { %1528 = vtanh.f32 %v799_v33  ;;  %v700_v53 = vadd.f32 %v1842_v61, %v699_v55  ;;  %v621_v56 = vpop.f32.mrf.mxu0 }
 0x187   :  { %v622_v57 = vadd.f32 %v1842_v61, %v621_v56  ;;  %v1546_v61 = vld [vmem:[%s2419_s2] ss:$0 sm:$0xff] }
 0x188   :  { %v1525_v58 = vpop.eup %1524  ;;  %v869_v59 = vadd.f32 %v868_v31, %v700_v53 }
 0x189   :  { %v1527_v60 = vpop.eup %1526  ;;  %1002 = vst.msk [vmem:[%s2420_s3 + $0x1d8] sm:$0xff] %vm942_vm1, %v1525_v58  ;;  %v791_v10 = vadd.f32 %v790_v8, %v622_v57 }
 0x18a   :  { %971 = vst.msk [vmem:[%s2420_s3 + $0xe0] sm:$0xff] %vm942_vm1, %v1527_v60  ;;  %1530 = vtanh.f32 %v869_v59 }
 0x18b   :  { %1532 = vtanh.f32 %v791_v10  ;;  %v800_v1 = vpop.f32.mrf.mxu1 }
 0x18c   :  { %v1529_v2 = vpop.eup %1528  ;;  %v801_v3 = vadd.f32 %v800_v1, %v632_v63 }
 0x18d   :  { %975 = vst.msk [vmem:[%s2420_s3 + $0x100] sm:$0xff] %vm942_vm1, %v1529_v2  ;;  %v701_v54 = vpop.f32.mrf.mxu2 }
 0x18e   :  { %1534 = vtanh.f32 %v801_v3  ;;  %v702_v24 = vadd.f32 %v1546_v61, %v701_v54  ;;  %v624_v5 = vpop.f32.mrf.mxu0 }
 0x18f   :  { %v625_v7 = vadd.f32 %v1546_v61, %v624_v5 }
 0x190   :  { %v1531_v11 = vpop.eup %1530  ;;  %v871_v12 = vadd.f32 %v870_v0, %v702_v24 }
 0x191   :  { %v1533_v14 = vpop.eup %1532  ;;  %1003 = vst.msk [vmem:[%s2420_s3 + $0x1e0] sm:$0xff] %vm942_vm1, %v1531_v11  ;;  %v794_v44 = vadd.f32 %v793_v32, %v625_v7 }
 0x192   :  { %972 = vst.msk [vmem:[%s2420_s3 + $0xe8] sm:$0xff] %vm942_vm1, %v1533_v14  ;;  %1536 = vtanh.f32 %v871_v12 }
 0x193   :  { %1538 = vtanh.f32 %v794_v44 }
 0x194   :  { %v1535_v4 = vpop.eup %1534 }
 0x195   :  { %976 = vst.msk [vmem:[%s2420_s3 + $0x108] sm:$0xff] %vm942_vm1, %v1535_v4  ;;  %v704_v16 = vpop.f32.mrf.mxu2 }
 0x196   :  { %v705_v40 = vadd.f32 %v1546_v61, %v704_v16  ;;  %v626_v17 = vpop.f32.mrf.mxu0 }
 0x197   :  { %v627_v6 = vadd.f32 %v1546_v61, %v626_v17 }
 0x198   :  { %v1537_v18 = vpop.eup %1536  ;;  %v874_v19 = vadd.f32 %v873_v15, %v705_v40 }
 0x199   :  { %v1539_v21 = vpop.eup %1538  ;;  %1004 = vst.msk [vmem:[%s2420_s3 + $0x1e8] sm:$0xff] %vm942_vm1, %v1537_v18  ;;  %v796_v8 = vadd.f32 %v795_v35, %v627_v6 }
 0x19a   :  { %973 = vst.msk [vmem:[%s2420_s3 + $0xf0] sm:$0xff] %vm942_vm1, %v1539_v21  ;;  %1540 = vtanh.f32 %v874_v19 }
 0x19b   :  { %1542 = vtanh.f32 %v796_v8 }
 0x19d   :  { %v706_v62 = vpop.f32.mrf.mxu2 }
 0x19e   :  { %v707_v20 = vadd.f32 %v1546_v61, %v706_v62 }
 0x1a0   :  { %v1541_v23 = vpop.eup %1540  ;;  %v876_v25 = vadd.f32 %v875_v22, %v707_v20 }
 0x1a1   :  { %v1543_v26 = vpop.eup %1542  ;;  %1005 = vst.msk [vmem:[%s2420_s3 + $0x1f0] sm:$0xff] %vm942_vm1, %v1541_v23 }
 0x1a2   :  { %974 = vst.msk [vmem:[%s2420_s3 + $0xf8] sm:$0xff] %vm942_vm1, %v1543_v26  ;;  %1544 = vtanh.f32 %v876_v25 }
 0x1a8   :  { %v1545_v28 = vpop.eup %1544 }
 0x1a9   :  { %1006 = vst.msk [vmem:[%s2420_s3 + $0x1f8] sm:$0xff] %vm942_vm1, %v1545_v28 }

</bundles_post_ra>
